<compile_context>
chip_gen: v6e
topology: v6e:2x2x1
jax: 0.10.0
libtpu: 0.0.40
codegen_flags: <defaults>
</compile_context>

<pallas_src>
import functools

import jax
import jax.numpy as jnp
from jax import lax
from jax.experimental import pallas as pl
from jax.experimental.pallas import tpu as pltpu


# ---------------------------------------------------------------------------
# In-kernel compute
# ---------------------------------------------------------------------------

def _im2col_matmul(x_win, w_ref, *, kh_size, kw_size, row_tile, w_out,
                   fold_taps):
    """x_win: (row_tile + KH - 1, W, Cin) bf16 value.

    Returns the conv accumulator (row_tile * w_out, Cout_mxu) in f32.
    """
    c_in = x_win.shape[-1]
    c_out_mxu = w_ref.shape[-1]
    m = row_tile * w_out

    if fold_taps:
        # Single MXU matmul with K = KH*KW*Cin.  Only selected when Cin is a
        # multiple of 128 so every concatenated tap slice is whole-vreg wide
        # (the lane concat is then cheap data movement, not insert/select
        # chains).  K-ordering ((kh*KW + kw)*Cin + cin) matches the host-side
        # (KH, KW, Cin, Cout) -> (K, Cout) weight reshape.
        cols = []
        for kh in range(kh_size):
            rows = x_win[kh:kh + row_tile]                      # (TH, W, Cin)
            for kw in range(kw_size):
                cols.append(rows[:, kw:kw + w_out, :])          # (TH, Wo, Cin)
        patches = jnp.concatenate(cols, axis=-1)                # (TH, Wo, K)
        patches = patches.reshape(m, kh_size * kw_size * c_in)
        return jnp.dot(patches, w_ref[...],
                       preferred_element_type=jnp.float32)

    # Small / unaligned Cin: per-tap accumulation (KH*KW small matmuls with
    # K = Cin each) avoids the narrow-lane concat entirely.
    # TODO(synk): the fully lane-dense route for small Cin is to store x as
    # (N, H, W*Cin) and build the kw taps with pltpu.roll along lanes.
    w_all = w_ref[...]                                          # (K, Cout_mxu)
    acc = jnp.zeros((m, c_out_mxu), jnp.float32)
    for kh in range(kh_size):
        rows = x_win[kh:kh + row_tile]                          # (TH, W, Cin)
        for kw in range(kw_size):
            tap = kh * kw_size + kw
            patch = rows[:, kw:kw + w_out, :].reshape(m, c_in)
            acc = acc + jnp.dot(patch,
                                w_all[tap * c_in:(tap + 1) * c_in],
                                preferred_element_type=jnp.float32)
    return acc


def _epilogue(acc, b_ref, o_ref, *, row_tile):
    """Folded-BN bias + ReLU; drop the MXU lane padding at the store."""
    w_out = o_ref.shape[2]
    c_out = o_ref.shape[3]            # real (unpadded) Cout
    c_out_mxu = acc.shape[-1]
    y = jnp.maximum(acc + b_ref[...], 0.0)
    y = y.reshape(1, row_tile, w_out, c_out_mxu)
    # Dropout (p=0.1) in eval mode is the identity.
    o_ref[...] = y[..., :c_out].astype(o_ref.dtype)


def _conv_kernel_resident(x_ref, w_ref, b_ref, o_ref, *, kh_size, kw_size,
                          row_tile, fold_taps):
    """Full image resident in VMEM; one dynamic row-window load per tile."""
    t = pl.program_id(1)
    th_in = row_tile + kh_size - 1
    x_win = x_ref[0, pl.ds(t * row_tile, th_in), :, :]          # (TH_in, W, Cin)
    acc = _im2col_matmul(x_win, w_ref, kh_size=kh_size, kw_size=kw_size,
                         row_tile=row_tile, w_out=o_ref.shape[2],
                         fold_taps=fold_taps)
    _epilogue(acc, b_ref, o_ref, row_tile=row_tile)


def _conv_kernel_halo(x_hbm, w_ref, b_ref, o_ref, xwin_ref, dma_sem, *,
                      kh_size, kw_size, row_tile, fold_taps):
    """Input stays in HBM; only a halo'd row window is DMA'd per grid step."""
    i = pl.program_id(0)
    t = pl.program_id(1)
    th_in = row_tile + kh_size - 1
    cp = pltpu.make_async_copy(
        x_hbm.at[pl.ds(i, 1), pl.ds(t * row_tile, th_in)],
        xwin_ref,
        dma_sem.at[0])
    cp.start()
    cp.wait()
    # TODO(synk): double-buffer this DMA across row tiles; a blocking copy is
    # used because cross-step prefetch priming is not megacore-shard safe.
    x_win = xwin_ref[0]                                         # (TH_in, W, Cin)
    acc = _im2col_matmul(x_win, w_ref, kh_size=kh_size, kw_size=kw_size,
                         row_tile=row_tile, w_out=o_ref.shape[2],
                         fold_taps=fold_taps)
    _epilogue(acc, b_ref, o_ref, row_tile=row_tile)


# ---------------------------------------------------------------------------
# Host-side helpers
# ---------------------------------------------------------------------------

def _round_up(x, m):
    return (x + m - 1) // m * m


def _vmem_bytes(shape, dtype):
    """Approximate VMEM footprint with Mosaic's tiled layout (2nd-minor padded
    to the native sublane tile, minor padded to 128 lanes)."""
    itemsize = jnp.dtype(dtype).itemsize
    dims = list(int(d) for d in shape)
    if len(dims) >= 1:
        dims[-1] = _round_up(dims[-1], 128)
    if len(dims) >= 2:
        dims[-2] = _round_up(dims[-2], 8 * max(1, 4 // itemsize))
    total = 1
    for d in dims:
        total *= d
    return total * itemsize


def _pick_vmem_limit():
    """Per-generation scoped-VMEM budget: ~96 MiB on v5e/v6e, ~48 MiB on v7x."""
    cap = None
    try:
        cap = getattr(pltpu.get_tpu_info(), "vmem_capacity_bytes", None)
    except Exception:
        cap = None
    if not cap:
        cap = 64 * 1024 * 1024          # conservative: v7x per-TensorCore VMEM
    return int(min(cap * 3 // 4, 100 * 1024 * 1024))


def _call_kernel(x_nhwc, w_mat, b_vec, *, n, h, w, c_in, kh, kw, h_out, w_out,
                 c_out, c_out_mxu, row_tile, num_row_tiles, out_dtype,
                 fold_taps, use_halo, vmem_limit):
    th_in = row_tile + kh - 1
    out_shape = jax.ShapeDtypeStruct((n, h_out, w_out, c_out), out_dtype)
    out_spec = pl.BlockSpec((1, row_tile, w_out, c_out),
                            lambda i, t: (i, t, 0, 0))
    # Grid-constant operands (block index never changes across the grid).
    # TODO(synk): pipeline_mode=pl.Buffered(1) here would reclaim their second
    # VMEM buffer (matters on v7x's 64 MiB VMEM for large Cin*Cout layers).
    w_spec = pl.BlockSpec((kh * kw * c_in, c_out_mxu), lambda i, t: (0, 0))
    b_spec = pl.BlockSpec((1, c_out_mxu), lambda i, t: (0, 0))
    compiler_params = pltpu.CompilerParams(
        dimension_semantics=("parallel", "parallel"),
        vmem_limit_bytes=vmem_limit)

    if use_halo:
        kernel = functools.partial(_conv_kernel_halo, kh_size=kh, kw_size=kw,
                                   row_tile=row_tile, fold_taps=fold_taps)
        grid_spec = pltpu.PrefetchScalarGridSpec(
            num_scalar_prefetch=0,
            grid=(n, num_row_tiles),
            in_specs=[pl.BlockSpec(memory_space=pl.ANY), w_spec, b_spec],
            out_specs=out_spec,
            scratch_shapes=[pltpu.VMEM((1, th_in, w, c_in), jnp.bfloat16),
                            pltpu.SemaphoreType.DMA((1,))])
    else:
        kernel = functools.partial(_conv_kernel_resident, kh_size=kh,
                                   kw_size=kw, row_tile=row_tile,
                                   fold_taps=fold_taps)
        grid_spec = pltpu.PrefetchScalarGridSpec(
            num_scalar_prefetch=0,
            grid=(n, num_row_tiles),
            in_specs=[pl.BlockSpec((1, h, w, c_in), lambda i, t: (i, 0, 0, 0)),
                      w_spec, b_spec],
            out_specs=out_spec)

    return pl.pallas_call(kernel, out_shape=out_shape, grid_spec=grid_spec,
                          compiler_params=compiler_params)(x_nhwc, w_mat, b_vec)


def conv_block_forward(x_nchw, weight, bias, gamma, beta, running_mean,
                       running_var, *, eps=1e-5, row_tile=None,
                       out_dtype=jnp.bfloat16, force_halo=None):
    """conv_block forward (eval mode), PyTorch layouts in/out.

    x_nchw : (N, Cin, H, W) f32;  weight : (Cout, Cin, KH, KW) f32
    bias, gamma, beta, running_mean, running_var : (Cout,) f32
    returns: (N, Cout, H-KH+1, W-KW+1) in `out_dtype` (valid conv, stride 1).

    out_dtype defaults to bf16 (halves HBM writeback; the MXU operands are
    bf16 anyway).  Pass jnp.float32 for a PyTorch-dtype-matching output.
    """
    n, c_in, h, w = x_nchw.shape
    c_out, _, kh, kw = weight.shape
    h_out, w_out = h - kh + 1, w - kw + 1
    c_out_mxu = _round_up(c_out, 128)
    # TODO(synk): for Cout > 256, tile Cout as a third grid axis in 256-wide
    # blocks so the v6e/v7x 2x256x256 MXU N dimension is filled.

    # ---- Host-side BN fold (one-time, O(KH*KW*Cin*Cout)) --------------------
    scale = gamma * lax.rsqrt(running_var + eps)                 # (Cout,)
    w_folded = weight * scale[:, None, None, None]               # (Cout,Cin,KH,KW)
    b_folded = (bias - running_mean) * scale + beta              # (Cout,)

    # ---- Layout glue (transpose / pad / cast only) --------------------------
    x_nhwc = jnp.transpose(x_nchw, (0, 2, 3, 1)).astype(jnp.bfloat16)
    w_mat = jnp.transpose(w_folded, (2, 3, 1, 0)).reshape(kh * kw * c_in, c_out)
    w_mat = jnp.pad(w_mat, ((0, 0), (0, c_out_mxu - c_out))).astype(jnp.bfloat16)
    b_vec = jnp.pad(b_folded, (0, c_out_mxu - c_out)).reshape(1, c_out_mxu)
    b_vec = b_vec.astype(jnp.float32)

    # ---- Row-tile selection --------------------------------------------------
    # Prefer divisors of h_out whose M = row_tile*w_out is a multiple of 8,
    # bound the f32 accumulator tile, and keep >= 2 total grid steps so both
    # v7x TensorCores get work.
    out_budget = 2 * 1024 * 1024
    divs = [d for d in range(1, h_out + 1) if h_out % d == 0]
    if row_tile is not None:
        divs = [d for d in divs if d <= row_tile] or [1]
    fits = [d for d in divs
            if _vmem_bytes((d * w_out, c_out_mxu), jnp.float32) <= out_budget]
    fits = fits or [min(divs)]
    cands = [d for d in fits if (h_out // d) * n >= 2] or fits
    aligned = [d for d in cands if (d * w_out) % 8 == 0]
    row_tile = max(aligned or cands)
    num_row_tiles = h_out // row_tile
    # TODO(synk): a prime h_out larger than the budget degrades to row_tile=1;
    # switch to pl.cdiv tiling with a short final tile to remove that cliff.

    # ---- Static path selection (no try/except around pallas_call) -----------
    fold_taps = (c_in % 128 == 0)
    vmem_limit = _pick_vmem_limit()
    fixed_vmem = (2 * _vmem_bytes(w_mat.shape, jnp.bfloat16)
                  + 2 * _vmem_bytes(b_vec.shape, jnp.float32)
                  + 2 * _vmem_bytes((1, row_tile, w_out, c_out), out_dtype)
                  + 2 * _vmem_bytes((row_tile * w_out, c_out_mxu), jnp.float32))
    resident_vmem = fixed_vmem + 2 * _vmem_bytes((1, h, w, c_in), jnp.bfloat16)
    if force_halo is None:
        use_halo = resident_vmem > vmem_limit // 2
    else:
        use_halo = bool(force_halo)

    out = _call_kernel(x_nhwc, w_mat, b_vec, n=n, h=h, w=w, c_in=c_in, kh=kh,
                       kw=kw, h_out=h_out, w_out=w_out, c_out=c_out,
                       c_out_mxu=c_out_mxu, row_tile=row_tile,
                       num_row_tiles=num_row_tiles, out_dtype=out_dtype,
                       fold_taps=fold_taps, use_halo=use_halo,
                       vmem_limit=vmem_limit)
    return jnp.transpose(out, (0, 3, 1, 2))                     # NHWC -> NCHW


def _reference_forward(x_nchw, weight, bias, gamma, beta, mean, var,
                       eps=1e-5, compute_dtype=jnp.float32):
    """Pure-JAX eval-mode conv_block reference (optionally bf16 operands)."""
    scale = gamma * lax.rsqrt(var + eps)
    w_f = (weight * scale[:, None, None, None]).astype(compute_dtype)
    b_f = (bias - mean) * scale + beta
    y = lax.conv_general_dilated(
        x_nchw.astype(compute_dtype), w_f, window_strides=(1, 1),
        padding="VALID", dimension_numbers=("NCHW", "OIHW", "NCHW"),
        preferred_element_type=jnp.float32)
    y = y + b_f[None, :, None, None]
    return jnp.maximum(y, 0.0)


if __name__ == "__main__":
    key = jax.random.PRNGKey(0)
    k_x, k_w, k_b, k_g, k_be, k_m, k_v = jax.random.split(key, 7)

    N, C_IN, C_OUT, H, W, KH, KW = 2, 4, 8, 16, 16, 3, 3

    x = jax.random.normal(k_x, (N, C_IN, H, W), jnp.float32)
    weight = jax.random.normal(k_w, (C_OUT, C_IN, KH, KW), jnp.float32) * 0.1
    bias = jax.random.normal(k_b, (C_OUT,), jnp.float32) * 0.1
    gamma = 1.0 + 0.1 * jax.random.normal(k_g, (C_OUT,), jnp.float32)
    beta = 0.1 * jax.random.normal(k_be, (C_OUT,), jnp.float32)
    running_mean = 0.1 * jax.random.normal(k_m, (C_OUT,), jnp.float32)
    running_var = jnp.abs(1.0 + 0.1 * jax.random.normal(k_v, (C_OUT,),
                                                        jnp.float32))

    ref_bf16 = _reference_forward(x, weight, bias, gamma, beta, running_mean,
                                  running_var, compute_dtype=jnp.bfloat16)
    ref_f32 = _reference_forward(x, weight, bias, gamma, beta, running_mean,
                                 running_var, compute_dtype=jnp.float32)

    # (a) auto row tiling, resident-input path, f32 output;
    # (b) explicit 2-row-tile grid, manual halo-DMA input path, bf16 output.
    configs = (
        dict(row_tile=None, force_halo=False, out_dtype=jnp.float32),
        dict(row_tile=7, force_halo=True, out_dtype=jnp.bfloat16),
    )
    for cfg in configs:
        out = conv_block_forward(x, weight, bias, gamma, beta, running_mean,
                                 running_var, **cfg)
        out = jax.block_until_ready(out).astype(jnp.float32)
        assert out.shape == (N, C_OUT, H - KH + 1, W - KW + 1), out.shape
        # Tight check vs. a reference using the same bf16 MXU operands.
        assert jnp.allclose(out, ref_bf16, atol=2e-2, rtol=2e-2), (
            cfg, float(jnp.max(jnp.abs(out - ref_bf16))))
        # Loose check vs. the full-f32 (PyTorch-equivalent) reference; the gap
        # is purely the bf16 operand / output cast.
        assert jnp.allclose(out, ref_f32, atol=7e-2, rtol=7e-2), (
            cfg, float(jnp.max(jnp.abs(out - ref_f32))))

    print("KERNEL_OK")
</pallas_src>

<mosaic_0001>
module attributes {stable_mosaic.version = 11 : i64} {
  func.func @_conv_kernel_resident(%arg0: i32, %arg1: i32, %arg2: memref<1x16x16x4xbf16, #tpu.memory_space<vmem>>, %arg3: memref<36x128xbf16, #tpu.memory_space<vmem>>, %arg4: memref<1x128xf32, #tpu.memory_space<vmem>>, %arg5: memref<1x14x14x8xf32, #tpu.memory_space<vmem>>) attributes {dimension_semantics = [#tpu.dimension_semantics<parallel>, #tpu.dimension_semantics<parallel>], iteration_bounds = array<i64: 2, 1>, scalar_prefetch = 0 : i64, scratch_operands = 0 : i64, tpu.core_type = #tpu.core_type<tc>, window_params = [{transform_indices = @transform_0, window_bounds = array<i64: 1, 16, 16, 4>}, {pipeline_mode = #tpu.pipeline_mode<synchronous>, transform_indices = @transform_1, window_bounds = array<i64: 36, 128>}, {pipeline_mode = #tpu.pipeline_mode<synchronous>, transform_indices = @transform_2, window_bounds = array<i64: 1, 128>}, {transform_indices = @transform_3, window_bounds = array<i64: 1, 14, 14, 8>}]} {
    %c14_i32 = arith.constant 14 : i32
    %0 = arith.muli %arg1, %c14_i32 : i32
    %c0 = arith.constant 0 : index
    %1 = arith.index_cast %0 : i32 to index
    %c0_0 = arith.constant 0 : index
    %c0_1 = arith.constant 0 : index
    %2 = vector.load %arg2[%c0, %1, %c0_0, %c0_1] : memref<1x16x16x4xbf16, #tpu.memory_space<vmem>>, vector<1x16x16x4xbf16>
    %3 = vector.shape_cast %2 : vector<1x16x16x4xbf16> to vector<16x16x4xbf16>
    %c0_2 = arith.constant 0 : index
    %c0_3 = arith.constant 0 : index
    %4 = vector.load %arg3[%c0_2, %c0_3] : memref<36x128xbf16, #tpu.memory_space<vmem>>, vector<36x128xbf16>
    %cst = arith.constant 0.000000e+00 : f32
    %5 = vector.broadcast %cst : f32 to vector<196x128xf32>
    %6 = vector.extract_strided_slice %3 {offsets = [0, 0, 0], sizes = [14, 16, 4], strides = [1, 1, 1]} : vector<16x16x4xbf16> to vector<14x16x4xbf16>
    %7 = vector.extract_strided_slice %6 {offsets = [0, 0, 0], sizes = [14, 14, 4], strides = [1, 1, 1]} : vector<14x16x4xbf16> to vector<14x14x4xbf16>
    %8 = vector.shape_cast %7 : vector<14x14x4xbf16> to vector<196x4xbf16>
    %9 = vector.extract_strided_slice %4 {offsets = [0, 0], sizes = [4, 128], strides = [1, 1]} : vector<36x128xbf16> to vector<4x128xbf16>
    %cst_4 = arith.constant dense<0.000000e+00> : vector<196x128xf32>
    %10 = tpu.matmul %8, %9, %cst_4 {dimension_numbers = #tpu.dot_dimension_numbers<[1], [0], [0], [1], [0, 0, 1, 1], [], []>} : vector<196x4xbf16>, vector<4x128xbf16>, vector<196x128xf32> -> vector<196x128xf32>
    %11 = arith.addf %5, %10 : vector<196x128xf32>
    %12 = vector.extract_strided_slice %6 {offsets = [0, 1, 0], sizes = [14, 14, 4], strides = [1, 1, 1]} : vector<14x16x4xbf16> to vector<14x14x4xbf16>
    %13 = vector.shape_cast %12 : vector<14x14x4xbf16> to vector<196x4xbf16>
    %14 = vector.extract_strided_slice %4 {offsets = [4, 0], sizes = [4, 128], strides = [1, 1]} : vector<36x128xbf16> to vector<4x128xbf16>
    %cst_5 = arith.constant dense<0.000000e+00> : vector<196x128xf32>
    %15 = tpu.matmul %13, %14, %cst_5 {dimension_numbers = #tpu.dot_dimension_numbers<[1], [0], [0], [1], [0, 0, 1, 1], [], []>} : vector<196x4xbf16>, vector<4x128xbf16>, vector<196x128xf32> -> vector<196x128xf32>
    %16 = arith.addf %11, %15 : vector<196x128xf32>
    %17 = vector.extract_strided_slice %6 {offsets = [0, 2, 0], sizes = [14, 14, 4], strides = [1, 1, 1]} : vector<14x16x4xbf16> to vector<14x14x4xbf16>
    %18 = vector.shape_cast %17 : vector<14x14x4xbf16> to vector<196x4xbf16>
    %19 = vector.extract_strided_slice %4 {offsets = [8, 0], sizes = [4, 128], strides = [1, 1]} : vector<36x128xbf16> to vector<4x128xbf16>
    %cst_6 = arith.constant dense<0.000000e+00> : vector<196x128xf32>
    %20 = tpu.matmul %18, %19, %cst_6 {dimension_numbers = #tpu.dot_dimension_numbers<[1], [0], [0], [1], [0, 0, 1, 1], [], []>} : vector<196x4xbf16>, vector<4x128xbf16>, vector<196x128xf32> -> vector<196x128xf32>
    %21 = arith.addf %16, %20 : vector<196x128xf32>
    %22 = vector.extract_strided_slice %3 {offsets = [1, 0, 0], sizes = [14, 16, 4], strides = [1, 1, 1]} : vector<16x16x4xbf16> to vector<14x16x4xbf16>
    %23 = vector.extract_strided_slice %22 {offsets = [0, 0, 0], sizes = [14, 14, 4], strides = [1, 1, 1]} : vector<14x16x4xbf16> to vector<14x14x4xbf16>
    %24 = vector.shape_cast %23 : vector<14x14x4xbf16> to vector<196x4xbf16>
    %25 = vector.extract_strided_slice %4 {offsets = [12, 0], sizes = [4, 128], strides = [1, 1]} : vector<36x128xbf16> to vector<4x128xbf16>
    %cst_7 = arith.constant dense<0.000000e+00> : vector<196x128xf32>
    %26 = tpu.matmul %24, %25, %cst_7 {dimension_numbers = #tpu.dot_dimension_numbers<[1], [0], [0], [1], [0, 0, 1, 1], [], []>} : vector<196x4xbf16>, vector<4x128xbf16>, vector<196x128xf32> -> vector<196x128xf32>
    %27 = arith.addf %21, %26 : vector<196x128xf32>
    %28 = vector.extract_strided_slice %22 {offsets = [0, 1, 0], sizes = [14, 14, 4], strides = [1, 1, 1]} : vector<14x16x4xbf16> to vector<14x14x4xbf16>
    %29 = vector.shape_cast %28 : vector<14x14x4xbf16> to vector<196x4xbf16>
    %30 = vector.extract_strided_slice %4 {offsets = [16, 0], sizes = [4, 128], strides = [1, 1]} : vector<36x128xbf16> to vector<4x128xbf16>
    %cst_8 = arith.constant dense<0.000000e+00> : vector<196x128xf32>
    %31 = tpu.matmul %29, %30, %cst_8 {dimension_numbers = #tpu.dot_dimension_numbers<[1], [0], [0], [1], [0, 0, 1, 1], [], []>} : vector<196x4xbf16>, vector<4x128xbf16>, vector<196x128xf32> -> vector<196x128xf32>
    %32 = arith.addf %27, %31 : vector<196x128xf32>
    %33 = vector.extract_strided_slice %22 {offsets = [0, 2, 0], sizes = [14, 14, 4], strides = [1, 1, 1]} : vector<14x16x4xbf16> to vector<14x14x4xbf16>
    %34 = vector.shape_cast %33 : vector<14x14x4xbf16> to vector<196x4xbf16>
    %35 = vector.extract_strided_slice %4 {offsets = [20, 0], sizes = [4, 128], strides = [1, 1]} : vector<36x128xbf16> to vector<4x128xbf16>
    %cst_9 = arith.constant dense<0.000000e+00> : vector<196x128xf32>
    %36 = tpu.matmul %34, %35, %cst_9 {dimension_numbers = #tpu.dot_dimension_numbers<[1], [0], [0], [1], [0, 0, 1, 1], [], []>} : vector<196x4xbf16>, vector<4x128xbf16>, vector<196x128xf32> -> vector<196x128xf32>
    %37 = arith.addf %32, %36 : vector<196x128xf32>
    %38 = vector.extract_strided_slice %3 {offsets = [2, 0, 0], sizes = [14, 16, 4], strides = [1, 1, 1]} : vector<16x16x4xbf16> to vector<14x16x4xbf16>
    %39 = vector.extract_strided_slice %38 {offsets = [0, 0, 0], sizes = [14, 14, 4], strides = [1, 1, 1]} : vector<14x16x4xbf16> to vector<14x14x4xbf16>
    %40 = vector.shape_cast %39 : vector<14x14x4xbf16> to vector<196x4xbf16>
    %41 = vector.extract_strided_slice %4 {offsets = [24, 0], sizes = [4, 128], strides = [1, 1]} : vector<36x128xbf16> to vector<4x128xbf16>
    %cst_10 = arith.constant dense<0.000000e+00> : vector<196x128xf32>
    %42 = tpu.matmul %40, %41, %cst_10 {dimension_numbers = #tpu.dot_dimension_numbers<[1], [0], [0], [1], [0, 0, 1, 1], [], []>} : vector<196x4xbf16>, vector<4x128xbf16>, vector<196x128xf32> -> vector<196x128xf32>
    %43 = arith.addf %37, %42 : vector<196x128xf32>
    %44 = vector.extract_strided_slice %38 {offsets = [0, 1, 0], sizes = [14, 14, 4], strides = [1, 1, 1]} : vector<14x16x4xbf16> to vector<14x14x4xbf16>
    %45 = vector.shape_cast %44 : vector<14x14x4xbf16> to vector<196x4xbf16>
    %46 = vector.extract_strided_slice %4 {offsets = [28, 0], sizes = [4, 128], strides = [1, 1]} : vector<36x128xbf16> to vector<4x128xbf16>
    %cst_11 = arith.constant dense<0.000000e+00> : vector<196x128xf32>
    %47 = tpu.matmul %45, %46, %cst_11 {dimension_numbers = #tpu.dot_dimension_numbers<[1], [0], [0], [1], [0, 0, 1, 1], [], []>} : vector<196x4xbf16>, vector<4x128xbf16>, vector<196x128xf32> -> vector<196x128xf32>
    %48 = arith.addf %43, %47 : vector<196x128xf32>
    %49 = vector.extract_strided_slice %38 {offsets = [0, 2, 0], sizes = [14, 14, 4], strides = [1, 1, 1]} : vector<14x16x4xbf16> to vector<14x14x4xbf16>
    %50 = vector.shape_cast %49 : vector<14x14x4xbf16> to vector<196x4xbf16>
    %51 = vector.extract_strided_slice %4 {offsets = [32, 0], sizes = [4, 128], strides = [1, 1]} : vector<36x128xbf16> to vector<4x128xbf16>
    %cst_12 = arith.constant dense<0.000000e+00> : vector<196x128xf32>
    %52 = tpu.matmul %50, %51, %cst_12 {dimension_numbers = #tpu.dot_dimension_numbers<[1], [0], [0], [1], [0, 0, 1, 1], [], []>} : vector<196x4xbf16>, vector<4x128xbf16>, vector<196x128xf32> -> vector<196x128xf32>
    %53 = arith.addf %48, %52 : vector<196x128xf32>
    %c0_13 = arith.constant 0 : index
    %c0_14 = arith.constant 0 : index
    %54 = vector.load %arg4[%c0_13, %c0_14] : memref<1x128xf32, #tpu.memory_space<vmem>>, vector<1x128xf32>
    %55 = vector.broadcast %54 : vector<1x128xf32> to vector<196x128xf32>
    %56 = arith.addf %53, %55 : vector<196x128xf32>
    %cst_15 = arith.constant 0.000000e+00 : f32
    %57 = vector.broadcast %cst_15 : f32 to vector<196x128xf32>
    %58 = arith.maximumf %56, %57 : vector<196x128xf32>
    %59 = vector.shape_cast %58 : vector<196x128xf32> to vector<1x14x14x128xf32>
    %60 = vector.extract_strided_slice %59 {offsets = [0, 0, 0, 0], sizes = [1, 14, 14, 8], strides = [1, 1, 1, 1]} : vector<1x14x14x128xf32> to vector<1x14x14x8xf32>
    %c0_16 = arith.constant 0 : index
    %c0_17 = arith.constant 0 : index
    %c0_18 = arith.constant 0 : index
    %c0_19 = arith.constant 0 : index
    %61 = vector.load %arg5[%c0_16, %c0_17, %c0_18, %c0_19] : memref<1x14x14x8xf32, #tpu.memory_space<vmem>>, vector<1x14x14x8xf32>
    tpu.vector_store %arg5[%c0_16, %c0_17, %c0_18, %c0_19], %60 {strides = array<i32>} : memref<1x14x14x8xf32, #tpu.memory_space<vmem>>, vector<1x14x14x8xf32>,
    return
  }
  func.func @transform_0(%arg0: i32, %arg1: i32) -> (i32, i32, i32, i32) {
    %c0_i32 = arith.constant 0 : i32
    %c0_i32_0 = arith.constant 0 : i32
    %c0_i32_1 = arith.constant 0 : i32
    %c0_i32_2 = arith.constant 0 : i32
    return %arg0, %c0_i32, %c0_i32_0, %c0_i32_1 : i32, i32, i32, i32
  }
  func.func @transform_1(%arg0: i32, %arg1: i32) -> (i32, i32) {
    %c0_i32 = arith.constant 0 : i32
    %c0_i32_0 = arith.constant 0 : i32
    %c0_i32_1 = arith.constant 0 : i32
    return %c0_i32, %c0_i32_0 : i32, i32
  }
  func.func @transform_2(%arg0: i32, %arg1: i32) -> (i32, i32) {
    %c0_i32 = arith.constant 0 : i32
    %c0_i32_0 = arith.constant 0 : i32
    %c0_i32_1 = arith.constant 0 : i32
    return %c0_i32, %c0_i32_0 : i32, i32
  }
  func.func @transform_3(%arg0: i32, %arg1: i32) -> (i32, i32, i32, i32) {
    %c0_i32 = arith.constant 0 : i32
    %c0_i32_0 = arith.constant 0 : i32
    %c0_i32_1 = arith.constant 0 : i32
    return %arg0, %arg1, %c0_i32, %c0_i32_0 : i32, i32, i32, i32
  }
}

</mosaic_0001>

<bundles_post_ra>
// kernel: tpu_custom_call.1
= control target key start
LH: loop header
LB: loop body
LE: loop exit
PB: predicated region body
PF: predicated region fallthrough
CT: control target
= control target key end

     0   :  { %s9570_s12 = smov 0   ;;  %s9572_s13 = smov 0   ;;  %s13667_s0 = inlined_call_operand.vmem [shape: bf16[2,16,16,4], index: 0, kind: input, shape index: {}]   ;;  %s13668_s1 = inlined_call_operand.vmem [shape: bf16[36,128], index: 1, kind: input, shape index: {}]   ;;  %s13669_s2 = inlined_call_operand.vmem [shape: f32[1,128], index: 2, kind: input, shape index: {}]   ;;  %s13670_s3 = inlined_call_operand.vmem [shape: f32[2,14,14,8], index: 3, kind: output, shape index: {}]  }
   0x1   :  { %s9574_s14 = smov 0  }
   0x2 LB: > { %s25_s15 = sadd.s32 1, %s9540_s13  ;;  %p8570_p0 = scmp.ge.s32.totalorder %s9544_s14, 1  ;;  %s9544_s14 = sphi %s9574_s14, %s13_s14   ;;  %s9540_s13 = sphi %s9572_s13, %s14865_s13   ;;  %s9536_s12 = sphi %s9570_s12, %s14864_s12  }
   0x3   : > { %p27_p1 = scmp.ge.s32.totalorder %s25_s15, 2  ;;  %p151_p2 = scmp.lt.s32.totalorder %s9544_s14, 3 }
   0x5   : > { %s14867_s15 = smov (%p27_p1, %s25_s15), 0  ;;  %p152_p3 = pnand %p8570_p0, %p151_p2 }
   0x7   : > { %155 = sbr.rel (%p152_p3) target bundleno = 827 (0x33b), region = 32 }
   0xc   : > { %v233_v0 = vld [vmem:[%s13668_s1] sm:$0xf]  ;;  %vm2398_vm0 = vcmask 1041408   ;;  %p180_p4 = scmp.lt.s32.totalorder %s9536_s12, 1  ;;  %v277_v1 = vlaneseq  ;;  %v13671_v2 = vmov 0.0   ;;  %vm9547_vm3 = vmmov 0  }
   0xd   : > { %9000 = vmatprep.subr.bf16.mxu0 %v13671_v2  ;;  %9486 = vmatprep.subr.bf16.mxu1 %v13671_v2  ;;  %v8700_v3 = vcombine.low %v233_v0, %v233_v0  ;;  %vm938_vm1 = vsmask.f32 256  ;;  %vm939_vm2 = vsmask.f32 1284  ;;  %v9548_v4 = vmov 1966171168  }
   0xe   : > { %9002 = vmatprep.mubr.msk.bf16.mxu0 %vm9547_vm3, %v13671_v2  ;;  %9030 = vmatprep.mubr.msk.bf16.mxu1 %vm9547_vm3, %v13671_v2  ;;  %s14869_s12 = smov (!%p180_p4, %s9536_s12), 1  ;;  %v275_v5 = vunpack.c.l.s4 %v9548_v4  ;;  %v9599_v6 = vshrl.u32 %v277_v1, 7  ;;  %vm940_vm4 = vmor %vm938_vm1, %vm939_vm2  ;;  %vm941_vm5 = vsmask.f32 2312  ;;  %vm943_vm6 = vsmask.f32 3340 }
   0xf   : > { %v2357_v7 = vrot.slane %v8700_v3, 2  ;;  %vm942_vm7 = vmor %vm940_vm4, %vm941_vm5  ;;  %vm945_vm8 = vsmask.f32 4368  ;;  %vm947_vm9 = vsmask.f32 5396  ;;  %s8873_s18 = sshll.u32 %s14869_s12, 7 }
  0x10   : > { %14066 = vst [vmem:[#allocation2_spill] sm:$0xff] %v9599_v6  ;;  %v276_v8 = vunpack.c.0.s8 %v275_v5  ;;  %vm944_vm10 = vmor %vm942_vm7, %vm943_vm6  ;;  %vm949_vm11 = vsmask.f32 6424  ;;  %s9606_s21 = scalar_lea.vmem %s13667_s0, %s8873_s18  ;;  %vm951_vm15 = vsmask.f32 7452  ;;  %v9629_v21 = vsel %vm2398_vm0, %v233_v0, 0 }
  0x11   : > { %v2400_v9 = vsel %vm2398_vm0, %v2357_v7, 0  ;;  %vm946_vm12 = vmor %vm944_vm10, %vm945_vm8  ;;  %v8574_v10 = vld.sshfl [vmem:[%s9606_s21] sm:$0x33 pattern:$0x75316420]  ;;  %v14067_v25 = vmov 0 }
  0x12   : > { %9001 = vmatpush3.bf16.msra.mxu0 %v2400_v9  ;;  %9487 = vmatpush3.bf16.msra.mxu1 %v2400_v9  ;;  %v9610_v11 = vsub.s32 %v276_v8, %v9599_v6  ;;  %vm948_vm13 = vmor %vm946_vm12, %vm947_vm9  ;;  %v8575_v12 = vld.sshfl [vmem:[%s9606_s21 + $0x4] sm:$0x33 pattern:$0x75316420]  ;;  %v273_v13 = vcombine.high %v8574_v10, %v8574_v10  ;;  %vm2358_vm2 = vcmask 31744   ;;  %s9488_s7 = smul.u32 224, %s14869_s12 }
  0x13   : > { %9108 = vmatprep.subr.bf16.mxu0 %v13671_v2  ;;  %vm950_vm14 = vmor %vm948_vm13, %vm949_vm11  ;;  %9054 = vmatprep.subr.bf16.mxu1 %v13671_v2  ;;  %v8576_v14 = vld.sshfl [vmem:[%s9606_s21 + $0x8] sm:$0x33 pattern:$0x75316420]  ;;  %v297_v16 = vcombine.high %v8575_v12, %v8575_v12  ;;  %v234_v43 = vld [vmem:[%s13668_s1 + $0x4] sm:$0xf] }
  0x14   : > { %v9617_v15 = vrot.slane %v8574_v10, %v9610_v11  ;;  %v9620_v17 = vrot.slane %v8575_v12, %v9610_v11  ;;  %v9623_v18 = vrot.slane %v273_v13, %v9610_v11  ;;  %v320_v19 = vcombine.high %v8576_v14, %v8576_v14  ;;  %vm9642_vm1 = vmor %vm950_vm14, %vm951_vm15  ;;  %v8590_v48 = vld.sshfl [vmem:[%s9606_s21 + $0x40] sm:$0x33 pattern:$0x75316420]  ;;  %s13459_s10 = scalar_lea.vmem %s13670_s3, %s9488_s7 }
  0x15   : > { %v9626_v20 = vrot.slane %v8576_v14, %v9610_v11  ;;  %v9636_v23 = vrot.slane %v297_v16, %v9610_v11  ;;  %v14068_v25 = vsel %vm9642_vm1, 4294967295, %v14067_v25  ;;  %v8591_v57 = vld.sshfl [vmem:[%s9606_s21 + $0x44] sm:$0x33 pattern:$0x75316420]  ;;  %v649_v60 = vcombine.high %v8590_v48, %v8590_v48 }
  0x16   : > { %v9633_v22 = vcombine.high %v9617_v15, %v9617_v15  ;;  %v9640_v24 = vcombine.high %v9620_v17, %v9620_v17  ;;  %14069 = vst [vmem:[#allocation3_spill] sm:$0xff] %v14068_v25  ;;  %v954_v26 = vshrl.u32 %v9617_v15, 16  ;;  %v9649_v27 = vcombine.high %v9623_v18, %v9623_v18  ;;  %v8592_v59 = vld.sshfl [vmem:[%s9606_s21 + $0x48] sm:$0x33 pattern:$0x75316420] }
  0x17   : > { %v9652_v28 = vrot.slane %v320_v19, %v9610_v11  ;;  %v959_v29 = vshll.u32 %v9623_v18, 16  ;;  %v962_v30 = vshrl.u32 %v9623_v18, 16  ;;  %v9658_v31 = vcombine.high %v9636_v23, %v9636_v23 }
  0x18   : > { %v967_v32 = vshll.u32 %v9633_v22, 16  ;;  %v970_v33 = vshrl.u32 %v9633_v22, 16  ;;  %v983_v34 = vshll.u32 %v9620_v17, 16  ;;  %v975_v36 = vshll.u32 %v9649_v27, 16 }
  0x19   : > { %v961_v35 = vsel %vm9642_vm1, %v954_v26, %v959_v29  ;;  %v978_v37 = vshrl.u32 %v9649_v27, 16  ;;  %v986_v38 = vshrl.u32 %v9620_v17, 16  ;;  %v991_v40 = vshll.u32 %v9636_v23, 16 }
  0x1a   : > { %v969_v39 = vsel %vm9642_vm1, %v962_v30, %v967_v32  ;;  %v994_v41 = vshrl.u32 %v9636_v23, 16  ;;  %v999_v42 = vshll.u32 %v9640_v24, 16  ;;  %v977_v44 = vsel %vm9642_vm1, %v970_v33, %v975_v36 }
  0x1b   : > { %v985_v45 = vsel %vm9642_vm1, %v978_v37, %v983_v34  ;;  %v1002_v46 = vshrl.u32 %v9640_v24, 16  ;;  %v1007_v47 = vshll.u32 %v9658_v31, 16  ;;  %v993_v49 = vsel %vm9642_vm1, %v986_v38, %v991_v40 }
  0x1c   : > { %v1001_v50 = vsel %vm9642_vm1, %v994_v41, %v999_v42  ;;  %v1011_v51 = vshrl.u32 %v9626_v20, 16  ;;  %v1016_v52 = vshll.u32 %v9652_v28, 16  ;;  %v1751_v54 = vcombine.low %v961_v35, %v969_v39 }
  0x1d   : > { %v1009_v53 = vsel %vm9642_vm1, %v1002_v46, %v1007_v47  ;;  %v1752_v55 = vcombine.low %v977_v44, %v985_v45  ;;  %v1753_v56 = vcombine.low %v993_v49, %v1001_v50  ;;  %v9698_v61 = vrot.slane %v8590_v48, %v9610_v11 }
  0x1e   : > { %v9694_v58 = vsel %vm9642_vm1, %v1011_v51, %v1016_v52  ;;  %v3962_v62 = vsel %vm2398_vm0, %v234_v43, 0  ;;  %v1761_v0 = vrot.slane %v1751_v54, %v9610_v11  ;;  %v9706_v4 = vrot.slane %v649_v60, %v9610_v11 }
  0x1f   : > { %14070 = vst [vmem:[#allocation4_spill] sm:$0xff] %v9694_v58  ;;  %14071 = vst [vmem:[#allocation5_spill] sm:$0xff] %v9698_v61  ;;  %v1754_v63 = vcombine.low %v1009_v53, %v9694_v58  ;;  %v1768_v1 = vrot.slane %v1752_v55, %v9610_v11  ;;  %v1775_v3 = vrot.slane %v1753_v56, %v9610_v11  ;;  %v1410_v26 = vshrl.u32 %v9698_v61, 16 }
  0x20   : > { %14072 = vst [vmem:[#allocation6_spill] sm:$0xff] %v9706_v4  ;;  %v9710_v5 = vcombine.high %v9698_v61, %v9698_v61  ;;  %v673_v7 = vcombine.high %v8591_v57, %v8591_v57  ;;  %v9713_v8 = vrot.slane %v8591_v57, %v9610_v11  ;;  %v696_v12 = vcombine.high %v8592_v59, %v8592_v59 }
  0x21   : > { %v1782_v9 = vrot.slane %v1754_v63, %v9610_v11  ;;  %v1783_v10 = vcombine.low %v1761_v0, %v1768_v1  ;;  %v9717_v13 = vrot.slane %v8592_v59, %v9610_v11  ;;  %v9721_v14 = vcombine.high %v9706_v4, %v9706_v4  ;;  %v8577_v59 = vld.sshfl [vmem:[%s9606_s21 + $0xc] sm:$0x33 pattern:$0x75316420] }
  0x22   : > { %14073 = vst [vmem:[#allocation7_spill] sm:$0xff] %v9710_v5  ;;  %14074 = vst [vmem:[#allocation8_spill] sm:$0xff] %v9713_v8  ;;  %v9724_v16 = vrot.slane %v673_v7, %v9610_v11  ;;  %v9728_v19 = vcombine.high %v9713_v8, %v9713_v8  ;;  %v9733_v32 = vrot.slane %v696_v12, %v9610_v11  ;;  %v1415_v33 = vshll.u32 %v9706_v4, 16 }
  0x23   : > { %14075 = vst [vmem:[#allocation9_spill] sm:$0xff] %v9717_v13  ;;  %14076 = vst [vmem:[#allocation10_spill] sm:$0xff] %v9721_v14  ;;  %v1784_v29 = vcombine.low %v1775_v3, %v1782_v9  ;;  %v1791_v30 = vrot.slane %v1783_v10, %v9610_v11  ;;  %v1418_v35 = vshrl.u32 %v9706_v4, 16  ;;  %v1423_v36 = vshll.u32 %v9710_v5, 16 }
  0x24   : > { %14077 = vst [vmem:[#allocation11_spill] sm:$0xff] %v9724_v16  ;;  %14078 = vst [vmem:[#allocation12_spill] sm:$0xff] %v9728_v19  ;;  %v9738_v34 = vcombine.high %v9724_v16, %v9724_v16  ;;  %v1426_v37 = vshrl.u32 %v9710_v5, 16  ;;  %v9746_v39 = vsel %vm9642_vm1, %v1410_v26, %v1415_v33  ;;  %v1431_v40 = vshll.u32 %v9721_v14, 16 }
  0x25   : > { %14079 = vst [vmem:[#allocation13_spill] sm:$0xff] %v9733_v32  ;;  %v1798_v38 = vrot.slane %v1784_v29, %v9610_v11  ;;  %14081 = vst [vmem:[#allocation15_spill] sm:$0xff] %v9746_v39  ;;  %v1434_v41 = vshrl.u32 %v9721_v14, 16  ;;  %v9752_v42 = vsel %vm9642_vm1, %v1418_v35, %v1423_v36  ;;  %v1439_v43 = vshll.u32 %v9713_v8, 16 }
  0x26   : > { %14080 = vst [vmem:[#allocation14_spill] sm:$0xff] %v9738_v34  ;;  %14082 = vst [vmem:[#allocation16_spill] sm:$0xff] %v9752_v42  ;;  %v1442_v44 = vshrl.u32 %v9713_v8, 16  ;;  %v1447_v45 = vshll.u32 %v9724_v16, 16  ;;  %v9759_v47 = vsel %vm9642_vm1, %v1426_v37, %v1431_v40  ;;  %v1450_v48 = vshrl.u32 %v9724_v16, 16 }
  0x27   : > { %v1799_v46 = vcombine.low %v1791_v30, %v1798_v38  ;;  %14083 = vst [vmem:[#allocation17_spill] sm:$0xff] %v9759_v47  ;;  %v1455_v49 = vshll.u32 %v9728_v19, 16  ;;  %v9765_v50 = vsel %vm9642_vm1, %v1434_v41, %v1439_v43  ;;  %v1458_v52 = vshrl.u32 %v9728_v19, 16 }
  0x28   : > { %14084 = vst [vmem:[#allocation18_spill] sm:$0xff] %v9765_v50  ;;  %v9769_v51 = vsel %vm9642_vm1, %v1442_v44, %v1447_v45  ;;  %v1463_v53 = vshll.u32 %v9738_v34, 16  ;;  %v1467_v55 = vshrl.u32 %v9717_v13, 16  ;;  %v1472_v56 = vshll.u32 %v9733_v32, 16 }
  0x29   : > { %14085 = vst [vmem:[#allocation19_spill] sm:$0xff] %v9769_v51  ;;  %9003 = vmatmul.mubr.msk.bf16.vlgmr.msra.gmra.mxu0 %vm2358_vm2, %v1799_v46  ;;  %v9776_v54 = vsel %vm9642_vm1, %v1450_v48, %v1455_v49  ;;  %v2094_v57 = vcombine.low %v9746_v39, %v9752_v42  ;;  %v2095_v63 = vcombine.low %v9759_v47, %v9765_v50  ;;  %v8578_v1 = vld.sshfl [vmem:[%s9606_s21 + $0x10] sm:$0x33 pattern:$0x75316420]  ;;  %v1019_v3 = vshrl.u32 %v9652_v28, 16 }
  0x2a   : > { %14086 = vst [vmem:[#allocation20_spill] sm:$0xff] %v9776_v54  ;;  %v9785_v60 = vsel %vm9642_vm1, %v1458_v52, %v1463_v53  ;;  %v2096_v0 = vcombine.low %v9769_v51, %v9776_v54  ;;  %9109 = vmatpush3.bf16.msra.mxu0 %v3962_v62  ;;  %9006 = vmatprep.mubr.msk.bf16.mxu0 %vm9547_vm3, %v13671_v2 }
  0x2b   : > { %14087 = vst [vmem:[#allocation21_spill] sm:$0xff] %v9785_v60  ;;  %v9797_v7 = vsel %vm9642_vm1, %v1467_v55, %v1472_v56  ;;  %v9800_v9 = vrot.slane %v2094_v57, %v9610_v11  ;;  %v9804_v10 = vcombine.high %v9626_v20, %v9626_v20  ;;  %v9808_v62 = vcombine.high %v9652_v28, %v9652_v28 }
  0x2c   : > { %14088 = vst [vmem:[#allocation22_spill] sm:$0xff] %v9797_v7  ;;  %9216 = vmatprep.subr.bf16.mxu0 %v13671_v2  ;;  %v2097_v12 = vcombine.low %v9785_v60, %v9797_v7  ;;  %v9814_v26 = vrot.slane %v2095_v63, %v9610_v11  ;;  %v9817_v29 = vrot.slane %v2096_v0, %v9610_v11 }
  0x2d   : > { %14089 = vst [vmem:[#allocation23_spill] sm:$0xff] %v9800_v9  ;;  %v344_v30 = vcombine.high %v8577_v59, %v8577_v59  ;;  %v9820_v33 = vrot.slane %v8577_v59, %v9610_v11  ;;  %v367_v35 = vcombine.high %v8578_v1, %v8578_v1  ;;  %v9823_v36 = vrot.slane %v8578_v1, %v9610_v11 }
  0x2e   : > { %14090 = vst [vmem:[#allocation24_spill] sm:$0xff] %v9814_v26  ;;  %14091 = vst [vmem:[#allocation25_spill] sm:$0xff] %v9817_v29  ;;  %v1024_v37 = vshll.u32 %v9804_v10, 16  ;;  %v9827_v38 = vrot.slane %v2097_v12, %v9610_v11  ;;  %v2126_v40 = vcombine.low %v9800_v9, %v9814_v26  ;;  %v1027_v55 = vshrl.u32 %v9804_v10, 16 }
  0x2f   : > { %v9834_v43 = vrot.slane %v344_v30, %v9610_v11  ;;  %v9838_v44 = vcombine.high %v9820_v33, %v9820_v33  ;;  %v9841_v45 = vrot.slane %v367_v35, %v9610_v11  ;;  %v9845_v46 = vcombine.high %v9823_v36, %v9823_v36  ;;  %v8593_v26 = vld.sshfl [vmem:[%s9606_s21 + $0x4c] sm:$0x33 pattern:$0x75316420] }
  0x30   : > { %14092 = vst [vmem:[#allocation26_spill] sm:$0xff] %v9827_v38  ;;  %v9849_v48 = vsel %vm9642_vm1, %v1019_v3, %v1024_v37  ;;  %v2127_v49 = vcombine.low %v9817_v29, %v9827_v38  ;;  %v2134_v52 = vrot.slane %v2126_v40, %v9610_v11  ;;  %v1032_v56 = vshll.u32 %v9808_v62, 16 }
  0x31   : > { %14093 = vst [vmem:[#allocation27_spill] sm:$0xff] %v9849_v48  ;;  %v9856_v53 = vcombine.high %v9834_v43, %v9834_v43  ;;  %v1035_v57 = vshrl.u32 %v9808_v62, 16  ;;  %v1040_v59 = vshll.u32 %v9820_v33, 16  ;;  %v1043_v63 = vshrl.u32 %v9820_v33, 16 }
  0x32   : > { %v2141_v0 = vrot.slane %v2127_v49, %v9610_v11  ;;  %v1048_v1 = vshll.u32 %v9834_v43, 16  ;;  %v1051_v3 = vshrl.u32 %v9834_v43, 16  ;;  %v1056_v12 = vshll.u32 %v9838_v44, 16 }
  0x33   : > { %v9869_v30 = vsel %vm9642_vm1, %v1027_v55, %v1032_v56  ;;  %v9873_v35 = vsel %vm9642_vm1, %v1035_v57, %v1040_v59  ;;  %v1059_v37 = vshrl.u32 %v9838_v44, 16  ;;  %v1064_v40 = vshll.u32 %v9856_v53, 16 }
  0x34   : > { %14094 = vst [vmem:[#allocation28_spill] sm:$0xff] %v9869_v30  ;;  %14095 = vst [vmem:[#allocation29_spill] sm:$0xff] %v9873_v35  ;;  %v2142_v41 = vcombine.low %v2134_v52, %v2141_v0  ;;  %v9879_v49 = vsel %vm9642_vm1, %v1043_v63, %v1048_v1  ;;  %v9883_v2 = vsel %vm9642_vm1, %v1051_v3, %v1056_v12  ;;  %v1068_v55 = vshrl.u32 %v9823_v36, 16 }
  0x35   : > { %14096 = vst [vmem:[#allocation30_spill] sm:$0xff] %v9879_v49  ;;  %14097 = vst [vmem:[#allocation31_spill] sm:$0xff] %v9883_v2  ;;  %v9888_v56 = vsel %vm9642_vm1, %v1059_v37, %v1064_v40  ;;  %v1073_v57 = vshll.u32 %v9841_v45, 16  ;;  %v1076_v59 = vshrl.u32 %v9841_v45, 16  ;;  %v1081_v52 = vshll.u32 %v9845_v46, 16 }
  0x36   : > { %14098 = vst [vmem:[#allocation32_spill] sm:$0xff] %v9888_v56  ;;  %9031 = vmatmul.mubr.msk.bf16.vlgmr.msra.gmra.mxu1 %vm2358_vm2, %v2142_v41  ;;  %v1800_v63 = vcombine.low %v9849_v48, %v9869_v30  ;;  %v1801_v0 = vcombine.low %v9873_v35, %v9879_v49  ;;  %v1802_v1 = vcombine.low %v9883_v2, %v9888_v56  ;;  %v14099_v12 = vmov 0.0  }
  0x37   : > { %9055 = vmatpush3.bf16.msra.mxu1 %v9629_v21  ;;  %9034 = vmatprep.mubr.msk.bf16.mxu1 %vm9547_vm3, %v14099_v12  ;;  %v9907_v41 = vsel %vm9642_vm1, %v1068_v55, %v1073_v57  ;;  %v9911_v37 = vsel %vm9642_vm1, %v1076_v59, %v1081_v52  ;;  %v8594_v59 = vld.sshfl [vmem:[%s9606_s21 + $0x50] sm:$0x33 pattern:$0x75316420]  ;;  %v9939_v9 = vrot.slane %v8593_v26, %v9610_v11  ;;  %v1475_v55 = vshrl.u32 %v9733_v32, 16 }
  0x38   : > { %14100 = vst [vmem:[#allocation33_spill] sm:$0xff] %v9907_v41  ;;  %14101 = vst [vmem:[#allocation34_spill] sm:$0xff] %v9911_v37  ;;  %v1803_v6 = vcombine.low %v9907_v41, %v9911_v37  ;;  %v1810_v3 = vrot.slane %v1800_v63, %v9610_v11  ;;  %v1817_v21 = vrot.slane %v1801_v0, %v9610_v11  ;;  %9162 = vmatprep.subr.bf16.mxu1 %v14099_v12  ;;  %v8579_v41 = vld.sshfl [vmem:[%s9606_s21 + $0x14] sm:$0x33 pattern:$0x75316420] }
  0x39   : > { %v1824_v29 = vrot.slane %v1802_v1, %v9610_v11  ;;  %v9932_v63 = vcombine.high %v9717_v13, %v9717_v13  ;;  %v9936_v0 = vcombine.high %v9733_v32, %v9733_v32  ;;  %v720_v1 = vcombine.high %v8593_v26, %v8593_v26  ;;  %14104 = vst [vmem:[#allocation37_spill] sm:$0xff] %v9939_v9 }
  0x3a   : > { %v9928_v52 = vrot.slane %v1803_v6, %v9610_v11  ;;  %v1832_v40 = vcombine.low %v1810_v3, %v1817_v21  ;;  %v743_v7 = vcombine.high %v8594_v59, %v8594_v59  ;;  %v9945_v3 = vrot.slane %v8594_v59, %v9610_v11 }
  0x3b   : > { %14102 = vst [vmem:[#allocation35_spill] sm:$0xff] %v9932_v63  ;;  %14103 = vst [vmem:[#allocation36_spill] sm:$0xff] %v9936_v0  ;;  %v9948_v21 = vrot.slane %v720_v1, %v9610_v11  ;;  %v9952_v54 = vcombine.high %v9939_v9, %v9939_v9  ;;  %v1480_v26 = vshll.u32 %v9932_v63, 16  ;;  %v1483_v60 = vshrl.u32 %v9932_v63, 16 }
  0x3c   : > { %v1833_v57 = vcombine.low %v1824_v29, %v9928_v52  ;;  %v1840_v6 = vrot.slane %v1832_v40, %v9610_v11  ;;  %14105 = vst [vmem:[#allocation38_spill] sm:$0xff] %v9945_v3  ;;  %v9958_v40 = vrot.slane %v743_v7, %v9610_v11  ;;  %v9962_v59 = vcombine.high %v9945_v3, %v9945_v3 }
  0x3d   : > { %14106 = vst [vmem:[#allocation39_spill] sm:$0xff] %v9948_v21  ;;  %14107 = vst [vmem:[#allocation40_spill] sm:$0xff] %v9952_v54  ;;  %v1488_v1 = vshll.u32 %v9936_v0, 16  ;;  %v9967_v50 = vcombine.high %v9948_v21, %v9948_v21  ;;  %v9971_v51 = vsel %vm9642_vm1, %v1475_v55, %v1480_v26  ;;  %v1491_v42 = vshrl.u32 %v9936_v0, 16 }
  0x3e   : > { %v1847_v29 = vrot.slane %v1833_v57, %v9610_v11  ;;  %14108 = vst [vmem:[#allocation41_spill] sm:$0xff] %v9958_v40  ;;  %14109 = vst [vmem:[#allocation42_spill] sm:$0xff] %v9962_v59  ;;  %v1496_v57 = vshll.u32 %v9939_v9, 16  ;;  %v1499_v39 = vshrl.u32 %v9939_v9, 16  ;;  %v1504_v37 = vshll.u32 %v9948_v21, 16 }
  0x3f   : > { %14110 = vst [vmem:[#allocation43_spill] sm:$0xff] %v9967_v50  ;;  %14111 = vst [vmem:[#allocation44_spill] sm:$0xff] %v9971_v51  ;;  %v9977_v47 = vsel %vm9642_vm1, %v1483_v60, %v1488_v1  ;;  %v1507_v55 = vshrl.u32 %v9948_v21, 16  ;;  %v1512_v26 = vshll.u32 %v9952_v54, 16  ;;  %v1524_v1 = vshrl.u32 %v9945_v3, 16 }
  0x40   : > { %v1848_v7 = vcombine.low %v1840_v6, %v1847_v29  ;;  %14112 = vst [vmem:[#allocation45_spill] sm:$0xff] %v9977_v47  ;;  %v9984_v56 = vsel %vm9642_vm1, %v1491_v42, %v1496_v57  ;;  %v1515_v6 = vshrl.u32 %v9952_v54, 16  ;;  %v9992_v60 = vsel %vm9642_vm1, %v1499_v39, %v1504_v37  ;;  %v8580_v39 = vld.sshfl [vmem:[%s9606_s21 + $0x18] sm:$0x33 pattern:$0x75316420] }
  0x41   : > { %14113 = vst [vmem:[#allocation46_spill] sm:$0xff] %v9984_v56  ;;  %14114 = vst [vmem:[#allocation47_spill] sm:$0xff] %v9992_v60  ;;  %v1520_v29 = vshll.u32 %v9967_v50, 16  ;;  %v1529_v2 = vshll.u32 %v9958_v40, 16  ;;  %v9999_v42 = vsel %vm9642_vm1, %v1507_v55, %v1512_v26  ;;  %v1532_v57 = vshrl.u32 %v9958_v40, 16 }
  0x42   : > { %9007 = vmatmul.mubr.msk.bf16.gmra.mxu0 %vm2358_vm2, %v1848_v7  ;;  %14115 = vst [vmem:[#allocation48_spill] sm:$0xff] %v9999_v42  ;;  %v1537_v49 = vshll.u32 %v9962_v59, 16  ;;  %v2143_v7 = vcombine.low %v9971_v51, %v9977_v47  ;;  %v2144_v55 = vcombine.low %v9984_v56, %v9992_v60  ;;  %v10020_v26 = vcombine.high %v9841_v45, %v9841_v45 }
  0x43   : > { %9010 = vmatprep.mubr.msk.bf16.mxu0 %vm9547_vm3, %v14099_v12  ;;  %v10010_v37 = vsel %vm9642_vm1, %v1515_v6, %v1520_v29  ;;  %v10014_v35 = vsel %vm9642_vm1, %v1524_v1, %v1529_v2  ;;  %v391_v29 = vcombine.high %v8579_v41, %v8579_v41  ;;  %v10037_v60 = vrot.slane %v8579_v41, %v9610_v11 }
  0x44   : > { %14116 = vst [vmem:[#allocation49_spill] sm:$0xff] %v10010_v37  ;;  %14117 = vst [vmem:[#allocation50_spill] sm:$0xff] %v10014_v35  ;;  %v10024_v47 = vsel %vm9642_vm1, %v1532_v57, %v1537_v49  ;;  %v2145_v51 = vcombine.low %v9999_v42, %v10010_v37  ;;  %v10029_v6 = vrot.slane %v2143_v7, %v9610_v11  ;;  %v1084_v57 = vshrl.u32 %v9845_v46, 16 }
  0x45   : > { %14118 = vst [vmem:[#allocation51_spill] sm:$0xff] %v10024_v47  ;;  %v2146_v2 = vcombine.low %v10014_v35, %v10024_v47  ;;  %v10034_v1 = vrot.slane %v2144_v55, %v9610_v11  ;;  %v414_v56 = vcombine.high %v8580_v39, %v8580_v39  ;;  %v10045_v7 = vrot.slane %v391_v29, %v9610_v11 }
  0x46   : > { %14119 = vst [vmem:[#allocation52_spill] sm:$0xff] %v10029_v6  ;;  %v10040_v49 = vrot.slane %v2145_v51, %v9610_v11  ;;  %v10048_v37 = vrot.slane %v8580_v39, %v9610_v11  ;;  %v10057_v55 = vcombine.high %v10037_v60, %v10037_v60  ;;  %v1089_v29 = vshll.u32 %v10020_v26, 16 }
  0x47   : > { %14120 = vst [vmem:[#allocation53_spill] sm:$0xff] %v10034_v1  ;;  %v10051_v35 = vrot.slane %v2146_v2, %v9610_v11  ;;  %v2175_v41 = vcombine.low %v10029_v6, %v10034_v1  ;;  %v10060_v51 = vrot.slane %v414_v56, %v9610_v11  ;;  %v10070_v2 = vcombine.high %v10045_v7, %v10045_v7 }
  0x48   : > { %14121 = vst [vmem:[#allocation54_spill] sm:$0xff] %v10040_v49  ;;  %v10066_v39 = vcombine.high %v10048_v37, %v10048_v37  ;;  %v1092_v1 = vshrl.u32 %v10020_v26, 16  ;;  %v1097_v42 = vshll.u32 %v10037_v60, 16  ;;  %v1100_v30 = vshrl.u32 %v10037_v60, 16 }
  0x49   : > { %14122 = vst [vmem:[#allocation55_spill] sm:$0xff] %v10051_v35  ;;  %14123 = vst [vmem:[#allocation56_spill] sm:$0xff] %v10070_v2  ;;  %v2176_v6 = vcombine.low %v10040_v49, %v10051_v35  ;;  %v2183_v38 = vrot.slane %v2175_v41, %v9610_v11  ;;  %v10078_v56 = vcombine.high %v10060_v51, %v10060_v51  ;;  %v1105_v48 = vshll.u32 %v10045_v7, 16 }
  0x4a   : > { %v10088_v41 = vsel %vm9642_vm1, %v1084_v57, %v1089_v29  ;;  %v1108_v49 = vshrl.u32 %v10045_v7, 16  ;;  %v1113_v34 = vshll.u32 %v10057_v55, 16  ;;  %v10094_v14 = vsel %vm9642_vm1, %v1092_v1, %v1097_v42  ;;  %v8595_v42 = vld.sshfl [vmem:[%s9606_s21 + $0x54] sm:$0x33 pattern:$0x75316420] }
  0x4b   : > { %v2190_v58 = vrot.slane %v2176_v6, %v9610_v11  ;;  %14124 = vst [vmem:[#allocation57_spill] sm:$0xff] %v10088_v41  ;;  %14125 = vst [vmem:[#allocation58_spill] sm:$0xff] %v10094_v14  ;;  %v10098_v5 = vsel %vm9642_vm1, %v1100_v30, %v1105_v48  ;;  %v1116_v50 = vshrl.u32 %v10057_v55, 16  ;;  %v1121_v6 = vshll.u32 %v10070_v2, 16 }
  0x4c   : > { %14126 = vst [vmem:[#allocation59_spill] sm:$0xff] %v10098_v5  ;;  %v10104_v57 = vsel %vm9642_vm1, %v1108_v49, %v1113_v34  ;;  %v1125_v29 = vshrl.u32 %v10048_v37, 16  ;;  %v1130_v21 = vshll.u32 %v10060_v51, 16  ;;  %v1133_v48 = vshrl.u32 %v10060_v51, 16 }
  0x4d   : > { %v2191_v3 = vcombine.low %v2183_v38, %v2190_v58  ;;  %14127 = vst [vmem:[#allocation60_spill] sm:$0xff] %v10104_v57  ;;  %v10111_v1 = vsel %vm9642_vm1, %v1116_v50, %v1121_v6  ;;  %v1138_v30 = vshll.u32 %v10066_v39, 16  ;;  %v1141_v54 = vshrl.u32 %v10066_v39, 16 }
  0x4e   : > { %14128 = vst [vmem:[#allocation61_spill] sm:$0xff] %v10111_v1  ;;  %v10119_v58 = vsel %vm9642_vm1, %v1125_v29, %v1130_v21  ;;  %v1146_v34 = vshll.u32 %v10078_v56, 16  ;;  %v1849_v38 = vcombine.low %v10088_v41, %v10094_v14  ;;  %v1850_v50 = vcombine.low %v10098_v5, %v10104_v57  ;;  %v8596_v49 = vld.sshfl [vmem:[%s9606_s21 + $0x58] sm:$0x33 pattern:$0x75316420] }
  0x4f   : > { %9035 = vmatmul.mubr.msk.bf16.gmra.mxu1 %vm2358_vm2, %v2191_v3  ;;  %14129 = vst [vmem:[#allocation62_spill] sm:$0xff] %v10119_v58  ;;  %v10131_v6 = vsel %vm9642_vm1, %v1133_v48, %v1138_v30  ;;  %v1851_v3 = vcombine.low %v10111_v1, %v10119_v58  ;;  %v10137_v21 = vcombine.high %v9958_v40, %v9958_v40 }
  0x50   : > { %9038 = vmatprep.mubr.msk.bf16.mxu1 %vm9547_vm3, %v14099_v12  ;;  %14130 = vst [vmem:[#allocation63_spill] sm:$0xff] %v10131_v6  ;;  %v767_v29 = vcombine.high %v8595_v42, %v8595_v42  ;;  %v10141_v14 = vsel %vm9642_vm1, %v1141_v54, %v1146_v34  ;;  %v1859_v57 = vrot.slane %v1849_v38, %v9610_v11 }
  0x51   : > { %14131 = vst [vmem:[#allocation64_spill] sm:$0xff] %v10137_v21  ;;  %14132 = vst [vmem:[#allocation65_spill] sm:$0xff] %v10141_v14  ;;  %v1866_v5 = vrot.slane %v1850_v50, %v9610_v11  ;;  %v10146_v41 = vrot.slane %v8595_v42, %v9610_v11  ;;  %v1852_v48 = vcombine.low %v10131_v6, %v10141_v14 }
  0x52   : > { %v1873_v30 = vrot.slane %v1851_v3, %v9610_v11  ;;  %v10152_v58 = vrot.slane %v767_v29, %v9610_v11  ;;  %v790_v1 = vcombine.high %v8596_v49, %v8596_v49  ;;  %v6619_v54 = vcombine.low %v9928_v52, %v1859_v57 }
  0x53   : > { %14133 = vst [vmem:[#allocation66_spill] sm:$0xff] %v10146_v41  ;;  %v1881_v40 = vcombine.low %v1859_v57, %v1866_v5  ;;  %v10157_v34 = vcombine.high %v10146_v41, %v10146_v41  ;;  %v10160_v38 = vrot.slane %v8596_v49, %v9610_v11  ;;  %v10163_v42 = vrot.slane %v1852_v48, %v9610_v11 }
  0x54   : > { %14134 = vst [vmem:[#allocation67_spill] sm:$0xff] %v10152_v58  ;;  %v6620_v50 = vcombine.low %v1866_v5, %v1873_v30  ;;  %v10166_v3 = vrot.slane %v790_v1, %v9610_v11  ;;  %v10170_v29 = vcombine.high %v10152_v58, %v10152_v58  ;;  %v10174_v57 = vrot.slane %v6619_v54, %v9610_v11 }
  0x55   : > { %14135 = vst [vmem:[#allocation68_spill] sm:$0xff] %v10157_v34  ;;  %14136 = vst [vmem:[#allocation69_spill] sm:$0xff] %v10160_v38  ;;  %v1889_v52 = vrot.slane %v1881_v40, %v9610_v11  ;;  %v10178_v49 = vcombine.high %v10160_v38, %v10160_v38  ;;  %v1540_v48 = vshrl.u32 %v9962_v59, 16  ;;  %v1882_v5 = vcombine.low %v1873_v30, %v10163_v42 }
  0x56   : > { %14137 = vst [vmem:[#allocation70_spill] sm:$0xff] %v10163_v42  ;;  %14138 = vst [vmem:[#allocation71_spill] sm:$0xff] %v10166_v3  ;;  %v10183_v1 = vrot.slane %v6620_v50, %v9610_v11  ;;  %v10187_v14 = vcombine.high %v10166_v3, %v10166_v3  ;;  %v1545_v40 = vshll.u32 %v10137_v21, 16  ;;  %v1548_v54 = vshrl.u32 %v10137_v21, 16 }
  0x57   : > { %14139 = vst [vmem:[#allocation72_spill] sm:$0xff] %v10170_v29  ;;  %14140 = vst [vmem:[#allocation73_spill] sm:$0xff] %v10174_v57  ;;  %v1553_v6 = vshll.u32 %v10146_v41, 16  ;;  %v1556_v0 = vshrl.u32 %v10146_v41, 16  ;;  %v1561_v9 = vshll.u32 %v10152_v58, 16  ;;  %v1896_v59 = vrot.slane %v1882_v5, %v9610_v11 }
  0x58   : > { %14141 = vst [vmem:[#allocation74_spill] sm:$0xff] %v10178_v49  ;;  %14142 = vst [vmem:[#allocation75_spill] sm:$0xff] %v10183_v1  ;;  %v10199_v50 = vsel %vm9642_vm1, %v1540_v48, %v1545_v40  ;;  %v1564_v32 = vshrl.u32 %v10152_v58, 16  ;;  %v1569_v5 = vshll.u32 %v10157_v34, 16  ;;  %v1572_v63 = vshrl.u32 %v10157_v34, 16 }
  0x59   : > { %14143 = vst [vmem:[#allocation76_spill] sm:$0xff] %v10187_v14  ;;  %14144 = vst [vmem:[#allocation77_spill] sm:$0xff] %v10199_v50  ;;  %v10204_v21 = vsel %vm9642_vm1, %v1548_v54, %v1553_v6  ;;  %v10208_v41 = vsel %vm9642_vm1, %v1556_v0, %v1561_v9  ;;  %v1897_v30 = vcombine.low %v1889_v52, %v1896_v59  ;;  %v1577_v1 = vshll.u32 %v10170_v29, 16 }
  0x5a   : > { %14145 = vst [vmem:[#allocation78_spill] sm:$0xff] %v10204_v21  ;;  %14146 = vst [vmem:[#allocation79_spill] sm:$0xff] %v10208_v41  ;;  %v1581_v48 = vshrl.u32 %v10160_v38, 16  ;;  %v1586_v40 = vshll.u32 %v10166_v3, 16  ;;  %v10217_v6 = vsel %vm9642_vm1, %v1564_v32, %v1569_v5  ;;  %v1589_v9 = vshrl.u32 %v10166_v3, 16 }
  0x5b   : > { %14147 = vst [vmem:[#allocation80_spill] sm:$0xff] %v10217_v6  ;;  %v1594_v0 = vshll.u32 %v10178_v49, 16  ;;  %v1597_v54 = vshrl.u32 %v10178_v49, 16  ;;  %9011 = vmatmul.mubr.msk.bf16.gmra.mxu0 %vm2358_vm2, %v1897_v30  ;;  %v10225_v59 = vsel %vm9642_vm1, %v1572_v63, %v1577_v1  ;;  %v1602_v57 = vshll.u32 %v10187_v14, 16 }
  0x5c   : > { %14148 = vst [vmem:[#allocation81_spill] sm:$0xff] %v10225_v59  ;;  %v10229_v52 = vsel %vm9642_vm1, %v1581_v48, %v1586_v40  ;;  %v2192_v32 = vcombine.low %v10199_v50, %v10204_v21  ;;  %v8581_v5 = vld.sshfl [vmem:[%s9606_s21 + $0x1c] sm:$0x33 pattern:$0x75316420]  ;;  %v2193_v30 = vcombine.low %v10208_v41, %v10217_v6  ;;  %9014 = vmatprep.mubr.msk.bf16.mxu0 %vm9547_vm3, %v14099_v12  ;;  %v1605_v42 = vshrl.u32 %v10187_v14, 16 }
  0x5d   : > { %14149 = vst [vmem:[#allocation82_spill] sm:$0xff] %v10229_v52  ;;  %v10237_v29 = vsel %vm9642_vm1, %v1589_v9, %v1594_v0  ;;  %v2194_v63 = vcombine.low %v10225_v59, %v10229_v52  ;;  %v8582_v48 = vld.sshfl [vmem:[%s9606_s21 + $0x20] sm:$0x33 pattern:$0x75316420]  ;;  %v10250_v40 = vsel %vm9642_vm1, %v1597_v54, %v1602_v57  ;;  %v438_v0 = vcombine.high %v8581_v5, %v8581_v5 }
  0x5e   : > { %14150 = vst [vmem:[#allocation83_spill] sm:$0xff] %v10237_v29  ;;  %14151 = vst [vmem:[#allocation84_spill] sm:$0xff] %v10250_v40  ;;  %v10253_v9 = vrot.slane %v2192_v32, %v9610_v11  ;;  %v2195_v1 = vcombine.low %v10237_v29, %v10250_v40  ;;  %v10262_v50 = vrot.slane %v2193_v30, %v9610_v11  ;;  %v10270_v54 = vld.sshfl [vmem:[%s9606_s21 + $0x24] sm:$0x33 pattern:$0x75316420] }
  0x5f   : > { %v10265_v47 = vrot.slane %v2194_v63, %v9610_v11  ;;  %v10275_v3 = vrot.slane %v8581_v5, %v9610_v11  ;;  %v461_v59 = vcombine.high %v8582_v48, %v8582_v48  ;;  %v10285_v57 = vrot.slane %v8582_v48, %v9610_v11 }
  0x60   : > { %14152 = vst [vmem:[#allocation85_spill] sm:$0xff] %v10253_v9  ;;  %14153 = vst [vmem:[#allocation86_spill] sm:$0xff] %v10262_v50  ;;  %v10278_v6 = vrot.slane %v2195_v1, %v9610_v11  ;;  %v2224_v30 = vcombine.low %v10253_v9, %v10262_v50  ;;  %v10288_v29 = vrot.slane %v438_v0, %v9610_v11  ;;  %v1149_v50 = vshrl.u32 %v10078_v56, 16 }
  0x61   : > { %14154 = vst [vmem:[#allocation87_spill] sm:$0xff] %v10265_v47  ;;  %v10292_v5 = vcombine.high %v10275_v3, %v10275_v3  ;;  %v10295_v32 = vrot.slane %v461_v59, %v9610_v11  ;;  %v10299_v1 = vrot.slane %v10270_v54, %v9610_v11  ;;  %v10306_v0 = vcombine.high %v10285_v57, %v10285_v57 }
  0x62   : > { %14155 = vst [vmem:[#allocation88_spill] sm:$0xff] %v10278_v6  ;;  %v2225_v63 = vcombine.low %v10265_v47, %v10278_v6  ;;  %v2232_v48 = vrot.slane %v2224_v30, %v9610_v11  ;;  %v10315_v59 = vcombine.high %v10288_v29, %v10288_v29  ;;  %v1154_v35 = vshll.u32 %v10275_v3, 16 }
  0x63   : > { %14156 = vst [vmem:[#allocation89_spill] sm:$0xff] %v10295_v32  ;;  %14157 = vst [vmem:[#allocation90_spill] sm:$0xff] %v10299_v1  ;;  %v10311_v9 = vcombine.high %v10295_v32, %v10295_v32  ;;  %v1157_v47 = vshrl.u32 %v10275_v3, 16  ;;  %v1162_v52 = vshll.u32 %v10288_v29, 16  ;;  %v1165_v41 = vshrl.u32 %v10288_v29, 16 }
  0x64   : > { %14158 = vst [vmem:[#allocation91_spill] sm:$0xff] %v10306_v0  ;;  %14160 = vst [vmem:[#allocation93_spill] sm:$0xff] %v10315_v59  ;;  %v2239_v30 = vrot.slane %v2225_v63, %v9610_v11  ;;  %v1170_v21 = vshll.u32 %v10292_v5, 16  ;;  %v10325_v49 = vsel %vm9642_vm1, %v1149_v50, %v1154_v35  ;;  %v1173_v34 = vshrl.u32 %v10292_v5, 16 }
  0x65   : > { %14159 = vst [vmem:[#allocation92_spill] sm:$0xff] %v10311_v9  ;;  %14161 = vst [vmem:[#allocation94_spill] sm:$0xff] %v10325_v49  ;;  %v1178_v38 = vshll.u32 %v10315_v59, 16  ;;  %v1182_v58 = vshrl.u32 %v10285_v57, 16  ;;  %v10332_v63 = vsel %vm9642_vm1, %v1157_v47, %v1162_v52  ;;  %v1187_v8 = vshll.u32 %v10295_v32, 16 }
  0x66   : > { %v2240_v19 = vcombine.low %v2232_v48, %v2239_v30  ;;  %14162 = vst [vmem:[#allocation95_spill] sm:$0xff] %v10332_v63  ;;  %v10336_v13 = vsel %vm9642_vm1, %v1165_v41, %v1170_v21  ;;  %v8597_v35 = vld.sshfl [vmem:[%s9606_s21 + $0x5c] sm:$0x33 pattern:$0x75316420]  ;;  %v1190_v59 = vshrl.u32 %v10295_v32, 16  ;;  %v2540_v25 = vcombine.low %v9620_v17, %v9636_v23 }
  0x67   : > { %14163 = vst [vmem:[#allocation96_spill] sm:$0xff] %v10336_v13  ;;  %v10342_v50 = vsel %vm9642_vm1, %v1173_v34, %v1178_v38  ;;  %v1195_v48 = vshll.u32 %v10306_v0, 16  ;;  %v1198_v47 = vshrl.u32 %v10306_v0, 16  ;;  %v10350_v41 = vsel %vm9642_vm1, %v1182_v58, %v1187_v8 }
  0x68   : > { %14164 = vst [vmem:[#allocation97_spill] sm:$0xff] %v10342_v50  ;;  %9039 = vmatmul.mubr.msk.bf16.gmra.mxu1 %vm2358_vm2, %v2240_v19  ;;  %14165 = vst [vmem:[#allocation98_spill] sm:$0xff] %v10350_v41  ;;  %v1203_v21 = vshll.u32 %v10311_v9, 16  ;;  %v1206_v52 = vshrl.u32 %v10311_v9, 16  ;;  %v1211_v34 = vshll.u32 %v10299_v1, 16  ;;  %v1898_v19 = vcombine.low %v10325_v49, %v10332_v63 }
  0x69   : > { %9042 = vmatprep.mubr.msk.bf16.mxu1 %vm9547_vm3, %v14099_v12  ;;  %v10359_v38 = vsel %vm9642_vm1, %v1190_v59, %v1195_v48  ;;  %v1899_v8 = vcombine.low %v10336_v13, %v10342_v50  ;;  %v8598_v58 = vld.sshfl [vmem:[%s9606_s21 + $0x60] sm:$0x33 pattern:$0x75316420]  ;;  %v814_v30 = vcombine.high %v8597_v35, %v8597_v35  ;;  %v10380_v63 = vrot.slane %v8597_v35, %v9610_v11 }
  0x6a   : > { %14166 = vst [vmem:[#allocation99_spill] sm:$0xff] %v10359_v38  ;;  %v10368_v16 = vsel %vm9642_vm1, %v1198_v47, %v1203_v21  ;;  %v10372_v61 = vsel %vm9642_vm1, %v1206_v52, %v1211_v34  ;;  %v1900_v59 = vcombine.low %v10350_v41, %v10359_v38  ;;  %v10377_v48 = vld.sshfl [vmem:[%s9606_s21 + $0x64] sm:$0x33 pattern:$0x75316420]  ;;  %v10385_v13 = vrot.slane %v1898_v19, %v9610_v11 }
  0x6b   : > { %14167 = vst [vmem:[#allocation100_spill] sm:$0xff] %v10368_v16  ;;  %14168 = vst [vmem:[#allocation101_spill] sm:$0xff] %v10372_v61  ;;  %v1901_v50 = vcombine.low %v10368_v16, %v10372_v61  ;;  %v10388_v47 = vrot.slane %v1899_v8, %v9610_v11  ;;  %v10391_v21 = vrot.slane %v814_v30, %v9610_v11  ;;  %v1610_v61 = vshll.u32 %v10380_v63, 16 }
  0x6c   : > { %14169 = vst [vmem:[#allocation102_spill] sm:$0xff] %v10380_v63  ;;  %14170 = vst [vmem:[#allocation103_spill] sm:$0xff] %v10385_v13  ;;  %v10394_v52 = vrot.slane %v1900_v59, %v9610_v11  ;;  %v10398_v34 = vcombine.high %v10380_v63, %v10380_v63  ;;  %v837_v35 = vcombine.high %v8598_v58, %v8598_v58 }
  0x6d   : > { %14171 = vst [vmem:[#allocation104_spill] sm:$0xff] %v10388_v47  ;;  %14172 = vst [vmem:[#allocation105_spill] sm:$0xff] %v10391_v21  ;;  %v10401_v38 = vrot.slane %v8598_v58, %v9610_v11  ;;  %v10404_v19 = vrot.slane %v1901_v50, %v9610_v11  ;;  %v1930_v8 = vcombine.low %v10385_v13, %v10388_v47  ;;  %v1613_v47 = vshrl.u32 %v10380_v63, 16 }
  0x6e   : > { %14173 = vst [vmem:[#allocation106_spill] sm:$0xff] %v10394_v52  ;;  %14174 = vst [vmem:[#allocation107_spill] sm:$0xff] %v10398_v34  ;;  %v10412_v59 = vrot.slane %v10377_v48, %v9610_v11  ;;  %v10417_v16 = vrot.slane %v837_v35, %v9610_v11  ;;  %v10425_v58 = vcombine.high %v10391_v21, %v10391_v21  ;;  %v1618_v41 = vshll.u32 %v10391_v21, 16 }
  0x6f   : > { %14175 = vst [vmem:[#allocation108_spill] sm:$0xff] %v10401_v38  ;;  %14176 = vst [vmem:[#allocation109_spill] sm:$0xff] %v10404_v19  ;;  %v10421_v50 = vcombine.high %v10401_v38, %v10401_v38  ;;  %v1931_v30 = vcombine.low %v10394_v52, %v10404_v19  ;;  %v1938_v13 = vrot.slane %v1930_v8, %v9610_v11  ;;  %v1621_v49 = vshrl.u32 %v10391_v21, 16 }
  0x70   : > { %14177 = vst [vmem:[#allocation110_spill] sm:$0xff] %v10412_v59  ;;  %14178 = vst [vmem:[#allocation111_spill] sm:$0xff] %v10417_v16  ;;  %v10434_v35 = vcombine.high %v10417_v16, %v10417_v16  ;;  %v10442_v52 = vsel %vm9642_vm1, %v1605_v42, %v1610_v61  ;;  %v1626_v8 = vshll.u32 %v10398_v34, 16  ;;  %v1629_v14 = vshrl.u32 %v10398_v34, 16 }
  0x71   : > { %14179 = vst [vmem:[#allocation112_spill] sm:$0xff] %v10421_v50  ;;  %14180 = vst [vmem:[#allocation113_spill] sm:$0xff] %v10425_v58  ;;  %v1945_v4 = vrot.slane %v1931_v30, %v9610_v11  ;;  %v10448_v9 = vsel %vm9642_vm1, %v1613_v47, %v1618_v41  ;;  %v1634_v63 = vshll.u32 %v10425_v58, 16  ;;  %v1638_v0 = vshrl.u32 %v10401_v38, 16 }
  0x72   : > { %14181 = vst [vmem:[#allocation114_spill] sm:$0xff] %v10434_v35  ;;  %14182 = vst [vmem:[#allocation115_spill] sm:$0xff] %v10442_v52  ;;  %v1643_v21 = vshll.u32 %v10417_v16, 16  ;;  %v10455_v30 = vsel %vm9642_vm1, %v1621_v49, %v1626_v8  ;;  %v1646_v61 = vshrl.u32 %v10417_v16, 16  ;;  %v1651_v42 = vshll.u32 %v10421_v50, 16 }
  0x73   : > { %14183 = vst [vmem:[#allocation116_spill] sm:$0xff] %v10448_v9  ;;  %v1946_v2 = vcombine.low %v1938_v13, %v1945_v4  ;;  %14184 = vst [vmem:[#allocation117_spill] sm:$0xff] %v10455_v30  ;;  %v10461_v41 = vsel %vm9642_vm1, %v1629_v14, %v1634_v63  ;;  %v1654_v58 = vshrl.u32 %v10421_v50, 16  ;;  %v1659_v4 = vshll.u32 %v10434_v35, 16 }
  0x74   : > { %14185 = vst [vmem:[#allocation118_spill] sm:$0xff] %v10461_v41  ;;  %v10465_v47 = vsel %vm9642_vm1, %v1638_v0, %v1643_v21  ;;  %v10472_v13 = vsel %vm9642_vm1, %v1646_v61, %v1651_v42  ;;  %v1662_v49 = vshrl.u32 %v10434_v35, 16  ;;  %v1667_v8 = vshll.u32 %v10412_v59, 16 }
  0x75   : > { %14186 = vst [vmem:[#allocation119_spill] sm:$0xff] %v10465_v47  ;;  %9015 = vmatmul.mubr.msk.bf16.gmra.mxu0 %vm2358_vm2, %v1946_v2  ;;  %14187 = vst [vmem:[#allocation120_spill] sm:$0xff] %v10472_v13  ;;  %v2241_v14 = vcombine.low %v10442_v52, %v10448_v9  ;;  %v10480_v0 = vsel %vm9642_vm1, %v1654_v58, %v1659_v4  ;;  %v2242_v63 = vcombine.low %v10455_v30, %v10461_v41  ;;  %v8584_v61 = vld.sshfl [vmem:[%s9606_s21 + $0x28] sm:$0x33 pattern:$0x75316420] }
  0x76   : > { %14188 = vst [vmem:[#allocation121_spill] sm:$0xff] %v10480_v0  ;;  %v2243_v2 = vcombine.low %v10465_v47, %v10472_v13  ;;  %9018 = vmatprep.mubr.msk.bf16.mxu0 %vm9547_vm3, %v14099_v12  ;;  %v10493_v42 = vsel %vm9642_vm1, %v1662_v49, %v1667_v8  ;;  %v8585_v8 = vld.sshfl [vmem:[%s9606_s21 + $0x2c] sm:$0x33 pattern:$0x75316420]  ;;  %v485_v4 = vcombine.high %v10270_v54, %v10270_v54 }
  0x77   : > { %14189 = vst [vmem:[#allocation122_spill] sm:$0xff] %v10493_v42  ;;  %v10496_v58 = vrot.slane %v2241_v14, %v9610_v11  ;;  %v2244_v21 = vcombine.low %v10480_v0, %v10493_v42  ;;  %v10505_v52 = vrot.slane %v2242_v63, %v9610_v11  ;;  %v10519_v35 = vcombine.high %v10299_v1, %v10299_v1 }
  0x78   : > { %v10508_v40 = vrot.slane %v2243_v2, %v9610_v11  ;;  %v508_v47 = vcombine.high %v8584_v61, %v8584_v61  ;;  %v10529_v0 = vrot.slane %v8584_v61, %v9610_v11  ;;  %v10532_v14 = vrot.slane %v485_v4, %v9610_v11 }
  0x79   : > { %14190 = vst [vmem:[#allocation123_spill] sm:$0xff] %v10496_v58  ;;  %14191 = vst [vmem:[#allocation124_spill] sm:$0xff] %v10505_v52  ;;  %v10522_v63 = vrot.slane %v2244_v21, %v9610_v11  ;;  %v2273_v2 = vcombine.low %v10496_v58, %v10505_v52  ;;  %v532_v6 = vcombine.high %v8585_v8, %v8585_v8  ;;  %v1214_v61 = vshrl.u32 %v10299_v1, 16 }
  0x7a   : > { %14192 = vst [vmem:[#allocation125_spill] sm:$0xff] %v10508_v40  ;;  %14193 = vst [vmem:[#allocation126_spill] sm:$0xff] %v10519_v35  ;;  %v10535_v54 = vrot.slane %v508_v47, %v9610_v11  ;;  %v10538_v13 = vrot.slane %v8585_v8, %v9610_v11  ;;  %v10545_v49 = vcombine.high %v10529_v0, %v10529_v0  ;;  %v1222_v52 = vshrl.u32 %v10532_v14, 16 }
  0x7b   : > { %14194 = vst [vmem:[#allocation127_spill] sm:$0xff] %v10522_v63  ;;  %14195 = vst [vmem:[#allocation128_spill] sm:$0xff] %v10532_v14  ;;  %v2274_v21 = vcombine.low %v10508_v40, %v10522_v63  ;;  %v2281_v58 = vrot.slane %v2273_v2, %v9610_v11  ;;  %v10553_v47 = vrot.slane %v532_v6, %v9610_v11  ;;  %v1219_v40 = vshll.u32 %v10532_v14, 16 }
  0x7c   : > { %14196 = vst [vmem:[#allocation129_spill] sm:$0xff] %v10535_v54  ;;  %14197 = vst [vmem:[#allocation130_spill] sm:$0xff] %v10538_v13  ;;  %v10550_v4 = vcombine.high %v10535_v54, %v10535_v54  ;;  %v10557_v8 = vcombine.high %v10532_v14, %v10532_v14  ;;  %v1227_v41 = vshll.u32 %v10519_v35, 16  ;;  %v1230_v30 = vshrl.u32 %v10519_v35, 16 }
  0x7d   : > { %14198 = vst [vmem:[#allocation131_spill] sm:$0xff] %v10545_v49  ;;  %14200 = vst [vmem:[#allocation133_spill] sm:$0xff] %v10553_v47  ;;  %v2288_v2 = vrot.slane %v2274_v21, %v9610_v11  ;;  %v10566_v9 = vsel %vm9642_vm1, %v1214_v61, %v1219_v40  ;;  %v1239_v50 = vshrl.u32 %v10529_v0, 16  ;;  %v1244_v38 = vshll.u32 %v10535_v54, 16 }
  0x7e   : > { %14199 = vst [vmem:[#allocation132_spill] sm:$0xff] %v10550_v4  ;;  %14201 = vst [vmem:[#allocation134_spill] sm:$0xff] %v10557_v8  ;;  %v1235_v6 = vshll.u32 %v10557_v8, 16  ;;  %v10573_v21 = vsel %vm9642_vm1, %v1222_v52, %v1227_v41  ;;  %v1247_v34 = vshrl.u32 %v10535_v54, 16  ;;  %v1252_v1 = vshll.u32 %v10545_v49, 16 }
  0x7f   : > { %14202 = vst [vmem:[#allocation135_spill] sm:$0xff] %v10566_v9  ;;  %v2289_v16 = vcombine.low %v2281_v58, %v2288_v2  ;;  %14203 = vst [vmem:[#allocation136_spill] sm:$0xff] %v10573_v21  ;;  %v10583_v40 = vsel %vm9642_vm1, %v1239_v50, %v1244_v38  ;;  %v1255_v61 = vshrl.u32 %v10545_v49, 16  ;;  %v1260_v58 = vshll.u32 %v10550_v4, 16 }
  0x80   : > { %v10579_v35 = vsel %vm9642_vm1, %v1230_v30, %v1235_v6  ;;  %14205 = vst [vmem:[#allocation138_spill] sm:$0xff] %v10583_v40  ;;  %v8600_v2 = vld.sshfl [vmem:[%s9606_s21 + $0x68] sm:$0x33 pattern:$0x75316420]  ;;  %v10591_v52 = vsel %vm9642_vm1, %v1247_v34, %v1252_v1  ;;  %v1263_v41 = vshrl.u32 %v10550_v4, 16 }
  0x81   : > { %14204 = vst [vmem:[#allocation137_spill] sm:$0xff] %v10579_v35  ;;  %9043 = vmatmul.mubr.msk.bf16.gmra.mxu1 %vm2358_vm2, %v2289_v16  ;;  %14206 = vst [vmem:[#allocation139_spill] sm:$0xff] %v10591_v52  ;;  %v1268_v30 = vshll.u32 %v10538_v13, 16  ;;  %v1271_v6 = vshrl.u32 %v10538_v13, 16  ;;  %v10600_v38 = vsel %vm9642_vm1, %v1255_v61, %v1260_v58  ;;  %v1276_v50 = vshll.u32 %v10553_v47, 16 }
  0x82   : > { %9046 = vmatprep.mubr.msk.bf16.mxu1 %vm9547_vm3, %v14099_v12  ;;  %14207 = vst [vmem:[#allocation140_spill] sm:$0xff] %v10600_v38  ;;  %v1947_v16 = vcombine.low %v10566_v9, %v10573_v21  ;;  %v1948_v1 = vcombine.low %v10579_v35, %v10583_v40  ;;  %v1949_v8 = vcombine.low %v10591_v52, %v10600_v38  ;;  %v8601_v4 = vld.sshfl [vmem:[%s9606_s21 + $0x6c] sm:$0x33 pattern:$0x75316420] }
  0x83   : > { %v10609_v34 = vsel %vm9642_vm1, %v1263_v41, %v1268_v30  ;;  %v861_v61 = vcombine.high %v10377_v48, %v10377_v48  ;;  %v10618_v58 = vcombine.high %v10412_v59, %v10412_v59  ;;  %v10622_v21 = vsel %vm9642_vm1, %v1271_v6, %v1276_v50 }
  0x84   : > { %14208 = vst [vmem:[#allocation141_spill] sm:$0xff] %v10609_v34  ;;  %14210 = vst [vmem:[#allocation143_spill] sm:$0xff] %v10622_v21  ;;  %v10625_v40 = vrot.slane %v1947_v16, %v9610_v11  ;;  %v10628_v41 = vrot.slane %v1948_v1, %v9610_v11  ;;  %v884_v30 = vcombine.high %v8600_v2, %v8600_v2 }
  0x85   : > { %14209 = vst [vmem:[#allocation142_spill] sm:$0xff] %v10618_v58  ;;  %v1950_v38 = vcombine.low %v10609_v34, %v10622_v21  ;;  %v10633_v48 = vrot.slane %v1949_v8, %v9610_v11  ;;  %v10636_v52 = vrot.slane %v861_v61, %v9610_v11  ;;  %v10639_v35 = vrot.slane %v8600_v2, %v9610_v11 }
  0x86   : > { %14211 = vst [vmem:[#allocation144_spill] sm:$0xff] %v10625_v40  ;;  %14212 = vst [vmem:[#allocation145_spill] sm:$0xff] %v10628_v41  ;;  %v1979_v6 = vcombine.low %v10625_v40, %v10628_v41  ;;  %v10646_v16 = vrot.slane %v884_v30, %v9610_v11  ;;  %v908_v1 = vcombine.high %v8601_v4, %v8601_v4  ;;  %v1670_v41 = vshrl.u32 %v10412_v59, 16 }
  0x87   : > { %14213 = vst [vmem:[#allocation146_spill] sm:$0xff] %v10633_v48  ;;  %14214 = vst [vmem:[#allocation147_spill] sm:$0xff] %v10636_v52  ;;  %v10649_v21 = vrot.slane %v1950_v38, %v9610_v11  ;;  %v10655_v2 = vcombine.high %v10639_v35, %v10639_v35  ;;  %v10658_v61 = vrot.slane %v8601_v4, %v9610_v11  ;;  %v1675_v4 = vshll.u32 %v10636_v52, 16 }
  0x88   : > { %14215 = vst [vmem:[#allocation148_spill] sm:$0xff] %v10639_v35  ;;  %14216 = vst [vmem:[#allocation149_spill] sm:$0xff] %v10646_v16  ;;  %v1987_v34 = vrot.slane %v1979_v6, %v9610_v11  ;;  %v10663_v30 = vcombine.high %v10646_v16, %v10646_v16  ;;  %v10666_v50 = vrot.slane %v908_v1, %v9610_v11  ;;  %v1678_v6 = vshrl.u32 %v10636_v52, 16 }
  0x89   : > { %14217 = vst [vmem:[#allocation150_spill] sm:$0xff] %v10649_v21  ;;  %14218 = vst [vmem:[#allocation151_spill] sm:$0xff] %v10655_v2  ;;  %v10670_v38 = vcombine.high %v10636_v52, %v10636_v52  ;;  %v1980_v8 = vcombine.low %v10633_v48, %v10649_v21  ;;  %v1683_v40 = vshll.u32 %v10618_v58, 16  ;;  %v1686_v19 = vshrl.u32 %v10618_v58, 16 }
  0x8a   : > { %14219 = vst [vmem:[#allocation152_spill] sm:$0xff] %v10658_v61  ;;  %14220 = vst [vmem:[#allocation153_spill] sm:$0xff] %v10663_v30  ;;  %v1695_v9 = vshrl.u32 %v10639_v35, 16  ;;  %v10684_v49 = vsel %vm9642_vm1, %v1670_v41, %v1675_v4  ;;  %v1700_v48 = vshll.u32 %v10646_v16, 16  ;;  %v1703_v59 = vshrl.u32 %v10646_v16, 16 }
  0x8b   : > { %14221 = vst [vmem:[#allocation154_spill] sm:$0xff] %v10666_v50  ;;  %14222 = vst [vmem:[#allocation155_spill] sm:$0xff] %v10670_v38  ;;  %v1691_v1 = vshll.u32 %v10670_v38, 16  ;;  %v1994_v54 = vrot.slane %v1980_v8, %v9610_v11  ;;  %v10690_v52 = vsel %vm9642_vm1, %v1678_v6, %v1683_v40  ;;  %v1708_v38 = vshll.u32 %v10655_v2, 16 }
  0x8c   : > { %14223 = vst [vmem:[#allocation156_spill] sm:$0xff] %v10684_v49  ;;  %14224 = vst [vmem:[#allocation157_spill] sm:$0xff] %v10690_v52  ;;  %v1711_v8 = vshrl.u32 %v10655_v2, 16  ;;  %v10700_v41 = vsel %vm9642_vm1, %v1695_v9, %v1700_v48  ;;  %v1716_v4 = vshll.u32 %v10663_v30, 16  ;;  %v1719_v16 = vshrl.u32 %v10663_v30, 16 }
  0x8d   : > { %v10694_v58 = vsel %vm9642_vm1, %v1686_v19, %v1691_v1  ;;  %v1995_v35 = vcombine.low %v1987_v34, %v1994_v54  ;;  %14226 = vst [vmem:[#allocation159_spill] sm:$0xff] %v10700_v41  ;;  %v10706_v40 = vsel %vm9642_vm1, %v1703_v59, %v1708_v38  ;;  %v1724_v19 = vshll.u32 %v10658_v61, 16  ;;  %v8586_v48 = vld.sshfl [vmem:[%s9606_s21 + $0x30] sm:$0x33 pattern:$0x75316420] }
  0x8e   : > { %14225 = vst [vmem:[#allocation158_spill] sm:$0xff] %v10694_v58  ;;  %14227 = vst [vmem:[#allocation160_spill] sm:$0xff] %v10706_v40  ;;  %v1727_v6 = vshrl.u32 %v10658_v61, 16  ;;  %v1732_v1 = vshll.u32 %v10666_v50, 16  ;;  %v10714_v9 = vsel %vm9642_vm1, %v1711_v8, %v1716_v4  ;;  %v2290_v54 = vcombine.low %v10684_v49, %v10690_v52 }
  0x8f   : > { %9019 = vmatmul.mubr.msk.bf16.gmra.mxu0 %vm2358_vm2, %v1995_v35  ;;  %14228 = vst [vmem:[#allocation161_spill] sm:$0xff] %v10714_v9  ;;  %v2291_v59 = vcombine.low %v10694_v58, %v10700_v41  ;;  %v10725_v38 = vsel %vm9642_vm1, %v1719_v16, %v1724_v19  ;;  %v2292_v8 = vcombine.low %v10706_v40, %v10714_v9 }
  0x90   : > { %14229 = vst [vmem:[#allocation162_spill] sm:$0xff] %v10725_v38  ;;  %v10729_v35 = vsel %vm9642_vm1, %v1727_v6, %v1732_v1  ;;  %9022 = vmatprep.mubr.msk.bf16.mxu0 %vm9547_vm3, %v14099_v12  ;;  %v10740_v49 = vrot.slane %v2290_v54, %v9610_v11  ;;  %v8587_v6 = vld.sshfl [vmem:[%s9606_s21 + $0x34] sm:$0x33 pattern:$0x75316420]  ;;  %v10755_v58 = vcombine.high %v10538_v13, %v10538_v13 }
  0x91   : > { %14230 = vst [vmem:[#allocation163_spill] sm:$0xff] %v10729_v35  ;;  %v2293_v34 = vcombine.low %v10725_v38, %v10729_v35  ;;  %v10743_v16 = vrot.slane %v2291_v59, %v9610_v11  ;;  %v10749_v1 = vrot.slane %v2292_v8, %v9610_v11  ;;  %v555_v52 = vcombine.high %v8586_v48, %v8586_v48 }
  0x92   : > { %14231 = vst [vmem:[#allocation164_spill] sm:$0xff] %v10740_v49  ;;  %14234 = vst [vmem:[#allocation167_spill] sm:$0xff] %v10755_v58  ;;  %v10765_v8 = vrot.slane %v8586_v48, %v9610_v11  ;;  %v579_v9 = vcombine.high %v8587_v6, %v8587_v6  ;;  %v10773_v40 = vrot.slane %v8587_v6, %v9610_v11 }
  0x93   : > { %14232 = vst [vmem:[#allocation165_spill] sm:$0xff] %v10743_v16  ;;  %14233 = vst [vmem:[#allocation166_spill] sm:$0xff] %v10749_v1  ;;  %v10758_v54 = vrot.slane %v2293_v34, %v9610_v11  ;;  %v2322_v59 = vcombine.low %v10740_v49, %v10743_v16  ;;  %v10770_v38 = vrot.slane %v555_v52, %v9610_v11  ;;  %v1284_v16 = vshll.u32 %v10755_v58, 16 }
  0x94   : > { %14236 = vst [vmem:[#allocation169_spill] sm:$0xff] %v10765_v8  ;;  %v10780_v19 = vcombine.high %v10765_v8, %v10765_v8  ;;  %v10784_v48 = vcombine.high %v10553_v47, %v10553_v47  ;;  %v10791_v6 = vrot.slane %v579_v9, %v9610_v11  ;;  %v10795_v4 = vcombine.high %v10773_v40, %v10773_v40 }
  0x95   : > { %14235 = vst [vmem:[#allocation168_spill] sm:$0xff] %v10758_v54  ;;  %v2323_v34 = vcombine.low %v10749_v1, %v10758_v54  ;;  %v2330_v41 = vrot.slane %v2322_v59, %v9610_v11  ;;  %v10788_v52 = vcombine.high %v10770_v38, %v10770_v38  ;;  %v1279_v59 = vshrl.u32 %v10553_v47, 16 }
  0x96   : > { %14237 = vst [vmem:[#allocation170_spill] sm:$0xff] %v10780_v19  ;;  %14238 = vst [vmem:[#allocation171_spill] sm:$0xff] %v10784_v48  ;;  %v1287_v49 = vshrl.u32 %v10755_v58, 16  ;;  %v1292_v63 = vshll.u32 %v10784_v48, 16  ;;  %v1296_v42 = vshrl.u32 %v10765_v8, 16  ;;  %v1301_v30 = vshll.u32 %v10770_v38, 16 }
  0x97   : > { %14239 = vst [vmem:[#allocation172_spill] sm:$0xff] %v10788_v52  ;;  %v2337_v1 = vrot.slane %v2323_v34, %v9610_v11  ;;  %v1304_v9 = vshrl.u32 %v10770_v38, 16  ;;  %v1309_v2 = vshll.u32 %v10780_v19, 16  ;;  %v10808_v47 = vsel %vm9642_vm1, %v1279_v59, %v1284_v16 }
  0x98   : > { %14240 = vst [vmem:[#allocation173_spill] sm:$0xff] %v10808_v47  ;;  %v10812_v34 = vsel %vm9642_vm1, %v1287_v49, %v1292_v63  ;;  %v1312_v58 = vshrl.u32 %v10780_v19, 16  ;;  %v10817_v48 = vsel %vm9642_vm1, %v1296_v42, %v1301_v30  ;;  %v1325_v16 = vshll.u32 %v10773_v40, 16 }
  0x99   : > { %v2338_v13 = vcombine.low %v2330_v41, %v2337_v1  ;;  %14241 = vst [vmem:[#allocation174_spill] sm:$0xff] %v10812_v34  ;;  %14242 = vst [vmem:[#allocation175_spill] sm:$0xff] %v10817_v48  ;;  %v10821_v8 = vsel %vm9642_vm1, %v1304_v9, %v1309_v2  ;;  %v1317_v41 = vshll.u32 %v10788_v52, 16  ;;  %v1320_v1 = vshrl.u32 %v10788_v52, 16 }
  0x9a   : > { %14243 = vst [vmem:[#allocation176_spill] sm:$0xff] %v10821_v8  ;;  %v1328_v49 = vshrl.u32 %v10773_v40, 16  ;;  %v1333_v63 = vshll.u32 %v10791_v6, 16  ;;  %v1336_v42 = vshrl.u32 %v10791_v6, 16  ;;  %v1341_v30 = vshll.u32 %v10795_v4, 16 }
  0x9b   : > { %9047 = vmatmul.mubr.msk.bf16.gmra.mxu1 %vm2358_vm2, %v2338_v13  ;;  %v10834_v2 = vsel %vm9642_vm1, %v1312_v58, %v1317_v41  ;;  %v1996_v13 = vcombine.low %v10808_v47, %v10812_v34  ;;  %v1997_v59 = vcombine.low %v10817_v48, %v10821_v8  ;;  %v10843_v9 = vsel %vm9642_vm1, %v1320_v1, %v1325_v16 }
  0x9c   : > { %9050 = vmatprep.mubr.msk.bf16.mxu1 %vm9547_vm3, %v14099_v12  ;;  %14244 = vst [vmem:[#allocation177_spill] sm:$0xff] %v10834_v2  ;;  %14245 = vst [vmem:[#allocation178_spill] sm:$0xff] %v10843_v9  ;;  %v10847_v52 = vsel %vm9642_vm1, %v1328_v49, %v1333_v63  ;;  %v10851_v58 = vcombine.high %v10658_v61, %v10658_v61  ;;  %v10855_v41 = vcombine.high %v10666_v50, %v10666_v50  ;;  %v8761_v63 = vld.sshfl [vmem:[%s9606_s21 + $0x70] sm:$0x33 pattern:$0x75316420] }
  0x9d   : > { %14246 = vst [vmem:[#allocation179_spill] sm:$0xff] %v10847_v52  ;;  %v10859_v34 = vsel %vm9642_vm1, %v1336_v42, %v1341_v30  ;;  %v1998_v1 = vcombine.low %v10834_v2, %v10843_v9  ;;  %v10864_v16 = vrot.slane %v1996_v13, %v9610_v11  ;;  %v10867_v49 = vrot.slane %v1997_v59, %v9610_v11 }
  0x9e   : > { %14247 = vst [vmem:[#allocation180_spill] sm:$0xff] %v10851_v58  ;;  %14248 = vst [vmem:[#allocation181_spill] sm:$0xff] %v10855_v41  ;;  %v1999_v8 = vcombine.low %v10847_v52, %v10859_v34  ;;  %v1735_v48 = vshrl.u32 %v10666_v50, 16  ;;  %v1740_v47 = vshll.u32 %v10851_v58, 16  ;;  %v1743_v42 = vshrl.u32 %v10851_v58, 16 }
  0x9f   : > { %14249 = vst [vmem:[#allocation182_spill] sm:$0xff] %v10859_v34  ;;  %14250 = vst [vmem:[#allocation183_spill] sm:$0xff] %v10864_v16  ;;  %v10876_v30 = vrot.slane %v1998_v1, %v9610_v11  ;;  %v2028_v13 = vcombine.low %v10864_v16, %v10867_v49  ;;  %v1748_v9 = vshll.u32 %v10855_v41, 16  ;;  %v4134_v2 = vcombine.high %v8761_v63, %v8761_v63 }
  0xa0   : > { %14251 = vst [vmem:[#allocation184_spill] sm:$0xff] %v10867_v49  ;;  %v10884_v34 = vrot.slane %v1999_v8, %v9610_v11  ;;  %v10888_v52 = vsel %vm9642_vm1, %v1735_v48, %v1740_v47  ;;  %v10891_v1 = vrot.slane %v8761_v63, %v9610_v11 }
  0xa1   : > { %14252 = vst [vmem:[#allocation185_spill] sm:$0xff] %v10876_v30  ;;  %14254 = vst [vmem:[#allocation187_spill] sm:$0xff] %v10888_v52  ;;  %v10897_v58 = vsel %vm9642_vm1, %v1743_v42, %v1748_v9  ;;  %v2036_v8 = vrot.slane %v2028_v13, %v9610_v11  ;;  %v10905_v48 = vrot.slane %v4134_v2, %v9610_v11  ;;  %v8588_v42 = vld.sshfl [vmem:[%s9606_s21 + $0x38] sm:$0x33 pattern:$0x75316420] }
  0xa2   : > { %14253 = vst [vmem:[#allocation186_spill] sm:$0xff] %v10884_v34  ;;  %14255 = vst [vmem:[#allocation188_spill] sm:$0xff] %v10891_v1  ;;  %v2029_v59 = vcombine.low %v10876_v30, %v10884_v34  ;;  %v2339_v47 = vcombine.low %v10888_v52, %v10897_v58  ;;  %v10909_v63 = vcombine.high %v10891_v1, %v10891_v1  ;;  %v4730_v50 = vshrl.u32 %v10891_v1, 16 }
  0xa3   : > { %14256 = vst [vmem:[#allocation189_spill] sm:$0xff] %v10897_v58  ;;  %14257 = vst [vmem:[#allocation190_spill] sm:$0xff] %v10905_v48  ;;  %v4735_v30 = vshll.u32 %v10905_v48, 16  ;;  %v4738_v2 = vshrl.u32 %v10905_v48, 16  ;;  %v602_v1 = vcombine.high %v8588_v42, %v8588_v42 }
  0xa4   : > { %14258 = vst [vmem:[#allocation191_spill] sm:$0xff] %v10909_v63  ;;  %v2043_v41 = vrot.slane %v2029_v59, %v9610_v11  ;;  %v10917_v13 = vrot.slane %v2339_v47, %v9610_v11  ;;  %v4743_v49 = vshll.u32 %v10909_v63, 16  ;;  %v10940_v63 = vrot.slane %v8588_v42, %v9610_v11 }
  0xa5   : > { %v10926_v9 = vsel %vm9642_vm1, %v4730_v50, %v4735_v30  ;;  %v9521_v50 = vld [vmem:[%s13668_s1 + $0x4] sm:$0xf]  ;;  %v1344_v30 = vshrl.u32 %v10795_v4, 16  ;;  %v10962_v47 = vcombine.high %v10791_v6, %v10791_v6 }
  0xa6   : > { %14259 = vst [vmem:[#allocation192_spill] sm:$0xff] %v10917_v13  ;;  %v2044_v16 = vcombine.low %v2036_v8, %v2043_v41  ;;  %v2353_v21 = vrot.slane %v10917_v13, %v9610_v11  ;;  %14260 = vst [vmem:[#allocation193_spill] sm:$0xff] %v10926_v9  ;;  %v10930_v59 = vsel %vm9642_vm1, %v4738_v2, %v4743_v49  ;;  %v8589_v8 = vld.sshfl [vmem:[%s9606_s21 + $0x3c] sm:$0x33 pattern:$0x75316420] }
  0xa7   : > { %14261 = vst [vmem:[#allocation194_spill] sm:$0xff] %v10930_v59  ;;  %14262 = vst [vmem:[#allocation195_spill] sm:$0xff] %v10940_v63  ;;  %v8763_v49 = vcombine.low %v9521_v50, %v9521_v50  ;;  %v626_v42 = vcombine.high %v8589_v8, %v8589_v8  ;;  %v10958_v2 = vrot.slane %v8589_v8, %v9610_v11  ;;  %v1353_v50 = vshrl.u32 %v10940_v63, 16 }
  0xa8   : > { %9023 = vmatmul.mubr.msk.bf16.gmra.mxu0 %vm2358_vm2, %v2044_v16  ;;  %9051 = vmatmul.mubr.msk.bf16.gmra.mxu1 %vm2358_vm2, %v2353_v21  ;;  %v10950_v21 = vrot.slane %v602_v1, %v9610_v11  ;;  %v10954_v16 = vcombine.high %v10940_v63, %v10940_v63  ;;  %14265 = vst [vmem:[#allocation198_spill] sm:$0xff] %v10962_v47  ;;  %v1349_v48 = vshll.u32 %v10962_v47, 16 }
  0xa9   : > { %9026 = vmatprep.mubr.msk.bf16.mxu0 %vm9547_vm3, %v14099_v12  ;;  %9056 = vmatprep.mubr.msk.bf16.mxu1 %vm9547_vm3, %v14099_v12  ;;  %14264 = vst [vmem:[#allocation197_spill] sm:$0xff] %v10958_v2  ;;  %v10973_v59 = vrot.slane %v626_v42, %v9610_v11  ;;  %v10977_v8 = vcombine.high %v10958_v2, %v10958_v2  ;;  %v1382_v19 = vshll.u32 %v10958_v2, 16 }
  0xaa   : > { %14263 = vst [vmem:[#allocation196_spill] sm:$0xff] %v10950_v21  ;;  %v10967_v1 = vcombine.high %v10950_v21, %v10950_v21  ;;  %v1358_v41 = vshll.u32 %v10950_v21, 16  ;;  %v1361_v13 = vshrl.u32 %v10950_v21, 16  ;;  %v1366_v54 = vshll.u32 %v10954_v16, 16 }
  0xab   : > { %14267 = vst [vmem:[#allocation200_spill] sm:$0xff] %v10973_v59  ;;  %v1369_v52 = vshrl.u32 %v10954_v16, 16  ;;  %v10993_v61 = vcombine.high %v10973_v59, %v10973_v59  ;;  %v10997_v47 = vsel %vm9642_vm1, %v1344_v30, %v1349_v48  ;;  %v1401_v48 = vshrl.u32 %v10977_v8, 16 }
  0xac   : > { %14266 = vst [vmem:[#allocation199_spill] sm:$0xff] %v10967_v1  ;;  %v10983_v35 = vsel %vm9642_vm1, %v1353_v50, %v1358_v41  ;;  %v10987_v58 = vsel %vm9642_vm1, %v1361_v13, %v1366_v54  ;;  %v1374_v9 = vshll.u32 %v10967_v1, 16  ;;  %v1377_v42 = vshrl.u32 %v10967_v1, 16  ;;  %14271 = vst [vmem:[#allocation204_spill] sm:$0xff] %v10997_v47 }
  0xad   : > { %14268 = vst [vmem:[#allocation201_spill] sm:$0xff] %v10983_v35  ;;  %14269 = vst [vmem:[#allocation202_spill] sm:$0xff] %v10987_v58  ;;  %v1385_v41 = vshrl.u32 %v10958_v2, 16  ;;  %v1390_v13 = vshll.u32 %v10973_v59, 16  ;;  %v1393_v50 = vshrl.u32 %v10973_v59, 16  ;;  %v1398_v1 = vshll.u32 %v10977_v8, 16 }
  0xae   : > { %14270 = vst [vmem:[#allocation203_spill] sm:$0xff] %v10993_v61  ;;  %v11003_v54 = vsel %vm9642_vm1, %v1369_v52, %v1374_v9  ;;  %v11010_v21 = vsel %vm9642_vm1, %v1377_v42, %v1382_v19  ;;  %v1406_v30 = vshll.u32 %v10993_v61, 16  ;;  %v2045_v2 = vcombine.low %v10997_v47, %v10983_v35 }
  0xaf   : > { %14272 = vst [vmem:[#allocation205_spill] sm:$0xff] %v11003_v54  ;;  %14273 = vst [vmem:[#allocation206_spill] sm:$0xff] %v11010_v21  ;;  %v11018_v52 = vsel %vm9642_vm1, %v1385_v41, %v1390_v13  ;;  %v11022_v9 = vsel %vm9642_vm1, %v1393_v50, %v1398_v1  ;;  %v2046_v59 = vcombine.low %v10987_v58, %v11003_v54  ;;  %v4524_v35 = vrot.slane %v8763_v49, 2  ;;  %v14358_v58 = vld [vmem:[#allocation38_spill] sm:$0xff] }
  0xb0   : > { %14274 = vst [vmem:[#allocation207_spill] sm:$0xff] %v11018_v52  ;;  %14275 = vst [vmem:[#allocation208_spill] sm:$0xff] %v11022_v9  ;;  %v2538_v19 = vcombine.low %v9617_v15, %v9623_v18  ;;  %v11030_v42 = vsel %vm9642_vm1, %v1401_v48, %v1406_v30  ;;  %v2047_v61 = vcombine.low %v11010_v21, %v11018_v52 }
  0xb1   : > { %14276 = vst [vmem:[#allocation209_spill] sm:$0xff] %v11030_v42  ;;  %v11035_v41 = vrot.slane %v2045_v2, %v9610_v11  ;;  %v8714_v1 = vcombine.high %v9617_v15, %v9623_v18  ;;  %v2048_v13 = vcombine.low %v11022_v9, %v11030_v42  ;;  %v11042_v50 = vrot.slane %v2046_v59, %v9610_v11 }
  0xb2   : > { %v2541_v48 = vcombine.low %v9640_v24, %v9626_v20  ;;  %v11049_v30 = vrot.slane %v2047_v61, %v9610_v11  ;;  %v2548_v15 = vrot.slane %v2538_v19, %v9610_v11  ;;  %v2562_v9 = vrot.slane %v2540_v25, %v9610_v11 }
  0xb3   : > { %14277 = vst [vmem:[#allocation210_spill] sm:$0xff] %v11035_v41  ;;  %14278 = vst [vmem:[#allocation211_spill] sm:$0xff] %v11042_v50  ;;  %v2555_v52 = vrot.slane %v8714_v1, %v9610_v11  ;;  %v11056_v42 = vrot.slane %v2048_v13, %v9610_v11  ;;  %v2077_v59 = vcombine.low %v11035_v41, %v11042_v50 }
  0xb4   : > { %14279 = vst [vmem:[#allocation212_spill] sm:$0xff] %v11049_v30  ;;  %v2569_v54 = vrot.slane %v2541_v48, %v9610_v11  ;;  %v2587_v19 = vcombine.low %v9652_v28, %v9804_v10  ;;  %v3322_v1 = vcombine.low %v9658_v31, %v9652_v28  ;;  %v4565_v48 = vsel %vm2398_vm0, %v4524_v35, 0 }
  0xb5   : > { %14280 = vst [vmem:[#allocation213_spill] sm:$0xff] %v11056_v42  ;;  %v2570_v21 = vcombine.low %v2548_v15, %v2555_v52  ;;  %v2078_v13 = vcombine.low %v11049_v30, %v11056_v42  ;;  %v2085_v2 = vrot.slane %v2077_v59, %v9610_v11  ;;  %v2588_v52 = vcombine.low %v9808_v62, %v9820_v33  ;;  %v14309_v30 = vld [vmem:[#allocation91_spill] sm:$0xff] }
  0xb6   : > { %v2571_v41 = vcombine.low %v2562_v9, %v2569_v54  ;;  %v2589_v49 = vcombine.low %v9834_v43, %v9838_v44  ;;  %v2590_v15 = vcombine.low %v9823_v36, %v9841_v45  ;;  %v2597_v59 = vrot.slane %v2587_v19, %v9610_v11 }
  0xb7   : > { %v2578_v25 = vrot.slane %v2570_v21, %v9610_v11  ;;  %v2092_v10 = vrot.slane %v2078_v13, %v9610_v11  ;;  %v2604_v54 = vrot.slane %v2588_v52, %v9610_v11  ;;  %v5592_v35 = vcombine.low %v9856_v53, %v9841_v45  ;;  %v11098_v53 = vld [vmem:[%s13668_s1 + $0x8] sm:$0xf] }
  0xb8   : > { %v2585_v31 = vrot.slane %v2571_v41, %v9610_v11  ;;  %v2611_v21 = vrot.slane %v2589_v49, %v9610_v11  ;;  %v3319_v62 = vcombine.low %v9623_v18, %v9633_v22  ;;  %v2618_v13 = vrot.slane %v2590_v15, %v9610_v11 }
  0xb9   : > { %v2093_v9 = vcombine.low %v2085_v2, %v2092_v10  ;;  %v3320_v41 = vcombine.low %v9649_v27, %v9620_v17  ;;  %v2619_v42 = vcombine.low %v2597_v59, %v2604_v54  ;;  %v5599_v19 = vrot.slane %v5592_v35, %v9610_v11 }
  0xba   : > { %v2586_v61 = vcombine.low %v2578_v25, %v2585_v31  ;;  %v3321_v52 = vcombine.low %v9636_v23, %v9640_v24  ;;  %v3329_v49 = vrot.slane %v3319_v62, %v9610_v11  ;;  %v2620_v18 = vcombine.low %v2611_v21, %v2618_v13 }
  0xbb   : > { %9027 = vmatmul.mubr.msk.bf16.gmra.mxu0 %vm2358_vm2, %v2093_v9  ;;  %v3336_v17 = vrot.slane %v3320_v41, %v9610_v11  ;;  %v3350_v22 = vrot.slane %v3322_v1, %v9610_v11  ;;  %v11107_v23 = vrot.slane %v2619_v42, %v9610_v11  ;;  %v5600_v24 = vcombine.low %v2611_v21, %v5599_v19 }
  0xbc   : > { %9057 = vmatmul.mubr.msk.bf16.vlgmr.msra.gmra.mxu1 %vm2358_vm2, %v2586_v61  ;;  %v3343_v27 = vrot.slane %v3321_v52, %v9610_v11  ;;  %9110 = vmatprep.mubr.msk.bf16.mxu0 %vm9547_vm3, %v14099_v12  ;;  %v2634_v2 = vrot.slane %v2620_v18, %v9610_v11  ;;  %v5429_v25 = vsel %vm2398_vm0, %v11098_v53, 0  ;;  %v8715_v1 = vcombine.high %v9823_v36, %v9841_v45 }
  0xbd   : > { %9163 = vmatpush3.bf16.msra.mxu1 %v4565_v48  ;;  %9060 = vmatprep.mubr.msk.bf16.mxu1 %vm9547_vm3, %v14099_v12  ;;  %14281 = vst [vmem:[#allocation214_spill] sm:$0xff] %v11107_v23  ;;  %v3351_v61 = vcombine.low %v3329_v49, %v3336_v17  ;;  %v11118_v48 = vrot.slane %v5600_v24, %v9610_v11 }
  0xbe   : > { %v3352_v42 = vcombine.low %v3343_v27, %v3350_v22  ;;  %v2637_v10 = vcombine.low %v10037_v60, %v10045_v7  ;;  %v2638_v31 = vcombine.low %v10057_v55, %v10048_v37  ;;  %9270 = vmatprep.subr.bf16.mxu1 %v14099_v12  ;;  %v2635_v15 = vcombine.low %v11107_v23, %v2634_v2 }
  0xbf   : > { %14282 = vst [vmem:[#allocation215_spill] sm:$0xff] %v11118_v48  ;;  %v3359_v59 = vrot.slane %v3351_v61, %v9610_v11  ;;  %v2639_v54 = vcombine.low %v10060_v51, %v10066_v39  ;;  %v2646_v21 = vrot.slane %v8715_v1, %v9610_v11  ;;  %v8797_v52 = vcombine.high %v10037_v60, %v10045_v7 }
  0xc0   : > { %v3366_v62 = vrot.slane %v3352_v42, %v9610_v11  ;;  %v2653_v9 = vrot.slane %v2637_v10, %v9610_v11  ;;  %v2660_v41 = vrot.slane %v2638_v31, %v9610_v11  ;;  %v8734_v39 = vcombine.high %v9626_v20, %v9652_v28 }
  0xc1   : > { %v11136_v19 = vrot.slane %v2639_v54, %v9610_v11  ;;  %v6107_v49 = vcombine.low %v2618_v13, %v2646_v21  ;;  %v3369_v24 = vcombine.low %v9820_v33, %v9834_v43  ;;  %v5616_v2 = vrot.slane %v8797_v52, %v9610_v11  ;;  %v14300_v52 = vld [vmem:[#allocation130_spill] sm:$0xff] }
  0xc2   : > { %v3367_v18 = vcombine.low %v3359_v59, %v3366_v62  ;;  %v2668_v17 = vcombine.low %v2646_v21, %v2653_v9  ;;  %v6108_v22 = vcombine.low %v2653_v9, %v2660_v41  ;;  %v8735_v13 = vcombine.high %v9820_v33, %v9834_v43 }
  0xc3   : > { %14283 = vst [vmem:[#allocation216_spill] sm:$0xff] %v11136_v19  ;;  %v2669_v27 = vcombine.low %v2660_v41, %v11136_v19  ;;  %v11148_v61 = vrot.slane %v6107_v49, %v9610_v11  ;;  %v3371_v10 = vcombine.low %v9841_v45, %v9845_v46  ;;  %v5617_v43 = vcombine.low %v5616_v2, %v11136_v19 }
  0xc4   : > { %9061 = vmatmul.mubr.msk.bf16.gmra.mxu1 %vm2358_vm2, %v2635_v15  ;;  %9111 = vmatmul.mubr.msk.bf16.vlgmr.msra.gmra.mxu0 %vm2358_vm2, %v3367_v18  ;;  %v11156_v1 = vrot.slane %v2668_v17, %v9610_v11  ;;  %v11159_v42 = vrot.slane %v6108_v22, %v9610_v11  ;;  %v11168_v31 = vrot.slane %v8734_v39, %v9610_v11 }
  0xc5   : > { %14284 = vst [vmem:[#allocation217_spill] sm:$0xff] %v11148_v61  ;;  %9064 = vmatprep.mubr.msk.bf16.mxu1 %vm9547_vm3, %v14099_v12  ;;  %9217 = vmatpush3.bf16.msra.mxu0 %v5429_v25  ;;  %v2683_v33 = vrot.slane %v2669_v27, %v9610_v11  ;;  %v11173_v59 = vrot.slane %v3369_v24, %v9610_v11 }
  0xc6   : > { %14285 = vst [vmem:[#allocation218_spill] sm:$0xff] %v11156_v1  ;;  %14286 = vst [vmem:[#allocation219_spill] sm:$0xff] %v11159_v42  ;;  %9114 = vmatprep.mubr.msk.bf16.mxu0 %vm9547_vm3, %v14099_v12  ;;  %v3392_v54 = vrot.slane %v8735_v13, %v9610_v11  ;;  %v11177_v45 = vrot.slane %v3371_v10, %v9610_v11  ;;  %9324 = vmatprep.subr.bf16.mxu0 %v14099_v12  ;;  %v14307_v42 = vld [vmem:[#allocation133_spill] sm:$0xff] }
  0xc7   : > { %v2684_v46 = vcombine.low %v11156_v1, %v2683_v33  ;;  %v11182_v25 = vrot.slane %v5617_v43, %v9610_v11  ;;  %v3400_v21 = vcombine.low %v11168_v31, %v11173_v59  ;;  %v2685_v9 = vcombine.low %v10078_v56, %v10275_v3 }
  0xc8   : > { %v3401_v62 = vcombine.low %v3392_v54, %v11177_v45  ;;  %v2686_v41 = vcombine.low %v10288_v29, %v10292_v5  ;;  %v2687_v49 = vcombine.low %v10285_v57, %v10295_v32  ;;  %v8716_v17 = vcombine.high %v10285_v57, %v10295_v32 }
  0xc9   : > { %14287 = vst [vmem:[#allocation220_spill] sm:$0xff] %v11182_v25  ;;  %v3408_v39 = vrot.slane %v3400_v21, %v9610_v11  ;;  %v11200_v22 = vrot.slane %v2685_v9, %v9610_v11  ;;  %v3417_v54 = vcombine.low %v10020_v26, %v10037_v60 }
  0xca   : > { %v3415_v18 = vrot.slane %v3401_v62, %v9610_v11  ;;  %v11204_v56 = vrot.slane %v2686_v41, %v9610_v11  ;;  %v11207_v24 = vrot.slane %v2687_v49, %v9610_v11  ;;  %v11212_v2 = vrot.slane %v8716_v17, %v9610_v11  ;;  %v14293_v62 = vld [vmem:[#allocation56_spill] sm:$0xff]  ;;  %v14294_v49 = vld [vmem:[#allocation90_spill] sm:$0xff] }
  0xcb   : > { %14288 = vst [vmem:[#allocation221_spill] sm:$0xff] %v11200_v22  ;;  %v3419_v9 = vcombine.low %v14293_v62, %v10060_v51  ;;  %v8736_v41 = vcombine.high %v10048_v37, %v10060_v51  ;;  %v11240_v26 = vrot.slane %v3417_v54, %v9610_v11  ;;  %v14297_v17 = vld [vmem:[#allocation126_spill] sm:$0xff]  ;;  %v14299_v62 = vld [vmem:[#allocation129_spill] sm:$0xff] }
  0xcc   : > { %9065 = vmatmul.mubr.msk.bf16.gmra.mxu1 %vm2358_vm2, %v2684_v46  ;;  %14289 = vst [vmem:[#allocation222_spill] sm:$0xff] %v11204_v56  ;;  %14290 = vst [vmem:[#allocation223_spill] sm:$0xff] %v11207_v24  ;;  %v3416_v27 = vcombine.low %v3408_v39, %v3415_v18  ;;  %v2717_v10 = vcombine.low %v11200_v22, %v11204_v56  ;;  %v2718_v43 = vcombine.low %v11207_v24, %v11212_v2 }
  0xcd   : > { %9068 = vmatprep.mubr.msk.bf16.mxu1 %vm9547_vm3, %v14099_v12  ;;  %14291 = vst [vmem:[#allocation224_spill] sm:$0xff] %v11212_v2  ;;  %v3418_v46 = vcombine.low %v10045_v7, %v10057_v55  ;;  %v2734_v39 = vcombine.low %v14294_v49, %v10532_v14  ;;  %v11246_v55 = vrot.slane %v3419_v9, %v9610_v11  ;;  %v14326_v2 = vld [vmem:[#allocation199_spill] sm:$0xff] }
  0xce   : > { %9115 = vmatmul.mubr.msk.bf16.gmra.mxu0 %vm2358_vm2, %v3416_v27  ;;  %v11230_v21 = vrot.slane %v2717_v10, %v9610_v11  ;;  %v2732_v60 = vrot.slane %v2718_v43, %v9610_v11  ;;  %v11249_v18 = vrot.slane %v8736_v41, %v9610_v11  ;;  %v2735_v27 = vcombine.low %v14297_v17, %v10529_v0  ;;  %v14298_v10 = vld [vmem:[#allocation131_spill] sm:$0xff] }
  0xcf   : > { %9118 = vmatprep.mubr.msk.bf16.mxu0 %vm9547_vm3, %v14099_v12  ;;  %v11243_v7 = vrot.slane %v3418_v46, %v9610_v11  ;;  %14296 = vst [vmem:[#allocation226_spill] sm:$0xff] %v11246_v55  ;;  %v2736_v15 = vcombine.low %v14299_v62, %v14298_v10  ;;  %v14301_v46 = vld [vmem:[#allocation132_spill] sm:$0xff]  ;;  %v11263_v41 = vrot.slane %v2734_v39, %v9610_v11 }
  0xd0   : > { %14292 = vst [vmem:[#allocation225_spill] sm:$0xff] %v11230_v21  ;;  %v2733_v43 = vcombine.low %v11230_v21, %v2732_v60  ;;  %v2737_v35 = vcombine.low %v14301_v46, %v14300_v52  ;;  %v3450_v9 = vcombine.low %v11246_v55, %v11249_v18  ;;  %v11266_v33 = vrot.slane %v2735_v27, %v9610_v11  ;;  %v14306_v46 = vld [vmem:[#allocation167_spill] sm:$0xff] }
  0xd1   : > { %14295 = vst [vmem:[#allocation56_spill] sm:$0xff] %v11243_v7  ;;  %v3449_v54 = vcombine.low %v11240_v26, %v11243_v7  ;;  %14302 = vst [vmem:[#allocation126_spill] sm:$0xff] %v11263_v41  ;;  %v11269_v13 = vrot.slane %v2736_v15, %v9610_v11  ;;  %v2783_v61 = vcombine.low %v14307_v42, %v14306_v46 }
  0xd2   : > { %14303 = vst [vmem:[#allocation131_spill] sm:$0xff] %v11266_v33  ;;  %v11274_v10 = vrot.slane %v2737_v35, %v9610_v11  ;;  %v3464_v55 = vrot.slane %v3450_v9, %v9610_v11  ;;  %v2766_v39 = vcombine.low %v11263_v41, %v11266_v33  ;;  %v3468_v41 = vcombine.low %v10295_v32, %v14309_v30  ;;  %v14314_v30 = vld [vmem:[#allocation169_spill] sm:$0xff] }
  0xd3   : > { %14304 = vst [vmem:[#allocation129_spill] sm:$0xff] %v11269_v13  ;;  %v3457_v60 = vrot.slane %v3449_v54, %v9610_v11  ;;  %v11288_v35 = vrot.slane %v2783_v61, %v9610_v11  ;;  %v8737_v54 = vcombine.high %v10275_v3, %v10288_v29  ;;  %v14311_v61 = vld [vmem:[#allocation92_spill] sm:$0xff]  ;;  %v8738_v1 = vcombine.high %v10529_v0, %v14299_v62 }
  0xd4   : > { %9069 = vmatmul.mubr.msk.bf16.gmra.mxu1 %vm2358_vm2, %v2733_v43  ;;  %14305 = vst [vmem:[#allocation130_spill] sm:$0xff] %v11274_v10  ;;  %v2767_v27 = vcombine.low %v11269_v13, %v11274_v10  ;;  %v3466_v43 = vcombine.low %v10275_v3, %v10288_v29  ;;  %v2774_v21 = vrot.slane %v2766_v39, %v9610_v11 }
  0xd5   : > { %9072 = vmatprep.mubr.msk.bf16.mxu1 %vm9547_vm3, %v14099_v12  ;;  %14308 = vst [vmem:[#allocation132_spill] sm:$0xff] %v11288_v35  ;;  %v3465_v9 = vcombine.low %v3457_v60, %v3464_v55  ;;  %v3469_v33 = vcombine.low %v14311_v61, %v14294_v49  ;;  %v11309_v3 = vrot.slane %v8737_v54, %v9610_v11 }
  0xd6   : > { %v11298_v15 = vrot.slane %v2767_v27, %v9610_v11  ;;  %v11305_v50 = vrot.slane %v3466_v43, %v9610_v11  ;;  %v11312_v29 = vrot.slane %v3468_v41, %v9610_v11  ;;  %v2784_v55 = vcombine.low %v14314_v30, %v10770_v38 }
  0xd7   : > { %9119 = vmatmul.mubr.msk.bf16.gmra.mxu0 %vm2358_vm2, %v3465_v9  ;;  %14312 = vst [vmem:[#allocation133_spill] sm:$0xff] %v11309_v3  ;;  %v11320_v39 = vrot.slane %v3469_v33, %v9610_v11  ;;  %v8717_v27 = vcombine.high %v14314_v30, %v10770_v38  ;;  %v2786_v43 = vcombine.low %v10773_v40, %v10791_v6  ;;  %v14316_v9 = vld [vmem:[#allocation171_spill] sm:$0xff] }
  0xd8   : > { %14310 = vst [vmem:[#allocation167_spill] sm:$0xff] %v11298_v15  ;;  %14313 = vst [vmem:[#allocation91_spill] sm:$0xff] %v11312_v29  ;;  %9122 = vmatprep.mubr.msk.bf16.mxu0 %vm9547_vm3, %v14099_v12  ;;  %v2782_v60 = vcombine.low %v2774_v21, %v11298_v15  ;;  %v3498_v41 = vcombine.low %v11305_v50, %v11309_v3  ;;  %v11329_v54 = vrot.slane %v2784_v55, %v9610_v11 }
  0xd9   : > { %v5660_v61 = vcombine.low %v14316_v9, %v10770_v38  ;;  %v3499_v33 = vcombine.low %v11312_v29, %v11320_v39  ;;  %v11337_v21 = vrot.slane %v8717_v27, %v9610_v11  ;;  %v11340_v13 = vrot.slane %v2786_v43, %v9610_v11 }
  0xda   : > { %14315 = vst [vmem:[#allocation92_spill] sm:$0xff] %v11329_v54  ;;  %v3515_v3 = vcombine.low %v10532_v14, %v14297_v17  ;;  %v3506_v55 = vrot.slane %v3498_v41, %v9610_v11  ;;  %v14319_v17 = vld [vmem:[#allocation134_spill] sm:$0xff] }
  0xdb   : > { %14317 = vst [vmem:[#allocation169_spill] sm:$0xff] %v11337_v21  ;;  %14318 = vst [vmem:[#allocation171_spill] sm:$0xff] %v11340_v13  ;;  %v5667_v9 = vrot.slane %v5660_v61, %v9610_v11  ;;  %v3513_v15 = vrot.slane %v3499_v33, %v9610_v11  ;;  %v2816_v27 = vcombine.low %v11337_v21, %v11340_v13  ;;  %v14335_v13 = vld [vmem:[#allocation172_spill] sm:$0xff] }
  0xdc   : > { %9073 = vmatmul.mubr.msk.bf16.gmra.mxu1 %vm2358_vm2, %v2782_v60  ;;  %v2815_v60 = vcombine.low %v11288_v35, %v11329_v54  ;;  %v3516_v34 = vcombine.low %v14319_v17, %v14299_v62  ;;  %v3518_v61 = vcombine.low %v14300_v52, %v14307_v42  ;;  %v11367_v14 = vrot.slane %v3515_v3, %v9610_v11 }
  0xdd   : > { %9076 = vmatprep.mubr.msk.bf16.mxu1 %vm9547_vm3, %v14099_v12  ;;  %v5668_v25 = vcombine.low %v11288_v35, %v5667_v9  ;;  %v3514_v33 = vcombine.low %v3506_v55, %v3513_v15  ;;  %v11364_v49 = vrot.slane %v2816_v27, %v9610_v11  ;;  %v11376_v9 = vrot.slane %v8738_v1, %v9610_v11  ;;  %v14324_v55 = vld [vmem:[#allocation196_spill] sm:$0xff]  ;;  %v14325_v27 = vld [vmem:[#allocation197_spill] sm:$0xff] }
  0xde   : > { %v2823_v41 = vrot.slane %v2815_v60, %v9610_v11  ;;  %v11370_v43 = vrot.slane %v3516_v34, %v9610_v11  ;;  %v11379_v17 = vrot.slane %v3518_v61, %v9610_v11  ;;  %v2832_v15 = vcombine.low %v10795_v4, %v10940_v63 }
  0xdf   : > { %14320 = vst [vmem:[#allocation134_spill] sm:$0xff] %v11364_v49  ;;  %v11373_v60 = vrot.slane %v5668_v25, %v9610_v11  ;;  %14323 = vst [vmem:[#allocation229_spill] sm:$0xff] %v11376_v9  ;;  %9123 = vmatmul.mubr.msk.bf16.gmra.mxu0 %vm2358_vm2, %v3514_v33  ;;  %v2833_v25 = vcombine.low %v14324_v55, %v10954_v16  ;;  %v2834_v1 = vcombine.low %v14326_v2, %v14325_v27  ;;  %v14328_v33 = vld [vmem:[#allocation200_spill] sm:$0xff] }
  0xe0   : > { %14321 = vst [vmem:[#allocation227_spill] sm:$0xff] %v11370_v43  ;;  %v2831_v3 = vcombine.low %v2823_v41, %v11364_v49  ;;  %v3547_v34 = vcombine.low %v11367_v14, %v11370_v43  ;;  %9126 = vmatprep.mubr.msk.bf16.mxu0 %vm9547_vm3, %v14099_v12  ;;  %v3548_v41 = vcombine.low %v11376_v9, %v11379_v17 }
  0xe1   : > { %14322 = vst [vmem:[#allocation228_spill] sm:$0xff] %v11373_v60  ;;  %v2835_v43 = vcombine.low %v14328_v33, %v10977_v8  ;;  %v11402_v23 = vrot.slane %v2832_v15, %v9610_v11  ;;  %v11407_v2 = vrot.slane %v2833_v25, %v9610_v11  ;;  %v11410_v32 = vrot.slane %v2834_v1, %v9610_v11 }
  0xe2   : > { %v3555_v16 = vrot.slane %v3547_v34, %v9610_v11  ;;  %v8799_v61 = vcombine.high %v10773_v40, %v10791_v6  ;;  %v3562_v60 = vrot.slane %v3548_v41, %v9610_v11  ;;  %v8739_v34 = vcombine.high %v14300_v52, %v14307_v42  ;;  %v14333_v41 = vld [vmem:[#allocation170_spill] sm:$0xff] }
  0xe3   : > { %14329 = vst [vmem:[#allocation199_spill] sm:$0xff] %v11402_v23  ;;  %14330 = vst [vmem:[#allocation200_spill] sm:$0xff] %v11407_v2  ;;  %v11418_v15 = vrot.slane %v2835_v43, %v9610_v11  ;;  %v2864_v25 = vcombine.low %v11402_v23, %v11407_v2  ;;  %v3566_v42 = vcombine.low %v14335_v13, %v10773_v40 }
  0xe4   : > { %9077 = vmatmul.mubr.msk.bf16.gmra.mxu1 %vm2358_vm2, %v2831_v3  ;;  %14331 = vst [vmem:[#allocation230_spill] sm:$0xff] %v11410_v32  ;;  %v5684_v1 = vrot.slane %v8799_v61, %v9610_v11  ;;  %v3563_v43 = vcombine.low %v3555_v16, %v3562_v60  ;;  %v3567_v52 = vcombine.low %v10791_v6, %v10795_v4  ;;  %v14337_v4 = vld [vmem:[#allocation6_spill] sm:$0xff]  ;;  %v14338_v6 = vld [vmem:[#allocation5_spill] sm:$0xff] }
  0xe5   : > { %9080 = vmatprep.mubr.msk.bf16.mxu1 %vm9547_vm3, %v14099_v12  ;;  %14332 = vst [vmem:[#allocation231_spill] sm:$0xff] %v11418_v15  ;;  %v2865_v3 = vcombine.low %v11410_v32, %v11418_v15  ;;  %v2872_v61 = vrot.slane %v2864_v25, %v9610_v11  ;;  %v2881_v13 = vcombine.low %v14338_v6, %v14337_v4  ;;  %v14340_v25 = vld [vmem:[#allocation11_spill] sm:$0xff]  ;;  %v14350_v15 = vld [vmem:[#allocation13_spill] sm:$0xff] }
  0xe6   : > { %v5685_v23 = vcombine.low %v5684_v1, %v11407_v2  ;;  %v11454_v40 = vrot.slane %v3567_v52, %v9610_v11  ;;  %v14341_v1 = vld [vmem:[#allocation8_spill] sm:$0xff]  ;;  %v14348_v2 = vld [vmem:[#allocation198_spill] sm:$0xff] }
  0xe7   : > { %v11448_v16 = vrot.slane %v2865_v3, %v9610_v11  ;;  %9127 = vmatmul.mubr.msk.bf16.gmra.mxu0 %vm2358_vm2, %v3563_v43  ;;  %v8718_v3 = vcombine.high %v14338_v6, %v14337_v4  ;;  %v11476_v32 = vrot.slane %v2881_v13, %v9610_v11  ;;  %v14349_v13 = vld [vmem:[#allocation35_spill] sm:$0xff] }
  0xe8   : > { %9130 = vmatprep.mubr.msk.bf16.mxu0 %vm9547_vm3, %v14099_v12 }
  0xe9   : > { %v11391_v48 = vpop.f32.mrf.mxu0  ;;  %14336 = vst [vmem:[#allocation172_spill] sm:$0xff] %v11448_v16  ;;  %v2880_v52 = vcombine.low %v2872_v61, %v11448_v16  ;;  %v11482_v35 = vrot.slane %v8718_v3, %v9610_v11  ;;  %v3613_v16 = vcombine.low %v14348_v2, %v14324_v55  ;;  %v8740_v3 = vcombine.high %v10940_v63, %v14324_v55 }
  0xea   : > { %14327 = vst [vmem:[#allocation197_spill] sm:$0xff] %v11391_v48  ;;  %v3565_v48 = vcombine.low %v10770_v38, %v14333_v41  ;;  %v11451_v41 = vrot.slane %v3566_v42, %v9610_v11  ;;  %v2883_v42 = vcombine.low %v14341_v1, %v14340_v25 }
  0xeb   : > { %v9004_v49 = vpop.f32.mrf.mxu0  ;;  %14345 = vst [vmem:[#allocation232_spill] sm:$0xff] %v11482_v35  ;;  %v11509_v2 = vrot.slane %v3613_v16, %v9610_v11  ;;  %v11517_v56 = vrot.slane %v8740_v3, %v9610_v11  ;;  %v14354_v16 = vld [vmem:[#allocation36_spill] sm:$0xff] }
  0xec   : > { %v11442_v49 = vrot.slane %v8739_v34, %v9610_v11  ;;  %v11445_v38 = vrot.slane %v3565_v48, %v9610_v11  ;;  %v11460_v34 = vrot.slane %v5685_v23, %v9610_v11  ;;  %v3597_v43 = vcombine.low %v11451_v41, %v11454_v40  ;;  %v14343_v23 = vld [vmem:[#allocation12_spill] sm:$0xff]  ;;  %9081 = vmatmul.mubr.msk.bf16.gmra.mxu1 %vm2358_vm2, %v2880_v52 }
  0xed   : > { %v11431_v21 = vpop.f32.mrf.mxu0  ;;  %14344 = vst [vmem:[#allocation12_spill] sm:$0xff] %v11476_v32  ;;  %v11485_v10 = vrot.slane %v2883_v42, %v9610_v11  ;;  %9084 = vmatprep.mubr.msk.bf16.mxu1 %vm9547_vm3, %v14099_v12  ;;  %v3615_v42 = vcombine.low %v14325_v27, %v14328_v33  ;;  %v3645_v3 = vcombine.low %v11509_v2, %v11517_v56 }
  0xee   : > { %14334 = vst [vmem:[#allocation170_spill] sm:$0xff] %v11431_v21  ;;  %14339 = vst [vmem:[#allocation5_spill] sm:$0xff] %v11460_v34  ;;  %v3596_v48 = vcombine.low %v11442_v49, %v11445_v38  ;;  %v3611_v61 = vrot.slane %v3597_v43, %v9610_v11  ;;  %v2930_v34 = vcombine.low %v14350_v15, %v14349_v13  ;;  %v14356_v13 = vld [vmem:[#allocation39_spill] sm:$0xff] }
  0xef   : > { %v9005_v60 = vpop.f32.mrf.mxu0  ;;  %14346 = vst [vmem:[#allocation233_spill] sm:$0xff] %v11485_v10  ;;  %v11520_v22 = vrot.slane %v3615_v42, %v9610_v11 }
  0xf0   : > { %v14342_v60 = vld [vmem:[#allocation9_spill] sm:$0xff]  ;;  %v3604_v54 = vrot.slane %v3596_v48, %v9610_v11  ;;  %v2913_v48 = vcombine.low %v11476_v32, %v11482_v35 }
  0xf1   : > { %v2884_v21 = vcombine.low %v14343_v23, %v14342_v60 }
  0xf2   : > { %v3612_v52 = vcombine.low %v3604_v54, %v3611_v61  ;;  %v2921_v35 = vrot.slane %v2913_v48, %v9610_v11 }
  0xf3   : > { %v11490_v24 = vrot.slane %v2884_v21, %v9610_v11  ;;  %v8741_v21 = vcombine.high %v14325_v27, %v14328_v33  ;;  %v14353_v33 = vld [vmem:[#allocation37_spill] sm:$0xff] }
  0xf4   : > { %v2931_v61 = vcombine.low %v14354_v16, %v14353_v33  ;;  %9131 = vmatmul.mubr.msk.bf16.gmra.mxu0 %vm2358_vm2, %v3612_v52 }
  0xf5   : > { %14347 = vst [vmem:[#allocation234_spill] sm:$0xff] %v11490_v24  ;;  %v2914_v43 = vcombine.low %v11485_v10, %v11490_v24  ;;  %v11523_v54 = vrot.slane %v8741_v21, %v9610_v11  ;;  %v14355_v10 = vld [vmem:[#allocation40_spill] sm:$0xff]  ;;  %v11538_v21 = vrot.slane %v2930_v34, %v9610_v11  ;;  %9134 = vmatprep.mubr.msk.bf16.mxu0 %vm9547_vm3, %v14099_v12 }
  0xf6   : > { %v11513_v32 = vpop.f32.mrf.mxu1  ;;  %v2932_v19 = vcombine.low %v14356_v13, %v14355_v10  ;;  %v3653_v34 = vrot.slane %v3645_v3, %v9610_v11 }
  0xf7   : > { %14351 = vst [vmem:[#allocation198_spill] sm:$0xff] %v11513_v32  ;;  %14352 = vst [vmem:[#allocation35_spill] sm:$0xff] %v11523_v54  ;;  %v2928_v27 = vrot.slane %v2914_v43, %v9610_v11  ;;  %v14357_v32 = vld [vmem:[#allocation41_spill] sm:$0xff]  ;;  %v3646_v42 = vcombine.low %v11520_v22, %v11523_v54  ;;  %v14360_v43 = vld [vmem:[#allocation43_spill] sm:$0xff] }
  0xf8   : > { %v2933_v48 = vcombine.low %v14358_v58, %v14357_v32  ;;  %v9032_v47 = vpop.f32.mrf.mxu1  ;;  %14359 = vst [vmem:[#allocation37_spill] sm:$0xff] %v11538_v21  ;;  %v5727_v16 = vcombine.low %v14360_v43, %v14357_v32  ;;  %v11548_v52 = vrot.slane %v2932_v19, %v9610_v11 }
  0xf9   : > { %v2929_v10 = vcombine.low %v2921_v35, %v2928_v27  ;;  %v11545_v47 = vrot.slane %v2931_v61, %v9610_v11  ;;  %v3660_v54 = vrot.slane %v3646_v42, %v9610_v11 }
  0xfa   : > { %14362 = vst [vmem:[#allocation39_spill] sm:$0xff] %v11548_v52  ;;  %v11551_v63 = vrot.slane %v2933_v48, %v9610_v11  ;;  %v11553_v55 = vpop.f32.mrf.mxu1  ;;  %v5734_v43 = vrot.slane %v5727_v16, %v9610_v11  ;;  %v14365_v48 = vld [vmem:[#allocation7_spill] sm:$0xff] }
  0xfb   : > { %14361 = vst [vmem:[#allocation36_spill] sm:$0xff] %v11545_v47  ;;  %14364 = vst [vmem:[#allocation43_spill] sm:$0xff] %v11553_v55  ;;  %9085 = vmatmul.mubr.msk.bf16.gmra.mxu1 %vm2358_vm2, %v2929_v10  ;;  %v2962_v19 = vcombine.low %v11538_v21, %v11545_v47  ;;  %v3662_v3 = vcombine.low %v14337_v4, %v14365_v48  ;;  %v3661_v55 = vcombine.low %v3653_v34, %v3660_v54  ;;  %v14366_v10 = vld [vmem:[#allocation10_spill] sm:$0xff] }
  0xfc   : > { %14363 = vst [vmem:[#allocation41_spill] sm:$0xff] %v11551_v63  ;;  %v2963_v27 = vcombine.low %v11548_v52, %v11551_v63  ;;  %v9033_v42 = vpop.f32.mrf.mxu1  ;;  %9088 = vmatprep.mubr.msk.bf16.mxu1 %vm9547_vm3, %v14099_v12  ;;  %v5735_v16 = vcombine.low %v11548_v52, %v5734_v43  ;;  %v3663_v35 = vcombine.low %v14366_v10, %v14341_v1  ;;  %v14368_v48 = vld [vmem:[#allocation14_spill] sm:$0xff] }
  0xfd   : > { %v3664_v21 = vcombine.low %v14340_v25, %v14343_v23  ;;  %v11577_v24 = vrot.slane %v2962_v19, %v9610_v11  ;;  %v3665_v42 = vcombine.low %v14368_v48, %v14350_v15  ;;  %v11583_v54 = vrot.slane %v3662_v3, %v9610_v11  ;;  %v14374_v48 = vld [vmem:[#allocation67_spill] sm:$0xff]  ;;  %9135 = vmatmul.mubr.msk.bf16.gmra.mxu0 %vm2358_vm2, %v3661_v55  ;;  %v14376_v25 = vld [vmem:[#allocation69_spill] sm:$0xff]  ;;  %v14378_v47 = vld [vmem:[#allocation74_spill] sm:$0xff] }
  0xfe   : > { %v2977_v61 = vrot.slane %v2963_v27, %v9610_v11  ;;  %v11586_v34 = vrot.slane %v5735_v16, %v9610_v11  ;;  %v11589_v43 = vrot.slane %v3663_v35, %v9610_v11  ;;  %v8742_v23 = vcombine.high %v14342_v60, %v14350_v15  ;;  %v14375_v16 = vld [vmem:[#allocation66_spill] sm:$0xff]  ;;  %9138 = vmatprep.mubr.msk.bf16.mxu0 %vm9547_vm3, %v14099_v12 }
  0xff   : > { %14367 = vst [vmem:[#allocation7_spill] sm:$0xff] %v11577_v24  ;;  %14369 = vst [vmem:[#allocation10_spill] sm:$0xff] %v11583_v54  ;;  %v11592_v10 = vrot.slane %v3664_v21, %v9610_v11  ;;  %v11598_v27 = vrot.slane %v3665_v42, %v9610_v11  ;;  %v8719_v3 = vcombine.high %v14358_v58, %v14357_v32  ;;  %v14377_v42 = vld [vmem:[#allocation68_spill] sm:$0xff]  ;;  %v14379_v58 = vld [vmem:[#allocation71_spill] sm:$0xff] }
 0x100   : > { %14370 = vst [vmem:[#allocation14_spill] sm:$0xff] %v11586_v34  ;;  %14371 = vst [vmem:[#allocation235_spill] sm:$0xff] %v11589_v43  ;;  %v2978_v19 = vcombine.low %v11577_v24, %v2977_v61  ;;  %v2980_v1 = vcombine.low %v14375_v16, %v14374_v48  ;;  %v3694_v61 = vcombine.low %v11583_v54, %v11589_v43  ;;  %v14397_v43 = vld [vmem:[#allocation108_spill] sm:$0xff] }
 0x101   : > { %14372 = vst [vmem:[#allocation236_spill] sm:$0xff] %v11592_v10  ;;  %14373 = vst [vmem:[#allocation237_spill] sm:$0xff] %v11598_v27  ;;  %v2981_v4 = vcombine.low %v14377_v42, %v14376_v25  ;;  %v3695_v52 = vcombine.low %v11592_v10, %v11598_v27  ;;  %v2982_v35 = vcombine.low %v14379_v58, %v14378_v47 }
 0x102   : > { %v11620_v55 = vrot.slane %v8719_v3, %v9610_v11  ;;  %v11623_v21 = vrot.slane %v2980_v1, %v9610_v11  ;;  %v11625_v34 = vpop.f32.mrf.mxu0  ;;  %v3702_v24 = vrot.slane %v3694_v61, %v9610_v11  ;;  %v11629_v60 = vrot.slane %v8742_v23, %v9610_v11  ;;  %v14387_v23 = vld [vmem:[#allocation42_spill] sm:$0xff] }
 0x103   : > { %14382 = vst [vmem:[#allocation69_spill] sm:$0xff] %v11625_v34  ;;  %v11632_v15 = vrot.slane %v2981_v4, %v9610_v11  ;;  %v8801_v27 = vcombine.high %v14375_v16, %v14374_v48  ;;  %9089 = vmatmul.mubr.msk.bf16.gmra.mxu1 %vm2358_vm2, %v2978_v19  ;;  %v3709_v47 = vrot.slane %v3695_v52, %v9610_v11 }
 0x104   : > { %14380 = vst [vmem:[#allocation67_spill] sm:$0xff] %v11620_v55  ;;  %14381 = vst [vmem:[#allocation66_spill] sm:$0xff] %v11623_v21  ;;  %v11639_v1 = vrot.slane %v2982_v35, %v9610_v11  ;;  %v3011_v3 = vcombine.low %v11620_v55, %v11623_v21  ;;  %v9008_v61 = vpop.f32.mrf.mxu0  ;;  %9092 = vmatprep.mubr.msk.bf16.mxu1 %vm9547_vm3, %v14099_v12  ;;  %v3712_v52 = vcombine.low %v14353_v33, %v14356_v13 }
 0x105   : > { %14383 = vst [vmem:[#allocation68_spill] sm:$0xff] %v11629_v60  ;;  %14384 = vst [vmem:[#allocation74_spill] sm:$0xff] %v11632_v15  ;;  %v5751_v4 = vrot.slane %v8801_v27, %v9610_v11  ;;  %v8743_v35 = vcombine.high %v14353_v33, %v14356_v13  ;;  %v3710_v34 = vcombine.low %v3702_v24, %v3709_v47  ;;  %v14391_v24 = vld [vmem:[#allocation102_spill] sm:$0xff]  ;;  %v14392_v33 = vld [vmem:[#allocation76_spill] sm:$0xff] }
 0x106   : > { %14385 = vst [vmem:[#allocation71_spill] sm:$0xff] %v11639_v1  ;;  %v3012_v54 = vcombine.low %v11632_v15, %v11639_v1  ;;  %v11657_v61 = vrot.slane %v3011_v3, %v9610_v11  ;;  %v3714_v55 = vcombine.low %v14357_v32, %v14387_v23  ;;  %v11661_v27 = vpop.f32.mrf.mxu0  ;;  %v11665_v21 = vrot.slane %v3712_v52, %v9610_v11  ;;  %v14394_v15 = vld [vmem:[#allocation107_spill] sm:$0xff]  ;;  %v14395_v32 = vld [vmem:[#allocation105_spill] sm:$0xff] }
 0x107   : > { %14388 = vst [vmem:[#allocation42_spill] sm:$0xff] %v11661_v27  ;;  %v5752_v19 = vcombine.low %v5751_v4, %v11639_v1  ;;  %v11668_v63 = vrot.slane %v8743_v35, %v9610_v11  ;;  %v3028_v13 = vcombine.low %v14392_v33, %v14391_v24  ;;  %v3029_v23 = vcombine.low %v14395_v32, %v14394_v15  ;;  %v14396_v27 = vld [vmem:[#allocation111_spill] sm:$0xff] }
 0x108   : > { %14386 = vst [vmem:[#allocation238_spill] sm:$0xff] %v11657_v61  ;;  %14389 = vst [vmem:[#allocation239_spill] sm:$0xff] %v11665_v21  ;;  %v3026_v47 = vrot.slane %v3012_v54, %v9610_v11  ;;  %v11674_v3 = vrot.slane %v3714_v55, %v9610_v11  ;;  %v3030_v4 = vcombine.low %v14397_v43, %v14396_v27  ;;  %v9009_v10 = vpop.f32.mrf.mxu0  ;;  %9139 = vmatmul.mubr.msk.bf16.gmra.mxu0 %vm2358_vm2, %v3710_v34 }
 0x109   : > { %14390 = vst [vmem:[#allocation240_spill] sm:$0xff] %v11668_v63  ;;  %v11682_v52 = vrot.slane %v5752_v19, %v9610_v11  ;;  %v3743_v35 = vcombine.low %v11629_v60, %v11665_v21  ;;  %v8720_v55 = vcombine.high %v14397_v43, %v14396_v27  ;;  %9142 = vmatprep.mubr.msk.bf16.mxu0 %vm9547_vm3, %v14099_v12 }
 0x10a   : > { %14393 = vst [vmem:[#allocation102_spill] sm:$0xff] %v11674_v3  ;;  %v3027_v33 = vcombine.low %v11657_v61, %v3026_v47  ;;  %v3744_v34 = vcombine.low %v11668_v63, %v11674_v3  ;;  %v11696_v10 = vrot.slane %v3028_v13, %v9610_v11  ;;  %v11699_v19 = vrot.slane %v3029_v23, %v9610_v11  ;;  %v14406_v61 = vld [vmem:[#allocation72_spill] sm:$0xff]  ;;  %v14415_v63 = vld [vmem:[#allocation149_spill] sm:$0xff] }
 0x10b   : > { %14398 = vst [vmem:[#allocation76_spill] sm:$0xff] %v11682_v52  ;;  %v3751_v15 = vrot.slane %v3743_v35, %v9610_v11  ;;  %v11705_v43 = vrot.slane %v3030_v4, %v9610_v11  ;;  %v11708_v21 = vrot.slane %v8720_v55, %v9610_v11  ;;  %v4175_v47 = vcombine.low %v9838_v44, %v9823_v36  ;;  %v14403_v36 = vld [vmem:[#allocation64_spill] sm:$0xff] }
 0x10c   : > { %14399 = vst [vmem:[#allocation105_spill] sm:$0xff] %v11696_v10  ;;  %14400 = vst [vmem:[#allocation241_spill] sm:$0xff] %v11699_v19  ;;  %9093 = vmatmul.mubr.msk.bf16.gmra.mxu1 %vm2358_vm2, %v3027_v33  ;;  %v3758_v13 = vrot.slane %v3744_v34, %v9610_v11  ;;  %v3060_v23 = vcombine.low %v11696_v10, %v11699_v19  ;;  %v3760_v44 = vcombine.low %v14403_v36, %v14375_v16  ;;  %v14416_v19 = vld [vmem:[#allocation152_spill] sm:$0xff]  ;;  %v14417_v10 = vld [vmem:[#allocation153_spill] sm:$0xff] }
 0x10d   : > { %14401 = vst [vmem:[#allocation242_spill] sm:$0xff] %v11705_v43  ;;  %14402 = vst [vmem:[#allocation243_spill] sm:$0xff] %v11708_v21  ;;  %9096 = vmatprep.mubr.msk.bf16.mxu1 %vm9547_vm3, %v14099_v12  ;;  %v3061_v4 = vcombine.low %v11705_v43, %v11708_v21  ;;  %v3761_v55 = vcombine.low %v14374_v48, %v14377_v42  ;;  %v14404_v33 = vcombine.low %v9626_v20, %v9652_v28  ;;  %v14410_v42 = vld [vmem:[#allocation110_spill] sm:$0xff] }
 0x10e   : > { %v3759_v54 = vcombine.low %v3751_v15, %v3758_v13  ;;  %v11733_v52 = vrot.slane %v3060_v23, %v9610_v11  ;;  %v3762_v21 = vcombine.low %v14406_v61, %v14379_v58  ;;  %v8744_v16 = vcombine.high %v14376_v25, %v14379_v58  ;;  %v14409_v15 = vld [vmem:[#allocation147_spill] sm:$0xff]  ;;  %v14411_v61 = vld [vmem:[#allocation148_spill] sm:$0xff]  ;;  %v14412_v23 = vld [vmem:[#allocation142_spill] sm:$0xff] }
 0x10f   : > { %v4182_v34 = vrot.slane %v14404_v33, %v9610_v11  ;;  %v3075_v35 = vrot.slane %v3061_v4, %v9610_v11  ;;  %v11741_v36 = vrot.slane %v3760_v44, %v9610_v11  ;;  %v11744_v48 = vrot.slane %v3761_v55, %v9610_v11  ;;  %v11754_v33 = vpop.f32.mrf.mxu1 }
 0x110   : > { %14405 = vst [vmem:[#allocation64_spill] sm:$0xff] %v11733_v52  ;;  %v4189_v20 = vrot.slane %v4175_v47, %v9610_v11  ;;  %v11748_v28 = vrot.slane %v3762_v21, %v9610_v11  ;;  %v3077_v13 = vcombine.low %v14410_v42, %v14409_v15  ;;  %v3078_v4 = vcombine.low %v14412_v23, %v14411_v61  ;;  %v14414_v21 = vld [vmem:[#allocation151_spill] sm:$0xff] }
 0x111   : > { %14407 = vst [vmem:[#allocation72_spill] sm:$0xff] %v11744_v48  ;;  %14413 = vst [vmem:[#allocation148_spill] sm:$0xff] %v11754_v33  ;;  %9143 = vmatmul.mubr.msk.bf16.gmra.mxu0 %vm2358_vm2, %v3759_v54  ;;  %v3076_v44 = vcombine.low %v11733_v52, %v3075_v35  ;;  %v11759_v55 = vrot.slane %v8744_v16, %v9610_v11  ;;  %v3792_v47 = vcombine.low %v11741_v36, %v11744_v48  ;;  %v9036_v35 = vpop.f32.mrf.mxu1  ;;  %v14421_v48 = vld [vmem:[#allocation4_spill] sm:$0xff] }
 0x112   : > { %14408 = vst [vmem:[#allocation244_spill] sm:$0xff] %v11748_v28  ;;  %v3079_v43 = vcombine.low %v14415_v63, %v14414_v21  ;;  %9146 = vmatprep.mubr.msk.bf16.mxu0 %vm9547_vm3, %v14099_v12  ;;  %v3080_v1 = vcombine.low %v14417_v10, %v14416_v19  ;;  %v11770_v33 = vrot.slane %v3077_v13, %v9610_v11  ;;  %v14422_v10 = vld [vmem:[#allocation27_spill] sm:$0xff] }
 0x113   : > { %v11773_v54 = vrot.slane %v3078_v4, %v9610_v11  ;;  %v4190_v16 = vcombine.low %v4182_v34, %v11168_v31  ;;  %v3793_v52 = vcombine.low %v11748_v28, %v11759_v55  ;;  %v3800_v21 = vrot.slane %v3792_v47, %v9610_v11  ;;  %v11796_v47 = vpop.f32.mrf.mxu1 }
 0x114   : > { %14418 = vst [vmem:[#allocation142_spill] sm:$0xff] %v11770_v33  ;;  %v11780_v60 = vrot.slane %v3079_v43, %v9610_v11  ;;  %v14423_v3 = vcombine.low %v14421_v48, %v14422_v10  ;;  %9097 = vmatmul.mubr.msk.bf16.gmra.mxu1 %vm2358_vm2, %v3076_v44  ;;  %v11790_v4 = vrot.slane %v3080_v1, %v9610_v11  ;;  %14425 = vst [vmem:[#allocation153_spill] sm:$0xff] %v11796_v47  ;;  %v14426_v10 = vld [vmem:[#allocation112_spill] sm:$0xff] }
 0x115   : > { %14419 = vst [vmem:[#allocation151_spill] sm:$0xff] %v11773_v54  ;;  %v3109_v31 = vcombine.low %v11770_v33, %v11773_v54  ;;  %v3809_v34 = vcombine.low %v14391_v24, %v14395_v32  ;;  %v4191_v43 = vcombine.low %v11173_v59, %v4189_v20  ;;  %v3807_v35 = vrot.slane %v3793_v52, %v9610_v11  ;;  %v14427_v59 = vld [vmem:[#allocation114_spill] sm:$0xff]  ;;  %v9037_v20 = vpop.f32.mrf.mxu1  ;;  %v14437_v54 = vld [vmem:[#allocation31_spill] sm:$0xff] }
 0x116   : > { %14420 = vst [vmem:[#allocation149_spill] sm:$0xff] %v11780_v60  ;;  %v11786_v13 = vrot.slane %v14423_v3, %v9610_v11  ;;  %14424 = vst [vmem:[#allocation152_spill] sm:$0xff] %v11790_v4  ;;  %9100 = vmatprep.mubr.msk.bf16.mxu1 %vm9547_vm3, %v14099_v12  ;;  %v8745_v1 = vcombine.high %v14391_v24, %v14395_v32  ;;  %v3110_v48 = vcombine.low %v11780_v60, %v11790_v4  ;;  %v14432_v20 = vld [vmem:[#allocation154_spill] sm:$0xff] }
 0x117   : > { %v3117_v44 = vrot.slane %v3109_v31, %v9610_v11  ;;  %v3811_v33 = vcombine.low %v14396_v27, %v14426_v10  ;;  %v3812_v52 = vcombine.low %v14427_v59, %v14410_v42  ;;  %v11814_v47 = vrot.slane %v4190_v16, %v9610_v11  ;;  %v14431_v59 = vld [vmem:[#allocation180_spill] sm:$0xff] }
 0x118   : > { %v3808_v28 = vcombine.low %v3800_v21, %v3807_v35  ;;  %v11817_v3 = vrot.slane %v3809_v34, %v9610_v11  ;;  %v11820_v24 = vrot.slane %v8745_v1, %v9610_v11  ;;  %v11823_v32 = vrot.slane %v3110_v48, %v9610_v11  ;;  %v14433_v1 = vld [vmem:[#allocation28_spill] sm:$0xff]  ;;  %v14434_v48 = vld [vmem:[#allocation29_spill] sm:$0xff]  ;;  %v14436_v35 = vld [vmem:[#allocation30_spill] sm:$0xff] }
 0x119   : > { %v11826_v31 = vrot.slane %v3811_v33, %v9610_v11  ;;  %v11829_v10 = vrot.slane %v3812_v52, %v9610_v11  ;;  %v3126_v16 = vcombine.low %v14432_v20, %v14431_v59  ;;  %v11834_v21 = vrot.slane %v4191_v43, %v9610_v11 }
 0x11a   : > { %14428 = vst [vmem:[#allocation4_spill] sm:$0xff] %v11820_v24  ;;  %14429 = vst [vmem:[#allocation27_spill] sm:$0xff] %v11823_v32  ;;  %9147 = vmatmul.mubr.msk.bf16.gmra.mxu0 %vm2358_vm2, %v3808_v28  ;;  %v3841_v34 = vcombine.low %v11817_v3, %v11820_v24  ;;  %v3858_v33 = vcombine.low %v14409_v15, %v14412_v23  ;;  %v14435_v52 = vcombine.low %v14433_v1, %v14434_v48  ;;  %v14439_v1 = vld [vmem:[#allocation155_spill] sm:$0xff] }
 0x11b   : > { %14430 = vst [vmem:[#allocation112_spill] sm:$0xff] %v11826_v31  ;;  %9150 = vmatprep.mubr.msk.bf16.mxu0 %vm9547_vm3, %v14099_v12  ;;  %v3125_v43 = vcombine.low %v3117_v44, %v11823_v32  ;;  %v3842_v28 = vcombine.low %v11826_v31, %v11829_v10  ;;  %v14438_v23 = vcombine.low %v14436_v35, %v14437_v54 }
 0x11c   : > { %v4803_v4 = vrot.slane %v14435_v52, %v9610_v11  ;;  %v3849_v15 = vrot.slane %v3841_v34, %v9610_v11  ;;  %v3859_v48 = vcombine.low %v14439_v1, %v14415_v63  ;;  %v8746_v52 = vcombine.high %v14411_v61, %v14415_v63 }
 0x11d   : > { %v4810_v42 = vrot.slane %v14438_v23, %v9610_v11  ;;  %9101 = vmatmul.mubr.msk.bf16.gmra.mxu1 %vm2358_vm2, %v3125_v43  ;;  %v3856_v44 = vrot.slane %v3842_v28, %v9610_v11  ;;  %v11866_v32 = vrot.slane %v3126_v16, %v9610_v11  ;;  %v3861_v60 = vcombine.low %v14416_v19, %v14432_v20  ;;  %v11885_v28 = vpop.f32.mrf.mxu0  ;;  %v14444_v23 = vld [vmem:[#allocation33_spill] sm:$0xff] }
 0x11e   : > { %v11871_v54 = vrot.slane %v3858_v33, %v9610_v11  ;;  %9104 = vmatprep.mubr.msk.bf16.mxu1 %vm9547_vm3, %v14099_v12  ;;  %v11876_v34 = vrot.slane %v3859_v48, %v9610_v11  ;;  %v11879_v35 = vrot.slane %v8746_v52, %v9610_v11  ;;  %v8747_v43 = vcombine.high %v14416_v19, %v14432_v20  ;;  %v14443_v33 = vld [vmem:[#allocation32_spill] sm:$0xff]  ;;  %v14456_v52 = vld [vmem:[#allocation62_spill] sm:$0xff] }
 0x11f   : > { %14440 = vst [vmem:[#allocation114_spill] sm:$0xff] %v11866_v32  ;;  %v4206_v16 = vcombine.low %v11814_v47, %v11834_v21  ;;  %v14445_v1 = vcombine.low %v14443_v33, %v14444_v23  ;;  %v3857_v27 = vcombine.low %v3849_v15, %v3856_v44  ;;  %v11892_v48 = vrot.slane %v3861_v60, %v9610_v11  ;;  %v9012_v33 = vpop.f32.mrf.mxu0  ;;  %v14455_v47 = vld [vmem:[#allocation63_spill] sm:$0xff] }
 0x120   : > { %14441 = vst [vmem:[#allocation180_spill] sm:$0xff] %v11876_v34  ;;  %14442 = vst [vmem:[#allocation154_spill] sm:$0xff] %v11879_v35  ;;  %v3890_v19 = vcombine.low %v11871_v54, %v11876_v34  ;;  %v11901_v20 = vrot.slane %v8747_v43, %v9610_v11  ;;  %v4207_v21 = vcombine.low %v10048_v37, %v10060_v51  ;;  %v14507_v34 = vld [vmem:[#allocation206_spill] sm:$0xff] }
 0x121   : > { %v4817_v24 = vrot.slane %v14445_v1, %v9610_v11  ;;  %14446 = vst [vmem:[#allocation28_spill] sm:$0xff] %v11892_v48  ;;  %v3140_v60 = vrot.slane %v11866_v32, %v9610_v11  ;;  %v3891_v15 = vcombine.low %v11879_v35, %v11892_v48  ;;  %v4818_v44 = vcombine.low %v11786_v13, %v4803_v4  ;;  %v11914_v1 = vpop.f32.mrf.mxu0 }
 0x122   : > { %14447 = vst [vmem:[#allocation29_spill] sm:$0xff] %v11901_v20  ;;  %9151 = vmatmul.mubr.msk.bf16.gmra.mxu0 %vm2358_vm2, %v3857_v27  ;;  %v3898_v23 = vrot.slane %v3890_v19, %v9610_v11  ;;  %v8805_v37 = vcombine.low %v11098_v53, %v11098_v53  ;;  %v4214_v13 = vrot.slane %v4207_v21, %v9610_v11 }
 0x123   : > { %9154 = vmatprep.mubr.msk.bf16.mxu0 %vm9547_vm3, %v14099_v12  ;;  %v3905_v51 = vrot.slane %v3891_v15, %v9610_v11  ;;  %v4819_v33 = vcombine.low %v4810_v42, %v4817_v24  ;;  %v11923_v27 = vrot.slane %v4818_v44, %v9610_v11  ;;  %v9013_v4 = vpop.f32.mrf.mxu0  ;;  %v4215_v42 = vcombine.low %v11177_v45, %v11240_v26  ;;  %v14450_v26 = vld [vmem:[#allocation34_spill] sm:$0xff] }
 0x124   : > { %v5854_v53 = vrot.slane %v8805_v37, 2  ;;  %v4216_v24 = vcombine.low %v11243_v7, %v4214_v13  ;;  %v4232_v21 = vcombine.low %v10292_v5, %v10285_v57  ;;  %v3921_v45 = vrot.slane %v11901_v20, %v9610_v11  ;;  %v14449_v5 = vld [vmem:[#allocation57_spill] sm:$0xff]  ;;  %v14452_v13 = vld [vmem:[#allocation58_spill] sm:$0xff] }
 0x125   : > { %9105 = vmatmul.mubr.msk.bf16.gmra.mxu1 %vm2358_vm2, %v3140_v60  ;;  %v11927_v19 = vrot.slane %v4819_v33, %v9610_v11  ;;  %v3906_v43 = vcombine.low %v3898_v23, %v3905_v51  ;;  %v11945_v23 = vrot.slane %v4215_v42, %v9610_v11  ;;  %v14451_v33 = vld [vmem:[#allocation59_spill] sm:$0xff]  ;;  %v14454_v42 = vld [vmem:[#allocation60_spill] sm:$0xff]  ;;  %v4838_v15 = vcombine.low %v14456_v52, %v14455_v47 }
 0x126   : > { %9164 = vmatprep.mubr.msk.bf16.mxu1 %vm9547_vm3, %v14099_v12  ;;  %v5895_v60 = vsel %vm2398_vm0, %v5854_v53, 0  ;;  %v4230_v37 = vrot.slane %v4216_v24, %v9610_v11  ;;  %v4239_v57 = vrot.slane %v4232_v21, %v9610_v11  ;;  %v4836_v4 = vcombine.low %v14452_v13, %v14451_v33  ;;  %v14453_v53 = vld [vmem:[#allocation61_spill] sm:$0xff] }
 0x127   : > { %14448 = vst [vmem:[#allocation30_spill] sm:$0xff] %v11945_v23  ;;  %v4837_v24 = vcombine.low %v14454_v42, %v14453_v53  ;;  %v4291_v33 = vcombine.low %v11445_v38, %v11451_v41  ;;  %v7120_v52 = vcombine.low %v11379_v17, %v11442_v49  ;;  %v14460_v41 = vld [vmem:[#allocation96_spill] sm:$0xff]  ;;  %v14465_v53 = vld [vmem:[#allocation97_spill] sm:$0xff] }
 0x128   : > { %v11942_v44 = vpop.f32.mrf.mxu1  ;;  %v14466_v42 = vld [vmem:[#allocation100_spill] sm:$0xff] }
 0x129   : > { %v4859_v47 = vrot.slane %v4837_v24, %v9610_v11  ;;  %v11988_v13 = vrot.slane %v4291_v33, %v9610_v11  ;;  %v14467_v24 = vld [vmem:[#allocation99_spill] sm:$0xff] }
 0x12a   : > { %9155 = vmatmul.mubr.msk.bf16.gmra.mxu0 %vm2358_vm2, %v3906_v43  ;;  %v4835_v43 = vcombine.low %v14450_v26, %v14449_v5  ;;  %v9040_v51 = vpop.f32.mrf.mxu1  ;;  %v4240_v5 = vcombine.low %v11249_v18, %v11305_v50  ;;  %v4241_v26 = vcombine.low %v4239_v57, %v11312_v29  ;;  %v14458_v50 = vld [vmem:[#allocation94_spill] sm:$0xff]  ;;  %v14459_v18 = vld [vmem:[#allocation65_spill] sm:$0xff] }
 0x12b   : > { %9158 = vmatprep.mubr.msk.bf16.mxu0 %vm9547_vm3, %v14099_v12  ;;  %v4884_v57 = vcombine.low %v14459_v18, %v14458_v50  ;;  %14462 = vst [vmem:[#allocation155_spill] sm:$0xff] %v11988_v13  ;;  %v14566_v29 = vld [vmem:[#allocation162_spill] sm:$0xff] }
 0x12c   : > { %v11964_v21 = vpop.f32.mrf.mxu1  ;;  %v4845_v51 = vrot.slane %v4835_v43, %v9610_v11  ;;  %v14461_v43 = vld [vmem:[#allocation95_spill] sm:$0xff]  ;;  %v12004_v50 = vrot.slane %v4240_v5, %v9610_v11  ;;  %v4255_v33 = vrot.slane %v4241_v26, %v9610_v11 }
 0x12d   : > { %9165 = vmatmul.mubr.msk.bf16.vlgmr.msra.gmra.mxu1 %vm2358_vm2, %v4206_v16  ;;  %v4257_v16 = vcombine.low %v10529_v0, %v14299_v62  ;;  %14457 = vst [vmem:[#allocation31_spill] sm:$0xff] %v11964_v21  ;;  %v4852_v62 = vrot.slane %v4836_v4, %v9610_v11  ;;  %v4885_v49 = vcombine.low %v14461_v43, %v14460_v41  ;;  %v14464_v4 = vld [vmem:[#allocation98_spill] sm:$0xff] }
 0x12e   : > { %9271 = vmatpush3.bf16.msra.mxu1 %v5895_v60  ;;  %9168 = vmatprep.mubr.msk.bf16.mxu1 %vm9547_vm3, %v14099_v12  ;;  %v4231_v60 = vcombine.low %v11945_v23, %v4230_v37  ;;  %v9041_v0 = vpop.f32.mrf.mxu1  ;;  %v4866_v37 = vrot.slane %v4838_v15, %v9610_v11  ;;  %v4886_v15 = vcombine.low %v14465_v53, %v14464_v4 }
 0x12f   : > { %9378 = vmatprep.subr.bf16.mxu1 %v14099_v12  ;;  %v4264_v38 = vrot.slane %v4257_v16, %v9610_v11  ;;  %v4887_v0 = vcombine.low %v14467_v24, %v14466_v42  ;;  %v12001_v16 = vld [vmem:[%s13668_s1 + $0xc] sm:$0xf]  ;;  %14468 = vst [vmem:[#allocation33_spill] sm:$0xff] %v12004_v50  ;;  %v4867_v18 = vcombine.low %v4845_v51, %v4852_v62 }
 0x130   : > { %v4868_v41 = vcombine.low %v4859_v47, %v4866_v37  ;;  %v4316_v43 = vcombine.low %v11517_v56, %v11520_v22  ;;  %v4894_v5 = vrot.slane %v4884_v57, %v9610_v11  ;;  %v4901_v26 = vrot.slane %v4885_v49, %v9610_v11  ;;  %v14473_v24 = vld [vmem:[#allocation135_spill] sm:$0xff] }
 0x131   : > { %v4266_v4 = vcombine.low %v4264_v38, %v11376_v9  ;;  %v7129_v53 = vcombine.low %v11454_v40, %v11509_v2  ;;  %v6398_v42 = vsel %vm2398_vm0, %v12001_v16, 0  ;;  %v4908_v51 = vrot.slane %v4886_v15, %v9610_v11 }
 0x132   : > { %9159 = vmatmul.mubr.msk.bf16.gmra.mxu0 %vm2358_vm2, %v3921_v45  ;;  %v11991_v45 = vrot.slane %v7120_v52, %v9610_v11  ;;  %v4915_v62 = vrot.slane %v4887_v0, %v9610_v11  ;;  %v4256_v56 = vcombine.low %v12004_v50, %v4255_v33  ;;  %v14471_v2 = vcombine.low %v11923_v27, %v11927_v19  ;;  %v14474_v0 = vld [vmem:[#allocation101_spill] sm:$0xff]  ;;  %v14486_v27 = vld [vmem:[#allocation195_spill] sm:$0xff] }
 0x133   : > { %9218 = vmatprep.mubr.msk.bf16.mxu0 %vm9547_vm3, %v14099_v12  ;;  %v12033_v47 = vrot.slane %v7129_v53, %v9610_v11  ;;  %v4875_v37 = vrot.slane %v4867_v18, %v9610_v11  ;;  %v4882_v57 = vrot.slane %v4868_v41, %v9610_v11  ;;  %v4280_v38 = vrot.slane %v4266_v4, %v9610_v11  ;;  %v14535_v50 = vld [vmem:[#allocation115_spill] sm:$0xff] }
 0x134   : > { %14463 = vst [vmem:[#allocation32_spill] sm:$0xff] %v11991_v45  ;;  %v4916_v49 = vcombine.low %v4894_v5, %v4901_v26  ;;  %v4917_v19 = vcombine.low %v4908_v51, %v4915_v62  ;;  %v4933_v33 = vcombine.low %v14474_v0, %v14473_v24  ;;  %v4332_v18 = vcombine.low %v10977_v8, %v14338_v6  ;;  %v14477_v5 = vld [vmem:[#allocation139_spill] sm:$0xff]  ;;  %v14478_v26 = vld [vmem:[#allocation138_spill] sm:$0xff]  ;;  %v14483_v8 = vld [vmem:[#allocation141_spill] sm:$0xff] }
 0x135   : > { %9169 = vmatmul.mubr.msk.bf16.gmra.mxu1 %vm2358_vm2, %v4231_v60  ;;  %v4265_v60 = vcombine.low %v11320_v39, %v11367_v14  ;;  %v4282_v14 = vcombine.low %v14306_v46, %v14314_v30  ;;  %v12026_v22 = vpop.f32.mrf.mxu0  ;;  %v12030_v39 = vrot.slane %v4316_v43, %v9610_v11  ;;  %14470 = vst [vmem:[#allocation34_spill] sm:$0xff] %v12033_v47  ;;  %v14476_v43 = vld [vmem:[#allocation136_spill] sm:$0xff]  ;;  %v14480_v51 = vld [vmem:[#allocation235_spill] sm:$0xff] }
 0x136   : > { %9172 = vmatprep.mubr.msk.bf16.mxu1 %vm9547_vm3, %v14099_v12  ;;  %v4935_v53 = vcombine.low %v14478_v26, %v14477_v5  ;;  %v4883_v24 = vcombine.low %v4875_v37, %v4882_v57  ;;  %v14484_v6 = vld [vmem:[#allocation140_spill] sm:$0xff]  ;;  %v4924_v37 = vrot.slane %v4916_v49, %v9610_v11  ;;  %v4931_v57 = vrot.slane %v4917_v19, %v9610_v11  ;;  %v14489_v19 = vld [vmem:[#allocation173_spill] sm:$0xff] }
 0x137   : > { %14469 = vst [vmem:[#allocation57_spill] sm:$0xff] %v12030_v39  ;;  %v12042_v46 = vrot.slane %v4265_v60, %v9610_v11  ;;  %v9016_v30 = vpop.f32.mrf.mxu0  ;;  %v4289_v15 = vrot.slane %v4282_v14, %v9610_v11  ;;  %v14475_v60 = vld [vmem:[#allocation137_spill] sm:$0xff]  ;;  %v14481_v14 = vld [vmem:[#allocation10_spill] sm:$0xff]  ;;  %v4936_v0 = vcombine.low %v14484_v6, %v14483_v8  ;;  %v14490_v8 = vld [vmem:[#allocation143_spill] sm:$0xff] }
 0x138   : > { %v4934_v4 = vcombine.low %v14476_v43, %v14475_v60  ;;  %v4339_v60 = vrot.slane %v4332_v18, %v9610_v11  ;;  %v14494_v6 = vld [vmem:[#allocation176_spill] sm:$0xff] }
 0x139   : > { %14472 = vst [vmem:[#allocation59_spill] sm:$0xff] %v12042_v46  ;;  %v12054_v41 = vpop.f32.mrf.mxu0  ;;  %v4281_v5 = vcombine.low %v12042_v46, %v4280_v38  ;;  %v4957_v38 = vrot.slane %v4935_v53, %v9610_v11 }
 0x13a   : > { %9219 = vmatmul.mubr.msk.bf16.vlgmr.msra.gmra.mxu0 %vm2358_vm2, %v14471_v2  ;;  %v14482_v2 = vld [vmem:[#allocation35_spill] sm:$0xff]  ;;  %v4950_v18 = vrot.slane %v4934_v4, %v9610_v11  ;;  %v14492_v4 = vld [vmem:[#allocation174_spill] sm:$0xff] }
 0x13b   : > { %9325 = vmatpush3.bf16.msra.mxu0 %v6398_v42  ;;  %9222 = vmatprep.mubr.msk.bf16.mxu0 %vm9547_vm3, %v14099_v12  ;;  %v14479_v42 = vld [vmem:[#allocation236_spill] sm:$0xff]  ;;  %v7138_v30 = vcombine.low %v14482_v2, %v14481_v14  ;;  %v9017_v43 = vpop.f32.mrf.mxu0  ;;  %v4340_v2 = vcombine.low %v4339_v60, %v14481_v14  ;;  %v14493_v14 = vld [vmem:[#allocation177_spill] sm:$0xff]  ;;  %v14496_v60 = vld [vmem:[#allocation178_spill] sm:$0xff] }
 0x13c   : > { %9432 = vmatprep.subr.bf16.mxu0 %v14099_v12  ;;  %v4341_v62 = vcombine.low %v14480_v51, %v14479_v42  ;;  %v4290_v51 = vcombine.low %v11379_v17, %v4289_v15  ;;  %v4982_v17 = vcombine.low %v14490_v8, %v14489_v19  ;;  %v14497_v43 = vld [vmem:[#allocation193_spill] sm:$0xff] }
 0x13d   : > { %9173 = vmatmul.mubr.msk.bf16.gmra.mxu1 %vm2358_vm2, %v4256_v56  ;;  %v14485_v56 = vld [vmem:[#allocation196_spill] sm:$0xff]  ;;  %v12078_v42 = vrot.slane %v7138_v30, %v9610_v11  ;;  %v4964_v30 = vrot.slane %v4936_v0, %v9610_v11  ;;  %v12095_v15 = vrot.slane %v4340_v2, %v9610_v11  ;;  %v14498_v19 = vld [vmem:[#allocation189_spill] sm:$0xff]  ;;  %v4932_v2 = vcombine.low %v4924_v37, %v4931_v57  ;;  %v14500_v57 = vld [vmem:[#allocation102_spill] sm:$0xff] }
 0x13e   : > { %9176 = vmatprep.mubr.msk.bf16.mxu1 %vm9547_vm3, %v14099_v12  ;;  %v4307_v52 = vcombine.low %v14486_v27, %v14485_v56  ;;  %v12075_v26 = vrot.slane %v4341_v62, %v9610_v11  ;;  %v4943_v27 = vrot.slane %v4933_v33, %v9610_v11  ;;  %v14491_v33 = vld [vmem:[#allocation175_spill] sm:$0xff]  ;;  %v4984_v56 = vcombine.low %v14494_v6, %v14493_v14 }
 0x13f   : > { %14488 = vst [vmem:[#allocation61_spill] sm:$0xff] %v12078_v42  ;;  %v4983_v53 = vcombine.low %v14492_v4, %v14491_v33  ;;  %v5326_v8 = vcombine.low %v14498_v19, %v14497_v43  ;;  %v4298_v62 = vrot.slane %v4290_v51, %v9610_v11  ;;  %v4966_v4 = vcombine.low %v4957_v38, %v4964_v30  ;;  %v14501_v38 = vld [vmem:[#allocation204_spill] sm:$0xff]  ;;  %v14502_v30 = vld [vmem:[#allocation182_spill] sm:$0xff]  ;;  %v14510_v42 = vld [vmem:[#allocation207_spill] sm:$0xff] }
 0x140   : > { %14487 = vst [vmem:[#allocation58_spill] sm:$0xff] %v12075_v26  ;;  %v4314_v49 = vrot.slane %v4307_v52, %v9610_v11  ;;  %v4965_v20 = vcombine.low %v4943_v27, %v4950_v18  ;;  %v4992_v6 = vrot.slane %v4982_v17, %v9610_v11  ;;  %v4398_v51 = vcombine.low %v14500_v57, %v11741_v36  ;;  %v12125_v18 = vld.sshfl [vmem:[%s9606_s21 + $0x74] sm:$0x33 pattern:$0x75316420]  ;;  %v14504_v17 = vld [vmem:[#allocation201_spill] sm:$0xff] }
 0x141   : > { %v12111_v33 = vpop.f32.mrf.mxu1  ;;  %v14508_v36 = vld [vmem:[#allocation205_spill] sm:$0xff] }
 0x142   : > { %9223 = vmatmul.mubr.msk.bf16.gmra.mxu0 %vm2358_vm2, %v4883_v24  ;;  %v14495_v24 = vld [vmem:[#allocation179_spill] sm:$0xff]  ;;  %14499 = vst [vmem:[#allocation60_spill] sm:$0xff] %v12111_v33  ;;  %v4315_v14 = vcombine.low %v11454_v40, %v4314_v49  ;;  %v5031_v40 = vcombine.low %v14502_v30, %v14501_v38  ;;  %v14503_v49 = vld [vmem:[#allocation202_spill] sm:$0xff]  ;;  %v5033_v57 = vcombine.low %v14508_v36, %v14507_v34 }
 0x143   : > { %9226 = vmatprep.mubr.msk.bf16.mxu0 %vm9547_vm3, %v14099_v12  ;;  %v4985_v0 = vcombine.low %v14496_v60, %v14495_v24  ;;  %v4390_v24 = vcombine.low %v14376_v25, %v14379_v58  ;;  %v4999_v60 = vrot.slane %v4983_v53, %v9610_v11  ;;  %v9044_v27 = vpop.f32.mrf.mxu1  ;;  %v5032_v19 = vcombine.low %v14504_v17, %v14503_v49  ;;  %v14505_v25 = vld [vmem:[#allocation244_spill] sm:$0xff] }
 0x144   : > { %v14506_v53 = vld [vmem:[#allocation72_spill] sm:$0xff]  ;;  %v4980_v38 = vrot.slane %v4966_v4, %v9610_v11  ;;  %v12146_v30 = vrot.slane %v4398_v51, %v9610_v11  ;;  %v12153_v34 = vrot.slane %v12125_v18, %v9610_v11  ;;  %v5041_v49 = vrot.slane %v5031_v40, %v9610_v11  ;;  %v14519_v40 = vld [vmem:[#allocation9_spill] sm:$0xff] }
 0x145   : > { %9177 = vmatmul.mubr.msk.bf16.gmra.mxu1 %vm2358_vm2, %v4281_v5  ;;  %v5006_v5 = vrot.slane %v4984_v56, %v9610_v11  ;;  %v5013_v37 = vrot.slane %v4985_v0, %v9610_v11  ;;  %v4397_v58 = vrot.slane %v4390_v24, %v9610_v11  ;;  %v7164_v52 = vcombine.low %v14506_v53, %v14505_v25  ;;  %v14509_v27 = vld [vmem:[#allocation208_spill] sm:$0xff]  ;;  %v12140_v45 = vpop.f32.mrf.mxu1  ;;  %v14516_v25 = vld [vmem:[#allocation187_spill] sm:$0xff] }
 0x146   : > { %9180 = vmatprep.mubr.msk.bf16.mxu1 %vm9547_vm3, %v14099_v12  ;;  %v4306_v56 = vcombine.low %v4298_v62, %v11988_v13  ;;  %v4973_v0 = vrot.slane %v4965_v20, %v9610_v11  ;;  %v5034_v47 = vcombine.low %v14510_v42, %v14509_v27  ;;  %14511 = vst [vmem:[#allocation63_spill] sm:$0xff] %v12140_v45  ;;  %14512 = vst [vmem:[#allocation62_spill] sm:$0xff] %v12146_v30  ;;  %v14531_v27 = vld [vmem:[#allocation82_spill] sm:$0xff]  ;;  %v14532_v13 = vld [vmem:[#allocation83_spill] sm:$0xff] }
 0x147   : > { %v4399_v24 = vcombine.low %v14506_v53, %v4397_v58  ;;  %v12149_v62 = vrot.slane %v7164_v52, %v9610_v11  ;;  %14514 = vst [vmem:[#allocation65_spill] sm:$0xff] %v12153_v34  ;;  %v4323_v20 = vrot.slane %v4315_v14, %v9610_v11  ;;  %v5014_v42 = vcombine.low %v4992_v6, %v4999_v60  ;;  %v9045_v4 = vpop.f32.mrf.mxu1  ;;  %v14515_v58 = vld [vmem:[#allocation163_spill] sm:$0xff]  ;;  %v14528_v52 = vld [vmem:[#allocation80_spill] sm:$0xff] }
 0x148   : > { %v5048_v51 = vrot.slane %v5032_v19, %v9610_v11  ;;  %v14517_v53 = vcombine.low %v14515_v58, %v14516_v25  ;;  %v12172_v14 = vrot.slane %v5326_v8, %v9610_v11  ;;  %v5055_v6 = vrot.slane %v5033_v57, %v9610_v11  ;;  %v14521_v8 = vld [vmem:[#allocation77_spill] sm:$0xff]  ;;  %v14524_v25 = vld [vmem:[#allocation40_spill] sm:$0xff] }
 0x149   : > { %14513 = vst [vmem:[#allocation94_spill] sm:$0xff] %v12149_v62  ;;  %v12161_v17 = vrot.slane %v4399_v24, %v9610_v11  ;;  %v5062_v60 = vrot.slane %v5034_v47, %v9610_v11  ;;  %v14520_v24 = vld [vmem:[#allocation51_spill] sm:$0xff]  ;;  %v14525_v47 = vld [vmem:[#allocation78_spill] sm:$0xff]  ;;  %v14529_v62 = vld [vmem:[#allocation81_spill] sm:$0xff]  ;;  %v14533_v46 = vcombine.low %v14531_v27, %v14532_v13 }
 0x14a   : > { %9227 = vmatmul.mubr.msk.bf16.gmra.mxu0 %vm2358_vm2, %v4932_v2  ;;  %v5015_v2 = vcombine.low %v5006_v5, %v5013_v37  ;;  %v12169_v36 = vrot.slane %v14517_v53, %v9610_v11  ;;  %v4981_v5 = vcombine.low %v4973_v0, %v4980_v38  ;;  %v14518_v37 = vld [vmem:[#allocation13_spill] sm:$0xff]  ;;  %v14522_v4 = vcombine.low %v14520_v24, %v14521_v8  ;;  %v14526_v0 = vld [vmem:[#allocation79_spill] sm:$0xff] }
 0x14b   : > { %9230 = vmatprep.mubr.msk.bf16.mxu0 %vm9547_vm3, %v14099_v12  ;;  %v4357_v19 = vcombine.low %v14519_v40, %v14518_v37  ;;  %v14527_v38 = vcombine.low %v14525_v47, %v14526_v0  ;;  %v14530_v37 = vcombine.low %v14528_v52, %v14529_v62  ;;  %v5209_v9 = vrot.slane %v14533_v46, %v9610_v11  ;;  %v14537_v46 = vld [vmem:[#allocation15_spill] sm:$0xff]  ;;  %v14538_v27 = vld [vmem:[#allocation209_spill] sm:$0xff] }
 0x14c   : > { %v5188_v58 = vrot.slane %v14522_v4, %v9610_v11  ;;  %v4331_v24 = vcombine.low %v4323_v20, %v12030_v39  ;;  %v5022_v8 = vrot.slane %v5014_v42, %v9610_v11  ;;  %v5029_v4 = vrot.slane %v5015_v2, %v9610_v11  ;;  %v14539_v42 = vld [vmem:[#allocation116_spill] sm:$0xff] }
 0x14d   : > { %9181 = vmatmul.mubr.msk.bf16.gmra.mxu1 %vm2358_vm2, %v4306_v56  ;;  %v14523_v56 = vld [vmem:[#allocation38_spill] sm:$0xff]  ;;  %v5195_v53 = vrot.slane %v14527_v38, %v9610_v11  ;;  %v5202_v40 = vrot.slane %v14530_v37, %v9610_v11  ;;  %v14534_v38 = vld [vmem:[#allocation84_spill] sm:$0xff]  ;;  %v4365_v13 = vrot.slane %v4357_v19, %v9610_v11  ;;  %v5080_v20 = vcombine.low %v14538_v27, %v14537_v46  ;;  %v14540_v37 = vld [vmem:[#allocation117_spill] sm:$0xff] }
 0x14e   : > { %9184 = vmatprep.mubr.msk.bf16.mxu1 %vm9547_vm3, %v14099_v12  ;;  %v4358_v57 = vcombine.low %v14524_v25, %v14523_v56  ;;  %v5063_v56 = vcombine.low %v5041_v49, %v5048_v51  ;;  %v5064_v25 = vcombine.low %v5055_v6, %v5062_v60  ;;  %v14536_v62 = vcombine.low %v14534_v38, %v14535_v50  ;;  %v14542_v51 = vld [vmem:[#allocation118_spill] sm:$0xff]  ;;  %v14548_v27 = vld [vmem:[#allocation17_spill] sm:$0xff] }
 0x14f   : > { %v5210_v47 = vcombine.low %v5188_v58, %v5195_v53  ;;  %v5211_v0 = vcombine.low %v5202_v40, %v5209_v9  ;;  %v14541_v2 = vcombine.low %v14539_v42, %v14540_v37  ;;  %v14543_v9 = vld [vmem:[#allocation119_spill] sm:$0xff]  ;;  %v14545_v53 = vld [vmem:[#allocation120_spill] sm:$0xff]  ;;  %v14546_v40 = vld [vmem:[#allocation121_spill] sm:$0xff]  ;;  %v5030_v46 = vcombine.low %v5022_v8, %v5029_v4 }
 0x150   : > { %v5237_v52 = vrot.slane %v14536_v62, %v9610_v11  ;;  %v14544_v6 = vcombine.low %v14542_v51, %v14543_v9  ;;  %v4372_v50 = vrot.slane %v4358_v57, %v9610_v11  ;;  %v14547_v38 = vcombine.low %v14545_v53, %v14546_v40  ;;  %v14549_v42 = vld [vmem:[#allocation16_spill] sm:$0xff]  ;;  %v14551_v51 = vld [vmem:[#allocation18_spill] sm:$0xff] }
 0x151   : > { %v5244_v49 = vrot.slane %v14541_v2, %v9610_v11  ;;  %v12226_v19 = vrot.slane %v5210_v47, %v9610_v11  ;;  %v12229_v58 = vrot.slane %v5211_v0, %v9610_v11  ;;  %v5081_v37 = vcombine.low %v14549_v42, %v14548_v27  ;;  %v14550_v2 = vld [vmem:[#allocation19_spill] sm:$0xff]  ;;  %v14553_v0 = vld [vmem:[#allocation20_spill] sm:$0xff] }
 0x152   : > { %9231 = vmatmul.mubr.msk.bf16.gmra.mxu0 %vm2358_vm2, %v4981_v5  ;;  %v5251_v60 = vrot.slane %v14544_v6, %v9610_v11  ;;  %v12223_v5 = vpop.f32.mrf.mxu0  ;;  %v5258_v62 = vrot.slane %v14547_v38, %v9610_v11  ;;  %v5082_v57 = vcombine.low %v14551_v51, %v14550_v2  ;;  %v5071_v47 = vrot.slane %v5063_v56, %v9610_v11  ;;  %v14552_v6 = vld [vmem:[#allocation21_spill] sm:$0xff]  ;;  %v14554_v4 = vld [vmem:[#allocation68_spill] sm:$0xff]  ;;  %v14558_v42 = vld [vmem:[#allocation239_spill] sm:$0xff] }
 0x153   : > { %9234 = vmatprep.mubr.msk.bf16.mxu0 %vm9547_vm3, %v14099_v12  ;;  %v5259_v9 = vcombine.low %v5237_v52, %v5244_v49  ;;  %v5083_v39 = vcombine.low %v14553_v0, %v14552_v6  ;;  %v5078_v8 = vrot.slane %v5064_v25, %v9610_v11  ;;  %v4373_v38 = vcombine.low %v4365_v13, %v14554_v4  ;;  %v14556_v56 = vld [vmem:[#allocation156_spill] sm:$0xff]  ;;  %v14559_v25 = vld [vmem:[#allocation157_spill] sm:$0xff]  ;;  %v14560_v13 = vld [vmem:[#allocation158_spill] sm:$0xff] }
 0x154   : > { %v9020_v53 = vpop.f32.mrf.mxu0  ;;  %v5260_v40 = vcombine.low %v5251_v60, %v5258_v62  ;;  %v4374_v2 = vcombine.low %v14558_v42, %v4372_v50  ;;  %v5090_v51 = vrot.slane %v5080_v20, %v9610_v11  ;;  %v14561_v6 = vcombine.low %v14559_v25, %v14560_v13  ;;  %v14565_v20 = vld [vmem:[#allocation161_spill] sm:$0xff] }
 0x155   : > { %9185 = vmatmul.mubr.msk.bf16.gmra.mxu1 %vm2358_vm2, %v4331_v24  ;;  %v12250_v52 = vrot.slane %v5259_v9, %v9610_v11  ;;  %v14555_v24 = vld [vmem:[#allocation122_spill] sm:$0xff]  ;;  %v5097_v0 = vrot.slane %v5081_v37, %v9610_v11  ;;  %v5104_v53 = vrot.slane %v5082_v57, %v9610_v11  ;;  %v14567_v23 = vcombine.low %v14565_v20, %v14566_v29 }
 0x156   : > { %9188 = vmatprep.mubr.msk.bf16.mxu1 %vm9547_vm3, %v14099_v12  ;;  %v14557_v49 = vcombine.low %v14555_v24, %v14556_v56  ;;  %v12258_v60 = vpop.f32.mrf.mxu0  ;;  %v12261_v62 = vrot.slane %v5260_v40, %v9610_v11  ;;  %v5293_v9 = vrot.slane %v14561_v6, %v9610_v11  ;;  %v14562_v24 = vld [vmem:[#allocation159_spill] sm:$0xff]  ;;  %v14563_v56 = vld [vmem:[#allocation160_spill] sm:$0xff]  ;;  %v5111_v7 = vrot.slane %v5083_v39, %v9610_v11 }
 0x157   : > { %v14564_v50 = vcombine.low %v14562_v24, %v14563_v56  ;;  %v5307_v40 = vrot.slane %v14567_v23, %v9610_v11  ;;  %v4158_v37 = vcombine.high %v12125_v18, %v12125_v18  ;;  %v4381_v57 = vrot.slane %v4373_v38, %v9610_v11  ;;  %v14577_v18 = vld [vmem:[#allocation49_spill] sm:$0xff] }
 0x158   : > { %v5286_v27 = vrot.slane %v14557_v49, %v9610_v11  ;;  %v9021_v45 = vpop.f32.mrf.mxu0  ;;  %v12286_v24 = vcombine.high %v12153_v34, %v12153_v34  ;;  %v4762_v29 = vshrl.u32 %v12153_v34, 16  ;;  %v4388_v23 = vrot.slane %v4374_v2, %v9610_v11 }
 0x159   : > { %v5300_v49 = vrot.slane %v14564_v50, %v9610_v11  ;;  %v12296_v39 = vrot.slane %v4158_v37, %v9610_v11  ;;  %v5112_v38 = vcombine.low %v5090_v51, %v5097_v0  ;;  %v14569_v56 = vcombine.low %v12095_v15, %v12075_v26  ;;  %v14570_v50 = vld [vmem:[#allocation44_spill] sm:$0xff]  ;;  %v14575_v51 = vld [vmem:[#allocation47_spill] sm:$0xff] }
 0x15a   : > { %v5308_v13 = vcombine.low %v5286_v27, %v5293_v9  ;;  %9235 = vmatmul.mubr.msk.bf16.gmra.mxu0 %vm2358_vm2, %v5030_v46  ;;  %v5079_v46 = vcombine.low %v5071_v47, %v5078_v8  ;;  %v4775_v9 = vshll.u32 %v12286_v24, 16  ;;  %v5113_v2 = vcombine.low %v5104_v53, %v5111_v7  ;;  %v14574_v8 = vld [vmem:[#allocation48_spill] sm:$0xff] }
 0x15b   : > { %v5309_v6 = vcombine.low %v5300_v49, %v5307_v40  ;;  %9238 = vmatprep.mubr.msk.bf16.mxu0 %vm9547_vm3, %v14099_v12  ;;  %14568 = vst [vmem:[#allocation96_spill] sm:$0xff] %v12296_v39  ;;  %v14571_v49 = vld [vmem:[#allocation22_spill] sm:$0xff]  ;;  %v4767_v47 = vshll.u32 %v12296_v39, 16  ;;  %v5131_v0 = vcombine.low %v14575_v51, %v14574_v8  ;;  %v4770_v53 = vshrl.u32 %v12296_v39, 16 }
 0x15c   : > { %v12293_v45 = vrot.slane %v5308_v13, %v9610_v11  ;;  %v5129_v20 = vcombine.low %v14571_v49, %v14570_v50  ;;  %v14572_v40 = vld [vmem:[#allocation46_spill] sm:$0xff]  ;;  %v14573_v13 = vld [vmem:[#allocation45_spill] sm:$0xff]  ;;  %v12322_v50 = vpop.f32.mrf.mxu1  ;;  %v5120_v49 = vrot.slane %v5112_v38, %v9610_v11  ;;  %v5127_v8 = vrot.slane %v5113_v2, %v9610_v11 }
 0x15d   : > { %v12301_v27 = vrot.slane %v5309_v6, %v9610_v11  ;;  %9189 = vmatmul.mubr.msk.bf16.gmra.mxu1 %vm2358_vm2, %v14569_v56  ;;  %v5130_v37 = vcombine.low %v14573_v13, %v14572_v40  ;;  %v14576_v6 = vld [vmem:[#allocation50_spill] sm:$0xff]  ;;  %v4389_v56 = vcombine.low %v4381_v57, %v4388_v23  ;;  %14578 = vst [vmem:[#allocation95_spill] sm:$0xff] %v12322_v50  ;;  %v14579_v40 = vld [vmem:[#allocation108_spill] sm:$0xff]  ;;  %v14580_v13 = vld [vmem:[#allocation107_spill] sm:$0xff] }
 0x15e   : > { %9192 = vmatprep.mubr.msk.bf16.mxu1 %vm9547_vm3, %v14099_v12  ;;  %v5132_v15 = vcombine.low %v14577_v18, %v14576_v6  ;;  %v4415_v25 = vcombine.low %v14580_v13, %v14579_v40  ;;  %v12329_v32 = vsel %vm9642_vm1, %v4762_v29, %v4767_v47  ;;  %v12333_v18 = vsel %vm9642_vm1, %v4770_v53, %v4775_v9  ;;  %v9048_v23 = vpop.f32.mrf.mxu1  ;;  %v14582_v47 = vld [vmem:[#allocation216_spill] sm:$0xff]  ;;  %v14583_v9 = vld [vmem:[#allocation221_spill] sm:$0xff]  ;;  %v14585_v2 = vld [vmem:[#allocation222_spill] sm:$0xff] }
 0x15f   : > { %v5139_v51 = vrot.slane %v5129_v20, %v9610_v11  ;;  %v5146_v57 = vrot.slane %v5130_v37, %v9610_v11  ;;  %v5153_v6 = vrot.slane %v5131_v0, %v9610_v11  ;;  %v14584_v53 = vcombine.low %v14582_v47, %v14583_v9  ;;  %v14586_v20 = vld [vmem:[#allocation223_spill] sm:$0xff]  ;;  %v14589_v23 = vld [vmem:[#allocation130_spill] sm:$0xff]  ;;  %v14590_v47 = vld [vmem:[#allocation132_spill] sm:$0xff] }
 0x160   : > { %v5160_v29 = vrot.slane %v5132_v15, %v9610_v11  ;;  %v14587_v37 = vcombine.low %v14585_v2, %v14586_v20  ;;  %v4422_v0 = vrot.slane %v4415_v25, %v9610_v11  ;;  %v14591_v9 = vcombine.low %v14589_v23, %v14590_v47  ;;  %v14592_v20 = vld [vmem:[#allocation92_spill] sm:$0xff]  ;;  %v14595_v25 = vld [vmem:[#allocation171_spill] sm:$0xff] }
 0x161   : > { %v12347_v40 = vrot.slane %v14584_v53, %v9610_v11  ;;  %v5128_v33 = vcombine.low %v5120_v49, %v5127_v8  ;;  %v5161_v23 = vcombine.low %v5139_v51, %v5146_v57  ;;  %v14601_v8 = vld [vmem:[#allocation234_spill] sm:$0xff]  ;;  %v14602_v51 = vld [vmem:[#allocation37_spill] sm:$0xff] }
 0x162   : > { %9239 = vmatmul.mubr.msk.bf16.gmra.mxu0 %vm2358_vm2, %v5079_v46  ;;  %v12353_v13 = vrot.slane %v14587_v37, %v9610_v11  ;;  %v12357_v46 = vpop.f32.mrf.mxu1  ;;  %v12366_v53 = vrot.slane %v14591_v9, %v9610_v11  ;;  %v14593_v37 = vld [vmem:[#allocation169_spill] sm:$0xff]  ;;  %v5162_v47 = vcombine.low %v5153_v6, %v5160_v29  ;;  %v14599_v9 = vld [vmem:[#allocation230_spill] sm:$0xff]  ;;  %v14603_v57 = vcombine.low %v14601_v8, %v14602_v51  ;;  %v14604_v29 = vld [vmem:[#allocation36_spill] sm:$0xff] }
 0x163   : > { %9242 = vmatprep.mubr.msk.bf16.mxu0 %vm9547_vm3, %v14099_v12  ;;  %14588 = vst [vmem:[#allocation98_spill] sm:$0xff] %v12357_v46  ;;  %v14594_v38 = vcombine.low %v14592_v20, %v14593_v37  ;;  %v14596_v46 = vld [vmem:[#allocation199_spill] sm:$0xff]  ;;  %v4424_v20 = vcombine.low %v4422_v0, %v11826_v31  ;;  %v5169_v0 = vrot.slane %v5161_v23, %v9610_v11  ;;  %v14610_v8 = vld [vmem:[#allocation66_spill] sm:$0xff] }
 0x164   : > { %v9049_v2 = vpop.f32.mrf.mxu1  ;;  %v14597_v50 = vcombine.low %v14595_v25, %v14596_v46  ;;  %v12400_v6 = vrot.slane %v14603_v57, %v9610_v11  ;;  %v14605_v46 = vld [vmem:[#allocation39_spill] sm:$0xff]  ;;  %v14611_v51 = vld [vmem:[#allocation74_spill] sm:$0xff] }
 0x165   : > { %9193 = vmatmul.mubr.msk.bf16.gmra.mxu1 %vm2358_vm2, %v4389_v56  ;;  %v12373_v7 = vrot.slane %v14594_v38, %v9610_v11  ;;  %v14598_v56 = vld [vmem:[#allocation200_spill] sm:$0xff]  ;;  %v14606_v37 = vcombine.low %v14604_v29, %v14605_v46  ;;  %v14612_v57 = vcombine.low %v14610_v8, %v14611_v51  ;;  %v14613_v23 = vld [vmem:[#allocation71_spill] sm:$0xff]  ;;  %v14620_v8 = vcombine.low %v11759_v55, %v11817_v3 }
 0x166   : > { %v12379_v15 = vrot.slane %v14597_v50, %v9610_v11  ;;  %9196 = vmatprep.mubr.msk.bf16.mxu1 %vm9547_vm3, %v14099_v12  ;;  %v14600_v2 = vcombine.low %v14598_v56, %v14599_v9  ;;  %v4440_v50 = vcombine.low %v14411_v61, %v14415_v63  ;;  %v5176_v63 = vrot.slane %v5162_v47, %v9610_v11  ;;  %v14607_v61 = vld [vmem:[#allocation41_spill] sm:$0xff]  ;;  %v14608_v56 = vld [vmem:[#allocation67_spill] sm:$0xff] }
 0x167   : > { %v12406_v25 = vrot.slane %v14606_v37, %v9610_v11  ;;  %v14609_v9 = vcombine.low %v14607_v61, %v14608_v56  ;;  %v12421_v49 = vrot.slane %v14612_v57, %v9610_v11  ;;  %v14614_v47 = vld [vmem:[#allocation105_spill] sm:$0xff]  ;;  %v14617_v61 = vld [vmem:[#allocation242_spill] sm:$0xff]  ;;  %v12443_v51 = vrot.slane %v14620_v8, %v9610_v11 }
 0x168   : > { %v12387_v21 = vrot.slane %v14600_v2, %v9610_v11  ;;  %v14615_v29 = vcombine.low %v14613_v23, %v14614_v47  ;;  %v14616_v37 = vld [vmem:[#allocation241_spill] sm:$0xff]  ;;  %v4438_v57 = vrot.slane %v4424_v20, %v9610_v11  ;;  %v14622_v47 = vld [vmem:[#allocation190_spill] sm:$0xff]  ;;  %v12457_v55 = vpop.f32.mrf.mxu1  ;;  %v5177_v20 = vcombine.low %v5169_v0, %v5176_v63  ;;  %v14626_v63 = vld [vmem:[#allocation188_spill] sm:$0xff] }
 0x169   : > { %v12415_v2 = vrot.slane %v14609_v9, %v9610_v11  ;;  %v14618_v56 = vcombine.low %v14616_v37, %v14617_v61  ;;  %14621 = vst [vmem:[#allocation100_spill] sm:$0xff] %v12443_v51  ;;  %v14623_v37 = vcombine.low %v12146_v30, %v12161_v17  ;;  %v12455_v61 = vpop.f32.mrf.mxu0  ;;  %14624 = vst [vmem:[#allocation99_spill] sm:$0xff] %v12457_v55  ;;  %v14627_v30 = vld [vmem:[#allocation191_spill] sm:$0xff] }
 0x16a   : > { %9243 = vmatmul.mubr.msk.bf16.gmra.mxu0 %vm2358_vm2, %v5128_v33  ;;  %v12431_v46 = vrot.slane %v14615_v29, %v9610_v11  ;;  %v4447_v33 = vrot.slane %v4440_v50, %v9610_v11  ;;  %v4150_v29 = vcombine.high %v14622_v47, %v14622_v47  ;;  %v12464_v50 = vld.sshfl [vmem:[%s9606_s21 + $0x78] sm:$0x33 pattern:$0x75316420]  ;;  %v9052_v8 = vpop.f32.mrf.mxu1  ;;  %v4439_v23 = vcombine.low %v12443_v51, %v4438_v57 }
 0x16b   : > { %9246 = vmatprep.mubr.msk.bf16.mxu0 %vm9547_vm3, %v14099_v12  ;;  %v12437_v9 = vrot.slane %v14618_v56, %v9610_v11  ;;  %v9024_v56 = vpop.f32.mrf.mxu0  ;;  %v12468_v17 = vrot.slane %v12464_v50, %v9610_v11  ;;  %v4465_v31 = vcombine.low %v14431_v59, %v14626_v63 }
 0x16c   : > { %v4449_v38 = vcombine.low %v4447_v33, %v11879_v35  ;;  %v2535_v0 = vpop.f32.mrf.mxu1  ;;  %v4466_v56 = vcombine.low %v14622_v47, %v14627_v30  ;;  %v4467_v8 = vcombine.low %v4150_v29, %v12153_v34  ;;  %v14629_v35 = vcombine.low %v11829_v10, %v11871_v54 }
 0x16d   : > { %14619 = vst [vmem:[#allocation97_spill] sm:$0xff] %v12437_v9  ;;  %9197 = vmatmul.mubr.msk.bf16.gmra.mxu1 %vm2358_vm2, %v14623_v37  ;;  %14625 = vst [vmem:[#allocation135_spill] sm:$0xff] %v12468_v17  ;;  %v5797_v37 = vcombine.low %v12153_v34, %v12296_v39  ;;  %v12474_v3 = vpop.f32.mrf.mxu0  ;;  %v6302_v55 = vcombine.low %v12286_v24, %v12468_v17  ;;  %v4746_v10 = vshrl.u32 %v14627_v30, 16  ;;  %v4751_v54 = vshll.u32 %v4150_v29, 16 }
 0x16e   : > { %9200 = vmatprep.mubr.msk.bf16.mxu1 %vm9547_vm3, %v14099_v12  ;;  %v9053_v57 = vpop.f32.mrf.mxu1  ;;  %v12496_v51 = vrot.slane %v14629_v35, %v9610_v11  ;;  %v4463_v9 = vrot.slane %v4449_v38, %v9610_v11  ;;  %v4754_v35 = vshrl.u32 %v4150_v29, 16  ;;  %v4759_v38 = vshll.u32 %v12153_v34, 16 }
 0x16f   : > { %v9025_v33 = vpop.f32.mrf.mxu0  ;;  %v12487_v0 = vrot.slane %v5797_v37, %v9610_v11  ;;  %v12490_v59 = vrot.slane %v6302_v55, %v9610_v11  ;;  %v4488_v37 = vrot.slane %v4467_v8, %v9610_v11  ;;  %v12517_v8 = vsel %vm9642_vm1, %v4746_v10, %v4751_v54  ;;  %v14641_v55 = vld [vmem:[#allocation104_spill] sm:$0xff] }
 0x170   : > { %14630 = vst [vmem:[#allocation137_spill] sm:$0xff] %v12496_v51  ;;  %v4481_v33 = vrot.slane %v4466_v56, %v9610_v11  ;;  %v14631_v56 = vcombine.low %v12226_v19, %v12229_v58  ;;  %v12521_v30 = vsel %vm9642_vm1, %v4754_v35, %v4759_v38  ;;  %v14633_v19 = vld [vmem:[#allocation194_spill] sm:$0xff]  ;;  %v14634_v10 = vcombine.low %v12250_v52, %v12261_v62 }
 0x171   : > { %14628 = vst [vmem:[#allocation101_spill] sm:$0xff] %v12490_v59  ;;  %v5327_v58 = vcombine.low %v14633_v19, %v12517_v8 }
 0x172   : > { %9247 = vmatmul.mubr.msk.bf16.gmra.mxu0 %vm2358_vm2, %v5177_v20  ;;  %v4474_v20 = vrot.slane %v4465_v31, %v9610_v11  ;;  %v4490_v57 = vcombine.low %v4481_v33, %v4488_v37  ;;  %v4506_v37 = vcombine.low %v12296_v39, %v12286_v24 }
 0x173   : > { %9250 = vmatprep.mubr.msk.bf16.mxu0 %vm9547_vm3, %v14099_v12  ;;  %v5349_v54 = vrot.slane %v5327_v58, %v9610_v11  ;;  %v14638_v58 = vld [vmem:[#allocation103_spill] sm:$0xff] }
 0x174   : > { %v4489_v31 = vcombine.low %v11892_v48, %v4474_v20  ;;  %v12528_v29 = vrot.slane %v4490_v57, %v9610_v11  ;;  %v5328_v20 = vcombine.low %v12521_v30, %v12329_v32  ;;  %v12555_v62 = vrot.slane %v4506_v37, %v9610_v11 }
 0x175   : > { %9201 = vmatmul.mubr.msk.bf16.gmra.mxu1 %vm2358_vm2, %v4439_v23  ;;  %v4464_v23 = vcombine.low %v12496_v51, %v4463_v9 }
 0x176   : > { %9204 = vmatprep.mubr.msk.bf16.mxu1 %vm9547_vm3, %v14099_v12  ;;  %v4497_v9 = vrot.slane %v4489_v31, %v9610_v11  ;;  %14632 = vst [vmem:[#allocation136_spill] sm:$0xff] %v12528_v29  ;;  %v5356_v35 = vrot.slane %v5328_v20, %v9610_v11  ;;  %v12551_v31 = vcombine.high %v12296_v39, %v12296_v39  ;;  %14636 = vst [vmem:[#allocation138_spill] sm:$0xff] %v12555_v62 }
 0x178   : > { %v4505_v33 = vcombine.low %v4497_v9, %v12528_v29  ;;  %14635 = vst [vmem:[#allocation139_spill] sm:$0xff] %v12551_v31  ;;  %v14637_v9 = vld [vmem:[#allocation70_spill] sm:$0xff]  ;;  %v4783_v51 = vshll.u32 %v12551_v31, 16 }
 0x179   : > { %v14639_v20 = vcombine.low %v14637_v9, %v14638_v58  ;;  %v14642_v29 = vld [vmem:[#allocation106_spill] sm:$0xff]  ;;  %v4520_v58 = vrot.slane %v12555_v62, %v9610_v11 }
 0x17a   : > { %9251 = vmatmul.mubr.msk.bf16.gmra.mxu0 %vm2358_vm2, %v14631_v56  ;;  %v5358_v56 = vcombine.low %v5349_v54, %v5356_v35  ;;  %v14643_v48 = vcombine.low %v14641_v55, %v14642_v29  ;;  %v14645_v55 = vcombine.low %v12293_v45, %v12301_v27  ;;  %v14662_v31 = vld [vmem:[#allocation214_spill] sm:$0xff] }
 0x17b   : > { %9254 = vmatprep.mubr.msk.bf16.mxu0 %vm9547_vm3, %v14099_v12  ;;  %v12547_v38 = vpop.f32.mrf.mxu0 }
 0x17c   : > { %v5372_v29 = vrot.slane %v5358_v56, %v9610_v11 }
 0x17d   : > { %9205 = vmatmul.mubr.msk.bf16.gmra.mxu1 %vm2358_vm2, %v4464_v23  ;;  %v3217_v23 = vpop.f32.mrf.mxu1  ;;  %v9028_v57 = vpop.f32.mrf.mxu0 }
 0x17e   : > { %9208 = vmatprep.mubr.msk.bf16.mxu1 %vm9547_vm3, %v14099_v12 }
 0x17f   : > { %v9058_v52 = vpop.f32.mrf.mxu1  ;;  %v12571_v57 = vpop.f32.mrf.mxu0 }
 0x180   : > { %v4778_v52 = vshrl.u32 %v12286_v24, 16 }
 0x181   : > { %v3220_v37 = vpop.f32.mrf.mxu1  ;;  %v9029_v35 = vpop.f32.mrf.mxu0 }
 0x182   : > { %9255 = vmatmul.mubr.msk.bf16.gmra.mxu0 %vm2358_vm2, %v14634_v10  ;;  %v12563_v10 = vrot.slane %v14639_v20, %v9610_v11  ;;  %v8841_v20 = vcombine.low %v12001_v16, %v12001_v16  ;;  %v14647_v35 = vld [vmem:[#allocation197_spill] sm:$0xff]  ;;  %v12595_v45 = vsel %vm9642_vm1, %v4778_v52, %v4783_v51 }
 0x183   : > { %9258 = vmatprep.mubr.msk.bf16.mxu0 %vm9547_vm3, %v14099_v12  ;;  %v9059_v9 = vpop.f32.mrf.mxu1  ;;  %v5374_v16 = vcombine.low %v12333_v18, %v12595_v45  ;;  %v14653_v52 = vld [vmem:[#allocation145_spill] sm:$0xff] }
 0x184   : > { %14640 = vst [vmem:[#allocation236_spill] sm:$0xff] %v12563_v10  ;;  %v3218_v9 = vadd.f32 %v3217_v23, %v14647_v35  ;;  %v3998_v27 = vpop.f32.mrf.mxu0  ;;  %v14649_v23 = vld [vmem:[#allocation109_spill] sm:$0xff] }
 0x185   : > { %9209 = vmatmul.mubr.msk.bf16.gmra.mxu1 %vm2358_vm2, %v4505_v33  ;;  %v12569_v33 = vrot.slane %v14643_v48, %v9610_v11  ;;  %v14646_v48 = vcombine.low %v12169_v36, %v12172_v14  ;;  %v3225_v54 = vpop.f32.mrf.mxu1  ;;  %v14659_v10 = vld [vmem:[#allocation93_spill] sm:$0xff] }
 0x186   : > { %9212 = vmatprep.mubr.msk.bf16.mxu1 %vm9547_vm3, %v14099_v12  ;;  %v9112_v56 = vpop.f32.mrf.mxu0 }
 0x187   : > { %14644 = vst [vmem:[#allocation235_spill] sm:$0xff] %v12569_v33  ;;  %v5365_v24 = vrot.slane %v14646_v48, %v9610_v11  ;;  %v9062_v36 = vpop.f32.mrf.mxu1  ;;  %v14650_v48 = vld [vmem:[#allocation144_spill] sm:$0xff]  ;;  %v6889_v56 = vrot.slane %v8841_v20, 2  ;;  %v14658_v33 = vld [vmem:[#allocation89_spill] sm:$0xff] }
 0x188   : > { %v14651_v35 = vcombine.low %v14649_v23, %v14650_v48  ;;  %v4001_v62 = vpop.f32.mrf.mxu0  ;;  %v5626_v59 = vcombine.low %v14659_v10, %v14658_v33  ;;  %v14663_v10 = vld [vmem:[#allocation215_spill] sm:$0xff] }
 0x189   : > { %v5373_v14 = vcombine.low %v5365_v24, %v5372_v29  ;;  %v14657_v24 = vld [vmem:[#allocation170_spill] sm:$0xff]  ;;  %v3228_v36 = vpop.f32.mrf.mxu1  ;;  %v6930_v20 = vsel %vm2398_vm0, %v6889_v56, 0  ;;  %v14666_v56 = vld [vmem:[#allocation183_spill] sm:$0xff] }
 0x18a   : > { %9259 = vmatmul.mubr.msk.bf16.gmra.mxu0 %vm2358_vm2, %v14645_v55  ;;  %v12597_v55 = vadd.f32 %v3998_v27, %v3218_v9  ;;  %v12608_v51 = vrot.slane %v14651_v35, %v9610_v11  ;;  %v14654_v9 = vld [vmem:[#allocation146_spill] sm:$0xff]  ;;  %v3221_v29 = vadd.f32 %v3220_v37, %v14657_v24  ;;  %v9113_v35 = vpop.f32.mrf.mxu0 }
 0x18b   : > { %9262 = vmatprep.mubr.msk.bf16.mxu0 %vm9547_vm3, %v14099_v12  ;;  %v14655_v27 = vcombine.low %v14653_v52, %v14654_v9  ;;  %v9063_v48 = vpop.f32.mrf.mxu1  ;;  %v5381_v52 = vrot.slane %v5374_v16, %v9610_v11  ;;  %v5633_v9 = vrot.slane %v5626_v59, %v9610_v11  ;;  %v14665_v16 = vld [vmem:[#allocation150_spill] sm:$0xff]  ;;  %v14670_v35 = vld [vmem:[#allocation185_spill] sm:$0xff] }
 0x18c   : > { %14648 = vst [vmem:[#allocation10_spill] sm:$0xff] %v12597_v55  ;;  %14652 = vst [vmem:[#allocation35_spill] sm:$0xff] %v12608_v51  ;;  %v12621_v23 = vadd.f32 %v4001_v62, %v3221_v29  ;;  %v14664_v62 = vcombine.low %v14662_v31, %v14663_v10  ;;  %v14667_v48 = vcombine.low %v14665_v16, %v14666_v56  ;;  %v14675_v51 = vld [vmem:[#allocation128_spill] sm:$0xff]  ;;  %v14677_v56 = vld [vmem:[#allocation42_spill] sm:$0xff] }
 0x18d   : > { %9213 = vmatmul.mubr.msk.bf16.gmra.mxu1 %vm2358_vm2, %v4520_v58  ;;  %v12614_v58 = vrot.slane %v14655_v27, %v9610_v11  ;;  %v3233_v37 = vpop.f32.mrf.mxu1  ;;  %v14661_v27 = vld [vmem:[#allocation69_spill] sm:$0xff]  ;;  %v5388_v29 = vrot.slane %v5381_v52, %v9610_v11 }
 0x18e   : > { %9272 = vmatprep.mubr.msk.bf16.mxu1 %vm9547_vm3, %v14099_v12  ;;  %14660 = vst [vmem:[#allocation140_spill] sm:$0xff] %v12621_v23  ;;  %v3226_v24 = vadd.f32 %v3225_v54, %v14661_v27  ;;  %v12641_v59 = vrot.slane %v14667_v48, %v9610_v11  ;;  %v14669_v54 = vld [vmem:[#allocation184_spill] sm:$0xff]  ;;  %v14676_v23 = vld [vmem:[#allocation90_spill] sm:$0xff]  ;;  %v3229_v48 = vadd.f32 %v3228_v36, %v14677_v56 }
 0x18f   : > { %14656 = vst [vmem:[#allocation141_spill] sm:$0xff] %v12614_v58  ;;  %v9066_v33 = vpop.f32.mrf.mxu1  ;;  %v14671_v31 = vcombine.low %v14669_v54, %v14670_v35  ;;  %v8798_v16 = vcombine.high %v14676_v23, %v14675_v51  ;;  %v14682_v23 = vld [vmem:[#allocation186_spill] sm:$0xff] }
 0x190   : > { %14668 = vst [vmem:[#allocation196_spill] sm:$0xff] %v12641_v59  ;;  %v14674_v33 = vld [vmem:[#allocation224_spill] sm:$0xff] }
 0x191   : > { %v12647_v27 = vrot.slane %v14671_v31, %v9610_v11  ;;  %v5634_v58 = vcombine.low %v5633_v9, %v14674_v33  ;;  %v5650_v9 = vrot.slane %v8798_v16, %v9610_v11  ;;  %v14685_v16 = vld [vmem:[#allocation211_spill] sm:$0xff] }
 0x192   : > { %9263 = vmatmul.mubr.msk.bf16.gmra.mxu0 %vm2358_vm2, %v5373_v14  ;;  %v4006_v14 = vpop.f32.mrf.mxu0 }
 0x193   : > { %9266 = vmatprep.mubr.msk.bf16.mxu0 %vm9547_vm3, %v14099_v12  ;;  %14672 = vst [vmem:[#allocation195_spill] sm:$0xff] %v12647_v27  ;;  %v12649_v10 = vadd.f32 %v4006_v14, %v3226_v24  ;;  %v5641_v31 = vrot.slane %v5634_v58, %v9610_v11  ;;  %v14688_v27 = vld [vmem:[#allocation225_spill] sm:$0xff] }
 0x194   : > { %v9116_v52 = vpop.f32.mrf.mxu0 }
 0x195   : > { %9273 = vmatmul.mubr.msk.bf16.vlgmr.msra.gmra.mxu1 %vm2358_vm2, %v14664_v62  ;;  %14673 = vst [vmem:[#allocation173_spill] sm:$0xff] %v12649_v10  ;;  %v3236_v62 = vpop.f32.mrf.mxu1  ;;  %v14679_v52 = vld [vmem:[#allocation218_spill] sm:$0xff]  ;;  %v5642_v59 = vcombine.low %v14688_v27, %v5641_v31  ;;  %v14691_v10 = vld [vmem:[#allocation213_spill] sm:$0xff] }
 0x196   : > { %9379 = vmatpush3.bf16.msra.mxu1 %v6930_v20  ;;  %9276 = vmatprep.mubr.msk.bf16.mxu1 %vm9547_vm3, %v14099_v12  ;;  %v4009_v54 = vpop.f32.mrf.mxu0  ;;  %v14680_v20 = vld [vmem:[#allocation220_spill] sm:$0xff]  ;;  %v3237_v27 = vadd.f32 %v3236_v62, %v11914_v1  ;;  %v14696_v62 = vld [vmem:[#allocation25_spill] sm:$0xff] }
 0x197   : > { %v9067_v55 = vpop.f32.mrf.mxu1  ;;  %v12658_v35 = vadd.f32 %v4009_v54, %v3229_v48  ;;  %v14681_v51 = vcombine.low %v14679_v52, %v14680_v20  ;;  %v14686_v48 = vld [vmem:[#allocation212_spill] sm:$0xff] }
 0x198   : > { %v9117_v24 = vpop.f32.mrf.mxu0  ;;  %v237_v55 = vld [vmem:[%s13668_s1 + $0x10] sm:$0x3]  ;;  %v14687_v20 = vcombine.low %v14685_v16, %v14686_v48  ;;  %v14692_v16 = vld [vmem:[#allocation217_spill] sm:$0xff]  ;;  %v14693_v48 = vld [vmem:[#allocation219_spill] sm:$0xff] }
 0x199   : > { %14678 = vst [vmem:[#allocation143_spill] sm:$0xff] %v12658_v35  ;;  %v3241_v14 = vpop.f32.mrf.mxu1  ;;  %v3234_v24 = vadd.f32 %v3233_v37, %v11885_v28  ;;  %v7296_v52 = vsel %vm2398_vm0, %v237_v55, 0  ;;  %v14689_v35 = vld [vmem:[#allocation126_spill] sm:$0xff]  ;;  %v14695_v1 = vld [vmem:[#allocation24_spill] sm:$0xff]  ;;  %vm8447_vm0 = vcmask 64512  }
 0x19a   : > { %9267 = vmatmul.mubr.msk.bf16.gmra.mxu0 %vm2358_vm2, %v5388_v29  ;;  %v14683_v29 = vld [vmem:[#allocation210_spill] sm:$0xff]  ;;  %v12683_v54 = vrot.slane %v14687_v20, %v9610_v11  ;;  %v14694_v20 = vcombine.low %v14692_v16, %v14693_v48 }
 0x19b   : > { %9326 = vmatprep.mubr.msk.bf16.mxu0 %vm9547_vm3, %v14099_v12  ;;  %v9070_v36 = vpop.f32.mrf.mxu1  ;;  %v14684_v56 = vcombine.low %v14682_v23, %v14683_v29  ;;  %v5651_v23 = vcombine.low %v14689_v35, %v5650_v9  ;;  %v4014_v29 = vpop.f32.mrf.mxu0 }
 0x19c   : > { %v12693_v39 = vadd.f32 %v4014_v29, %v3234_v24 }
 0x19d   : > { %9277 = vmatmul.mubr.msk.bf16.gmra.mxu1 %vm2358_vm2, %v14681_v51  ;;  %v12677_v58 = vrot.slane %v14684_v56, %v9610_v11  ;;  %v3244_v51 = vpop.f32.mrf.mxu1  ;;  %v14690_v56 = vld [vmem:[#allocation23_spill] sm:$0xff]  ;;  %v9120_v37 = vpop.f32.mrf.mxu0  ;;  %v5658_v9 = vrot.slane %v5651_v23, %v9610_v11 }
 0x19e   : > { %9280 = vmatprep.mubr.msk.bf16.mxu1 %vm9547_vm3, %v14099_v12  ;;  %v6704_v34 = vcombine.low %v14691_v10, %v14690_v56  ;;  %v14697_v56 = vcombine.low %v14695_v1, %v14696_v62  ;;  %v3242_v37 = vadd.f32 %v3241_v14, %v12026_v22 }
 0x19f   : > { %v9071_v28 = vpop.f32.mrf.mxu1  ;;  %v4017_v55 = vpop.f32.mrf.mxu0 }
 0x1a0   : > { %v12704_v10 = vadd.f32 %v4017_v55, %v3237_v27  ;;  %v12711_v29 = vrot.slane %v6704_v34, %v9610_v11  ;;  %v12717_v23 = vrot.slane %v14697_v56, %v9610_v11  ;;  %v14699_v34 = vcombine.low %v12347_v40, %v12353_v13  ;;  %v14700_v55 = vld [vmem:[#allocation131_spill] sm:$0xff] }
 0x1a1   : > { %v3249_v31 = vpop.f32.mrf.mxu1  ;;  %v9121_v16 = vpop.f32.mrf.mxu0 }
 0x1a2   : > { %9327 = vmatmul.mubr.msk.bf16.vlgmr.msra.gmra.mxu0 %vm2358_vm2, %v14694_v20  ;;  %v14698_v20 = vld [vmem:[#allocation167_spill] sm:$0xff] }
 0x1a3   : > { %9433 = vmatpush3.bf16.msra.mxu0 %v7296_v52  ;;  %9330 = vmatprep.mubr.msk.bf16.mxu0 %vm9547_vm3, %v14099_v12  ;;  %v9074_v24 = vpop.f32.mrf.mxu1  ;;  %v6141_v52 = vcombine.low %v14674_v33, %v14689_v35  ;;  %v5659_v28 = vcombine.low %v5658_v9, %v14698_v20  ;;  %v4022_v27 = vpop.f32.mrf.mxu0  ;;  %v3245_v9 = vadd.f32 %v3244_v51, %v12054_v41  ;;  %v14703_v20 = vld [vmem:[#allocation26_spill] sm:$0xff] }
 0x1a4   : > { %v14701_v24 = vld [vmem:[#allocation129_spill] sm:$0xff]  ;;  %v12732_v56 = vadd.f32 %v4022_v27, %v3242_v37  ;;  %v14704_v37 = vld [vmem:[#allocation52_spill] sm:$0xff] }
 0x1a5   : > { %9281 = vmatmul.mubr.msk.bf16.gmra.mxu1 %vm2358_vm2, %v5642_v59  ;;  %v3252_v59 = vpop.f32.mrf.mxu1  ;;  %v6149_v35 = vrot.slane %v6141_v52, %v9610_v11  ;;  %v14702_v1 = vcombine.low %v14700_v55, %v14701_v24  ;;  %v9124_v22 = vpop.f32.mrf.mxu0  ;;  %v14705_v27 = vcombine.low %v14703_v20, %v14704_v37  ;;  %v14707_v55 = vld [vmem:[#allocation54_spill] sm:$0xff]  ;;  %v14711_v20 = vld [vmem:[#allocation11_spill] sm:$0xff]  ;;  %v14712_v37 = vld [vmem:[#allocation8_spill] sm:$0xff] }
 0x1a6   : > { %9284 = vmatprep.mubr.msk.bf16.mxu1 %vm9547_vm3, %v14099_v12  ;;  %v14709_v22 = vld [vmem:[#allocation6_spill] sm:$0xff] }
 0x1a7   : > { %v9075_v33 = vpop.f32.mrf.mxu1  ;;  %v6156_v62 = vrot.slane %v14702_v1, %v9610_v11  ;;  %v4025_v13 = vpop.f32.mrf.mxu0  ;;  %v3250_v1 = vadd.f32 %v3249_v31, %v12223_v5 }
 0x1a8   : > { %v14706_v33 = vld [vmem:[#allocation53_spill] sm:$0xff] }
 0x1a9   : > { %v3257_v14 = vpop.f32.mrf.mxu1  ;;  %v6157_v52 = vcombine.low %v6149_v35, %v6156_v62  ;;  %v14708_v41 = vcombine.low %v14706_v33, %v14707_v55  ;;  %v14713_v33 = vld [vmem:[#allocation237_spill] sm:$0xff] }
 0x1aa   : > { %9331 = vmatmul.mubr.msk.bf16.gmra.mxu0 %vm2358_vm2, %v14699_v34  ;;  %v3258_v40 = vadd.f32 %v3257_v14, %v12455_v61  ;;  %v12745_v34 = vrot.slane %v14705_v27, %v9610_v11  ;;  %v12753_v61 = vadd.f32 %v4025_v13, %v3245_v9  ;;  %v14710_v14 = vld [vmem:[#allocation203_spill] sm:$0xff]  ;;  %v8800_v27 = vcombine.high %v14712_v37, %v14711_v20  ;;  %v14718_v37 = vld [vmem:[#allocation85_spill] sm:$0xff] }
 0x1ab   : > { %9334 = vmatprep.mubr.msk.bf16.mxu0 %vm9547_vm3, %v14099_v12  ;;  %v9078_v16 = vpop.f32.mrf.mxu1  ;;  %v12751_v51 = vrot.slane %v14708_v41, %v9610_v11  ;;  %v7147_v55 = vcombine.low %v14713_v33, %v14554_v4  ;;  %v14717_v20 = vld [vmem:[#allocation55_spill] sm:$0xff]  ;;  %v14720_v33 = vld [vmem:[#allocation86_spill] sm:$0xff] }
 0x1ac   : > { %v5694_v16 = vcombine.low %v14710_v14, %v14709_v22  ;;  %v5709_v14 = vrot.slane %v8800_v27, %v9610_v11 }
 0x1ad   : > { %9285 = vmatmul.mubr.msk.bf16.gmra.mxu1 %vm2358_vm2, %v5659_v28  ;;  %v9125_v28 = vpop.f32.mrf.mxu0  ;;  %v3260_v35 = vpop.f32.mrf.mxu1 }
 0x1ae   : > { %9288 = vmatprep.mubr.msk.bf16.mxu1 %vm9547_vm3, %v14099_v12  ;;  %v3261_v62 = vadd.f32 %v3260_v35, %v12474_v3  ;;  %v3253_v3 = vadd.f32 %v3252_v59, %v12258_v60  ;;  %v14714_v28 = vld [vmem:[#allocation228_spill] sm:$0xff]  ;;  %v14715_v35 = vld [vmem:[#allocation134_spill] sm:$0xff]  ;;  %v5702_v4 = vrot.slane %v5694_v16, %v9610_v11  ;;  %v14719_v60 = vcombine.low %v14717_v20, %v14718_v37 }
 0x1af   : > { %v4030_v9 = vpop.f32.mrf.mxu0  ;;  %v9079_v13 = vpop.f32.mrf.mxu1  ;;  %v14716_v22 = vcombine.low %v14714_v28, %v14715_v35  ;;  %v12793_v16 = vrot.slane %v7147_v55, %v9610_v11 }
 0x1b0   : > { %v12766_v41 = vadd.f32 %v4030_v9, %v3250_v1  ;;  %v12784_v59 = vrot.slane %v14719_v60, %v9610_v11  ;;  %v14721_v9 = vld [vmem:[#allocation87_spill] sm:$0xff]  ;;  %v14725_v60 = vld [vmem:[#allocation232_spill] sm:$0xff] }
 0x1b1   : > { %v9128_v5 = vpop.f32.mrf.mxu0  ;;  %v3265_v31 = vpop.f32.mrf.mxu1  ;;  %v14722_v13 = vcombine.low %v14720_v33, %v14721_v9  ;;  %v5710_v33 = vcombine.low %v5702_v4, %v14725_v60  ;;  %v14726_v9 = vld [vmem:[#allocation233_spill] sm:$0xff] }
 0x1b2   : > { %9335 = vmatmul.mubr.msk.bf16.gmra.mxu0 %vm2358_vm2, %v6157_v52  ;;  %v3266_v1 = vadd.f32 %v3265_v31, %v12547_v38  ;;  %v14723_v31 = vld [vmem:[#allocation240_spill] sm:$0xff] }
 0x1b3   : > { %9338 = vmatprep.mubr.msk.bf16.mxu0 %vm9547_vm3, %v14099_v12  ;;  %v4033_v52 = vpop.f32.mrf.mxu0  ;;  %v12790_v5 = vrot.slane %v14722_v13, %v9610_v11  ;;  %v9082_v38 = vpop.f32.mrf.mxu1  ;;  %v14724_v28 = vcombine.low %v14558_v42, %v14723_v31  ;;  %v5711_v13 = vcombine.low %v14726_v9, %v5709_v14  ;;  %v14728_v14 = vld [vmem:[#allocation5_spill] sm:$0xff]  ;;  %v5718_v55 = vrot.slane %v5710_v33, %v9610_v11 }
 0x1b4   : > { %v12795_v27 = vadd.f32 %v4033_v52, %v3253_v3  ;;  %v14727_v52 = vcombine.low %v12366_v53, %v12373_v7 }
 0x1b5   : > { %9289 = vmatmul.mubr.msk.bf16.gmra.mxu1 %vm2358_vm2, %v14716_v22  ;;  %v12801_v35 = vrot.slane %v14724_v28, %v9610_v11  ;;  %v9129_v22 = vpop.f32.mrf.mxu0  ;;  %v3268_v37 = vpop.f32.mrf.mxu1  ;;  %v5725_v7 = vrot.slane %v5711_v13, %v9610_v11 }
 0x1b6   : > { %9292 = vmatprep.mubr.msk.bf16.mxu1 %vm9547_vm3, %v14099_v12  ;;  %v3269_v42 = vadd.f32 %v3268_v37, %v12571_v57  ;;  %v14729_v22 = vld [vmem:[#allocation172_spill] sm:$0xff]  ;;  %v6193_v57 = vcombine.low %v14725_v60, %v14726_v9  ;;  %v14732_v37 = vld [vmem:[#allocation123_spill] sm:$0xff]  ;;  %v6067_v60 = vcombine.high %v12464_v50, %v12464_v50 }
 0x1b7   : > { %v4038_v3 = vpop.f32.mrf.mxu0  ;;  %v9083_v31 = vpop.f32.mrf.mxu1  ;;  %v14730_v20 = vcombine.low %v14728_v14, %v14729_v22 }
 0x1b8   : > { %v12814_v38 = vadd.f32 %v4038_v3, %v3258_v40  ;;  %v14731_v40 = vld [vmem:[#allocation88_spill] sm:$0xff] }
 0x1b9   : > { %v9132_v4 = vpop.f32.mrf.mxu0  ;;  %v14733_v3 = vcombine.low %v14731_v40, %v14732_v37  ;;  %v14734_v31 = vld [vmem:[#allocation124_spill] sm:$0xff]  ;;  %v5726_v40 = vcombine.low %v5718_v55, %v5725_v7  ;;  %v12860_v55 = vrot.slane %v6067_v60, %v9610_v11  ;;  %v14745_v60 = vld [vmem:[#allocation165_spill] sm:$0xff] }
 0x1ba   : > { %9339 = vmatmul.mubr.msk.bf16.gmra.mxu0 %vm2358_vm2, %v14727_v52 }
 0x1bb   : > { %9342 = vmatprep.mubr.msk.bf16.mxu0 %vm9547_vm3, %v14099_v12  ;;  %v3273_v28 = vpop.f32.mrf.mxu1  ;;  %v4041_v53 = vpop.f32.mrf.mxu0  ;;  %v12832_v52 = vrot.slane %v14733_v3, %v9610_v11  ;;  %v14737_v3 = vcombine.low %v12379_v15, %v12387_v21  ;;  %v6790_v15 = vcombine.low %v12517_v8, %v12521_v30  ;;  %v6568_v8 = vshll.u32 %v12860_v55, 16 }
 0x1bc   : > { %v12840_v13 = vadd.f32 %v4041_v53, %v3261_v62  ;;  %v14739_v62 = vld [vmem:[#allocation12_spill] sm:$0xff] }
 0x1bd   : > { %9293 = vmatmul.mubr.msk.bf16.gmra.mxu1 %vm2358_vm2, %v14730_v20  ;;  %v14735_v20 = vld [vmem:[#allocation125_spill] sm:$0xff]  ;;  %v9086_v14 = vpop.f32.mrf.mxu1  ;;  %v9133_v22 = vpop.f32.mrf.mxu0 }
 0x1be   : > { %9296 = vmatprep.mubr.msk.bf16.mxu1 %vm9547_vm3, %v14099_v12  ;;  %v14736_v4 = vcombine.low %v14734_v31, %v14735_v20  ;;  %v14738_v31 = vld [vmem:[#allocation231_spill] sm:$0xff] }
 0x1bf   : > { %v3276_v9 = vpop.f32.mrf.mxu1  ;;  %v4046_v37 = vpop.f32.mrf.mxu0  ;;  %v14740_v53 = vcombine.low %v14738_v31, %v14739_v62  ;;  %v14746_v62 = vld [vmem:[#allocation166_spill] sm:$0xff] }
 0x1c0   : > { %v12838_v33 = vrot.slane %v14736_v4, %v9610_v11  ;;  %v6207_v4 = vrot.slane %v6193_v57, %v9610_v11  ;;  %v12855_v14 = vadd.f32 %v4046_v37, %v3266_v1  ;;  %v14741_v1 = vld [vmem:[#allocation127_spill] sm:$0xff]  ;;  %v14742_v57 = vld [vmem:[#allocation164_spill] sm:$0xff] }
 0x1c1   : > { %v6200_v20 = vrot.slane %v14740_v53, %v9610_v11  ;;  %v9087_v22 = vpop.f32.mrf.mxu1  ;;  %v9136_v50 = vpop.f32.mrf.mxu0  ;;  %v14743_v37 = vcombine.low %v14741_v1, %v14742_v57  ;;  %v14747_v53 = vcombine.low %v14745_v60, %v14746_v62  ;;  %v14751_v60 = vld [vmem:[#allocation113_spill] sm:$0xff] }
 0x1c2   : > { %9343 = vmatmul.mubr.msk.bf16.gmra.mxu0 %vm2358_vm2, %v14737_v3 }
 0x1c3   : > { %9346 = vmatprep.mubr.msk.bf16.mxu0 %vm9547_vm3, %v14099_v12  ;;  %v3281_v21 = vpop.f32.mrf.mxu1  ;;  %v4049_v7 = vpop.f32.mrf.mxu0  ;;  %v6208_v3 = vcombine.low %v6200_v20, %v6207_v4  ;;  %v12871_v31 = vrot.slane %v14743_v37, %v9610_v11  ;;  %v12877_v22 = vrot.slane %v14747_v53, %v9610_v11  ;;  %v14749_v4 = vcombine.low %v14497_v43, %v14633_v19  ;;  %v14750_v37 = vld [vmem:[#allocation111_spill] sm:$0xff]  ;;  %v14752_v53 = vld [vmem:[#allocation198_spill] sm:$0xff] }
 0x1c4   : > { %v12881_v30 = vadd.f32 %v4049_v7, %v3269_v42  ;;  %v5761_v62 = vcombine.low %v14751_v60, %v14750_v37  ;;  %v3274_v24 = vadd.f32 %v3273_v28, %v14752_v53  ;;  %v6804_v42 = vrot.slane %v6790_v15, %v9610_v11  ;;  %v14757_v15 = vld [vmem:[#allocation43_spill] sm:$0xff] }
 0x1c5   : > { %9297 = vmatmul.mubr.msk.bf16.gmra.mxu1 %vm2358_vm2, %v5726_v40  ;;  %14744 = vst [vmem:[#allocation175_spill] sm:$0xff] %v12871_v31  ;;  %14748 = vst [vmem:[#allocation174_spill] sm:$0xff] %v12877_v22  ;;  %v6563_v40 = vshrl.u32 %v12468_v17, 16  ;;  %v9090_v20 = vpop.f32.mrf.mxu1  ;;  %v6797_v50 = vrot.slane %v14749_v4, %v9610_v11  ;;  %v9137_v1 = vpop.f32.mrf.mxu0  ;;  %v14754_v4 = vld [vmem:[#allocation192_spill] sm:$0xff]  ;;  %v3277_v53 = vadd.f32 %v3276_v9, %v14757_v15  ;;  %v14763_v9 = vld [vmem:[#allocation110_spill] sm:$0xff] }
 0x1c6   : > { %9300 = vmatprep.mubr.msk.bf16.mxu1 %vm9547_vm3, %v14099_v12  ;;  %v14753_v20 = vld [vmem:[#allocation168_spill] sm:$0xff]  ;;  %v14764_v15 = vld [vmem:[#allocation243_spill] sm:$0xff] }
 0x1c7   : > { %v3284_v48 = vpop.f32.mrf.mxu1  ;;  %v6570_v7 = vsel %vm9642_vm1, %v6563_v40, %v6568_v8  ;;  %v14755_v1 = vcombine.low %v14753_v20, %v14754_v4  ;;  %v6806_v60 = vcombine.low %v6797_v50, %v6804_v42  ;;  %v14758_v40 = vld [vmem:[#allocation7_spill] sm:$0xff] }
 0x1c8   : > { %v4054_v36 = vpop.f32.mrf.mxu0  ;;  %v6823_v8 = vcombine.low %v12595_v45, %v6570_v7  ;;  %v14762_v42 = vld [vmem:[#allocation147_spill] sm:$0xff]  ;;  %v14765_v45 = vld [vmem:[#allocation148_spill] sm:$0xff] }
 0x1c9   : > { %v12896_v43 = vadd.f32 %v4054_v36, %v3274_v24  ;;  %v9091_v19 = vpop.f32.mrf.mxu1  ;;  %v12904_v28 = vrot.slane %v14755_v1, %v9610_v11  ;;  %v14759_v36 = vld [vmem:[#allocation14_spill] sm:$0xff]  ;;  %v12916_v20 = vrot.slane %v6806_v60, %v9610_v11  ;;  %v8802_v4 = vcombine.high %v14763_v9, %v14762_v42 }
 0x1ca   : > { %9347 = vmatmul.mubr.msk.bf16.gmra.mxu0 %vm2358_vm2, %v6208_v3  ;;  %v9140_v37 = vpop.f32.mrf.mxu0  ;;  %v5768_v3 = vrot.slane %v5761_v62, %v9610_v11  ;;  %v14760_v24 = vcombine.low %v14758_v40, %v14759_v36  ;;  %v3282_v7 = vadd.f32 %v3281_v21, %v14765_v45  ;;  %v14766_v60 = vcombine.low %v12400_v6, %v12406_v25  ;;  %v14771_v45 = vld [vmem:[#allocation238_spill] sm:$0xff]  ;;  %v14775_v25 = vld [vmem:[#allocation64_spill] sm:$0xff] }
 0x1cb   : > { %9350 = vmatprep.mubr.msk.bf16.mxu0 %vm9547_vm3, %v14099_v12  ;;  %14756 = vst [vmem:[#allocation177_spill] sm:$0xff] %v12904_v28  ;;  %14761 = vst [vmem:[#allocation176_spill] sm:$0xff] %v12916_v20  ;;  %v5785_v21 = vrot.slane %v8802_v4, %v9610_v11  ;;  %v14776_v37 = vld [vmem:[#allocation181_spill] sm:$0xff]  ;;  %v14784_v20 = vld [vmem:[#allocation114_spill] sm:$0xff] }
 0x1cc   : > { %v3289_v57 = vpop.f32.mrf.mxu1  ;;  %v4057_v19 = vpop.f32.mrf.mxu0  ;;  %v5769_v40 = vcombine.low %v5768_v3, %v14764_v15 }
 0x1cd   : > { %9301 = vmatmul.mubr.msk.bf16.gmra.mxu1 %vm2358_vm2, %v14760_v24  ;;  %v12918_v50 = vadd.f32 %v4057_v19, %v3277_v53  ;;  %v14767_v53 = vcombine.low %v12329_v32, %v12333_v18  ;;  %v14770_v32 = vld [vmem:[#allocation153_spill] sm:$0xff] }
 0x1ce   : > { %9304 = vmatprep.mubr.msk.bf16.mxu1 %vm9547_vm3, %v14099_v12  ;;  %v9094_v62 = vpop.f32.mrf.mxu1  ;;  %v9141_v1 = vpop.f32.mrf.mxu0  ;;  %v5776_v9 = vrot.slane %v5769_v40, %v9610_v11  ;;  %v3285_v18 = vadd.f32 %v3284_v48, %v14770_v32  ;;  %v3290_v48 = vadd.f32 %v3289_v57, %v11942_v44 }
 0x1cf   : > { %v12934_v19 = vrot.slane %v14767_v53, %v9610_v11  ;;  %v12937_v62 = vrot.slane %v6823_v8, %v9610_v11  ;;  %v14772_v8 = vld [vmem:[#allocation76_spill] sm:$0xff]  ;;  %v14774_v53 = vld [vmem:[#allocation142_spill] sm:$0xff] }
 0x1d0   : > { %v3292_v36 = vpop.f32.mrf.mxu1  ;;  %v5777_v40 = vcombine.low %v14775_v25, %v5776_v9 }
 0x1d1   : > { %v4062_v24 = vpop.f32.mrf.mxu0  ;;  %14768 = vst [vmem:[#allocation179_spill] sm:$0xff] %v12934_v19  ;;  %14769 = vst [vmem:[#allocation178_spill] sm:$0xff] %v12937_v62 }
 0x1d2   : > { %9351 = vmatmul.mubr.msk.bf16.gmra.mxu0 %vm2358_vm2, %v14766_v60  ;;  %v12939_v42 = vadd.f32 %v4062_v24, %v3282_v7  ;;  %v9095_v3 = vpop.f32.mrf.mxu1  ;;  %v14773_v60 = vcombine.low %v14771_v45, %v14772_v8  ;;  %v5795_v45 = vcombine.low %v14776_v37, %v14622_v47  ;;  %v8803_v8 = vcombine.high %v14626_v63, %v14622_v47  ;;  %v14778_v37 = vld [vmem:[#allocation31_spill] sm:$0xff] }
 0x1d3   : > { %9354 = vmatprep.mubr.msk.bf16.mxu0 %vm9547_vm3, %v14099_v12  ;;  %v9144_v6 = vpop.f32.mrf.mxu0  ;;  %v5786_v3 = vcombine.low %v14774_v53, %v5785_v21  ;;  %v3293_v25 = vadd.f32 %v3292_v36, %v14778_v37 }
 0x1d4   : > { %v3297_v1 = vpop.f32.mrf.mxu1 }
 0x1d5   : > { %9305 = vmatmul.mubr.msk.bf16.gmra.mxu1 %vm2358_vm2, %v14773_v60  ;;  %v4065_v7 = vpop.f32.mrf.mxu0  ;;  %v5793_v44 = vrot.slane %v5786_v3, %v9610_v11  ;;  %v6277_v3 = vcombine.low %v14626_v63, %v14622_v47 }
 0x1d6   : > { %9308 = vmatprep.mubr.msk.bf16.mxu1 %vm9547_vm3, %v14099_v12  ;;  %v12954_v24 = vadd.f32 %v4065_v7, %v3285_v18  ;;  %v9098_v4 = vpop.f32.mrf.mxu1  ;;  %v14777_v18 = vcombine.low %v12415_v2, %v12421_v49  ;;  %v6260_v49 = vcombine.low %v14764_v15, %v14774_v53  ;;  %v5804_v2 = vrot.slane %v5795_v45, %v9610_v11  ;;  %v14780_v15 = vld [vmem:[#allocation151_spill] sm:$0xff]  ;;  %v14781_v53 = vld [vmem:[#allocation149_spill] sm:$0xff] }
 0x1d7   : > { %v9145_v6 = vpop.f32.mrf.mxu0  ;;  %v5811_v4 = vrot.slane %v8803_v8, %v9610_v11  ;;  %v14782_v45 = vcombine.low %v14780_v15, %v14781_v53 }
 0x1d8   : > { %v3300_v32 = vpop.f32.mrf.mxu1  ;;  %v6268_v19 = vrot.slane %v6260_v49, %v9610_v11  ;;  %v5819_v47 = vcombine.low %v14784_v20, %v5804_v2 }
 0x1d9   : > { %v6275_v8 = vrot.slane %v14782_v45, %v9610_v11  ;;  %v5820_v63 = vcombine.low %v5811_v4, %v12487_v0 }
 0x1da   : > { %v4070_v60 = vpop.f32.mrf.mxu0  ;;  %9355 = vmatmul.mubr.msk.bf16.gmra.mxu0 %vm2358_vm2, %v14777_v18  ;;  %v9099_v21 = vpop.f32.mrf.mxu1  ;;  %v5827_v45 = vrot.slane %v5819_v47, %v9610_v11 }
 0x1db   : > { %v12967_v7 = vadd.f32 %v4070_v60, %v3290_v48  ;;  %9358 = vmatprep.mubr.msk.bf16.mxu0 %vm9547_vm3, %v14099_v12  ;;  %v12985_v60 = vld.sshfl [vmem:[%s9606_s21 + $0x7c] sm:$0x33 pattern:$0x75316420] }
 0x1dc   : > { %v9148_v57 = vpop.f32.mrf.mxu0  ;;  %v13011_v49 = vrot.slane %v12985_v60, %v9610_v11 }
 0x1dd   : > { %v3305_v9 = vpop.f32.mrf.mxu1  ;;  %9309 = vmatmul.mubr.msk.bf16.gmra.mxu1 %vm2358_vm2, %v5777_v40  ;;  %v14779_v40 = vld [vmem:[#allocation27_spill] sm:$0xff]  ;;  %v14783_v57 = vld [vmem:[#allocation60_spill] sm:$0xff] }
 0x1de   : > { %v4073_v6 = vpop.f32.mrf.mxu0  ;;  %9312 = vmatprep.mubr.msk.bf16.mxu1 %vm9547_vm3, %v14099_v12  ;;  %v5794_v18 = vcombine.low %v5793_v44, %v14779_v40  ;;  %v3298_v37 = vadd.f32 %v3297_v1, %v14783_v57  ;;  %v6284_v44 = vrot.slane %v6277_v3, %v9610_v11  ;;  %v13003_v40 = vcombine.high %v12468_v17, %v12468_v17  ;;  %v14787_v3 = vld [vmem:[#allocation63_spill] sm:$0xff] }
 0x1df   : > { %v12982_v48 = vadd.f32 %v4073_v6, %v3293_v25  ;;  %v9102_v36 = vpop.f32.mrf.mxu1  ;;  %v14785_v6 = vld [vmem:[#allocation97_spill] sm:$0xff]  ;;  %v13007_v1 = vcombine.high %v12860_v55, %v12860_v55  ;;  %v3301_v15 = vadd.f32 %v3300_v32, %v14787_v3  ;;  %v5834_v57 = vrot.slane %v5820_v63, %v9610_v11  ;;  %v14789_v63 = vld [vmem:[#allocation95_spill] sm:$0xff] }
 0x1e0   : > { %v9149_v21 = vpop.f32.mrf.mxu0  ;;  %v14786_v36 = vcombine.low %v12431_v46, %v14785_v6  ;;  %v14788_v6 = vld [vmem:[#allocation152_spill] sm:$0xff]  ;;  %v3306_v3 = vadd.f32 %v3305_v9, %v14789_v63  ;;  %v14792_v9 = vld [vmem:[#allocation98_spill] sm:$0xff] }
 0x1e1   : > { %v3308_v62 = vpop.f32.mrf.mxu1  ;;  %v6304_v32 = vcombine.low %v13007_v1, %v13011_v49 }
 0x1e2   : > { %v4078_v25 = vpop.f32.mrf.mxu0  ;;  %9359 = vmatmul.mubr.msk.bf16.gmra.mxu0 %vm2358_vm2, %v14786_v36  ;;  %v6285_v36 = vcombine.low %v14788_v6, %v14784_v20  ;;  %v5835_v20 = vcombine.low %v5827_v45, %v5834_v57  ;;  %v14790_v6 = vld [vmem:[#allocation96_spill] sm:$0xff]  ;;  %v3309_v45 = vadd.f32 %v3308_v62, %v14792_v9 }
 0x1e3   : > { %v13013_v2 = vadd.f32 %v4078_v25, %v3298_v37  ;;  %v9103_v21 = vpop.f32.mrf.mxu1  ;;  %9362 = vmatprep.mubr.msk.bf16.mxu0 %vm9547_vm3, %v14099_v12  ;;  %v6276_v37 = vcombine.low %v6268_v19, %v6275_v8  ;;  %v6286_v25 = vcombine.low %v6284_v44, %v5811_v4  ;;  %v14791_v19 = vld [vmem:[#allocation65_spill] sm:$0xff] }
 0x1e4   : > { %v9152_v46 = vpop.f32.mrf.mxu0  ;;  %v6303_v21 = vcombine.low %v12860_v55, %v13003_v40  ;;  %v8804_v8 = vcombine.high %v14791_v19, %v14790_v6  ;;  %v6293_v4 = vrot.slane %v6285_v36, %v9610_v11  ;;  %v14794_v6 = vld [vmem:[#allocation99_spill] sm:$0xff] }
 0x1e5   : > { %v3313_v53 = vpop.f32.mrf.mxu1  ;;  %9313 = vmatmul.mubr.msk.bf16.gmra.mxu1 %vm2358_vm2, %v5794_v18  ;;  %v6300_v44 = vrot.slane %v6286_v25, %v9610_v11  ;;  %v14793_v25 = vld [vmem:[#allocation10_spill] sm:$0xff] }
 0x1e6   : > { %v4081_v17 = vpop.f32.mrf.mxu0  ;;  %9316 = vmatprep.mubr.msk.bf16.mxu1 %vm9547_vm3, %v14099_v12  ;;  %v6318_v31 = vrot.slane %v6303_v21, %v9610_v11  ;;  %v5843_v36 = vrot.slane %v8804_v8, %v9610_v11  ;;  %v3314_v19 = vadd.f32 %v3313_v53, %v14794_v6  ;;  %v13067_v53 = vcombine.high %v13011_v49, %v13011_v49 }
 0x1e7   : > { %v13029_v18 = vadd.f32 %v4081_v17, %v3301_v15  ;;  %v9106_v47 = vpop.f32.mrf.mxu1  ;;  %v6325_v17 = vrot.slane %v6304_v32, %v9610_v11  ;;  %v6301_v21 = vcombine.low %v6293_v4, %v6300_v44  ;;  %v6091_v32 = vcombine.high %v12985_v60, %v12985_v60 }
 0x1e8   : > { %v9153_v46 = vpop.f32.mrf.mxu0  ;;  %v5850_v8 = vrot.slane %v5843_v36, %v9610_v11 }
 0x1e9   : > { %v3316_v28 = vpop.f32.mrf.mxu1  ;;  %v13063_v9 = vrot.slane %v6091_v32, %v9610_v11 }
 0x1ea   : > { %v4086_v22 = vpop.f32.mrf.mxu0  ;;  %9363 = vmatmul.mubr.msk.bf16.gmra.mxu0 %vm2358_vm2, %v6276_v37 }
 0x1eb   : > { %v13039_v15 = vadd.f32 %v4086_v22, %v3306_v3  ;;  %v9107_v47 = vpop.f32.mrf.mxu1  ;;  %9366 = vmatprep.mubr.msk.bf16.mxu0 %vm9547_vm3, %v14099_v12  ;;  %v6327_v22 = vcombine.low %v6318_v31, %v6325_v17  ;;  %v14797_v31 = vld [vmem:[#allocation140_spill] sm:$0xff]  ;;  %v6343_v32 = vcombine.low %v13063_v9, %v13067_v53 }
 0x1ec   : > { %v9156_v28 = vpop.f32.mrf.mxu0  ;;  %v14795_v47 = vld [vmem:[#allocation101_spill] sm:$0xff] }
 0x1ed   : > { %v4601_v57 = vpop.f32.mrf.mxu1  ;;  %9317 = vmatmul.mubr.msk.bf16.gmra.mxu1 %vm2358_vm2, %v5835_v20  ;;  %v14796_v4 = vcombine.low %v12487_v0, %v14795_v47  ;;  %v6341_v60 = vrot.slane %v6327_v22, %v9610_v11 }
 0x1ee   : > { %v4089_v37 = vpop.f32.mrf.mxu0  ;;  %v4703_v46 = vadd.f32 %v4601_v57, %v14793_v25  ;;  %9320 = vmatprep.mubr.msk.bf16.mxu1 %vm9547_vm3, %v14099_v12  ;;  %v14798_v25 = vld [vmem:[#allocation173_spill] sm:$0xff] }
 0x1ef   : > { %v13051_v63 = vadd.f32 %v4089_v37, %v3309_v45  ;;  %v9166_v3 = vpop.f32.mrf.mxu1  ;;  %v6334_v44 = vrot.slane %v14796_v4, %v9610_v11 }
 0x1f0   : > { %v9157_v62 = vpop.f32.mrf.mxu0 }
 0x1f1   : > { %v4604_v20 = vpop.f32.mrf.mxu1  ;;  %v6342_v22 = vcombine.low %v6334_v44, %v6341_v60  ;;  %v14800_v60 = vld [vmem:[#allocation73_spill] sm:$0xff] }
 0x1f2   : > { %v4094_v28 = vpop.f32.mrf.mxu0  ;;  %9367 = vmatmul.mubr.msk.bf16.gmra.mxu0 %vm2358_vm2, %v6301_v21  ;;  %v4704_v17 = vadd.f32 %v4604_v20, %v14797_v31  ;;  %v14799_v20 = vld [vmem:[#allocation143_spill] sm:$0xff] }
 0x1f3   : > { %v13069_v45 = vadd.f32 %v4094_v28, %v3314_v19  ;;  %v9167_v57 = vpop.f32.mrf.mxu1  ;;  %9370 = vmatprep.mubr.msk.bf16.mxu0 %vm9547_vm3, %v14099_v12 }
 0x1f4   : > { %v9160_v0 = vpop.f32.mrf.mxu0  ;;  %v14801_v57 = vld [vmem:[#allocation75_spill] sm:$0xff] }
 0x1f5   : > { %v4609_v36 = vpop.f32.mrf.mxu1  ;;  %9321 = vmatmul.mubr.msk.bf16.gmra.mxu1 %vm2358_vm2, %v5850_v8  ;;  %v6350_v8 = vrot.slane %v6343_v32, %v9610_v11  ;;  %v14802_v0 = vcombine.low %v14800_v60, %v14801_v57  ;;  %v14806_v57 = vld [vmem:[#allocation235_spill] sm:$0xff] }
 0x1f6   : > { %v4097_v37 = vpop.f32.mrf.mxu0  ;;  %v4705_v21 = vadd.f32 %v4609_v36, %v14798_v25  ;;  %9380 = vmatprep.mubr.msk.bf16.mxu1 %vm9547_vm3, %v14099_v12  ;;  %v14803_v36 = vld [vmem:[#allocation226_spill] sm:$0xff] }
 0x1f7   : > { %v9170_v3 = vpop.f32.mrf.mxu1  ;;  %v14804_v37 = vld [vmem:[#allocation56_spill] sm:$0xff] }
 0x1f8   : > { %v9161_v62 = vpop.f32.mrf.mxu0  ;;  %v7093_v25 = vcombine.low %v14804_v37, %v14803_v36  ;;  %v14808_v36 = vld [vmem:[#allocation30_spill] sm:$0xff] }
 0x1f9   : > { %v4612_v6 = vpop.f32.mrf.mxu1 }
 0x1fa   : > { %v5465_v19 = vpop.f32.mrf.mxu0  ;;  %9371 = vmatmul.mubr.msk.bf16.gmra.mxu0 %vm2358_vm2, %v6342_v22  ;;  %v4706_v47 = vadd.f32 %v4612_v6, %v14799_v20  ;;  %v7100_v20 = vrot.slane %v7093_v25, %v9610_v11  ;;  %v14809_v25 = vld [vmem:[#allocation91_spill] sm:$0xff] }
 0x1fb   : > { %v13082_v4 = vadd.f32 %v5465_v19, %v4703_v46  ;;  %v9171_v28 = vpop.f32.mrf.mxu1  ;;  %9374 = vmatprep.mubr.msk.bf16.mxu0 %vm9547_vm3, %v14099_v12  ;;  %v6357_v46 = vrot.slane %v6350_v8, %v9610_v11 }
 0x1fc   : > { %v9220_v44 = vpop.f32.mrf.mxu0  ;;  %v7101_v37 = vcombine.low %v14808_v36, %v7100_v20 }
 0x1fd   : > { %v4617_v31 = vpop.f32.mrf.mxu1  ;;  %9381 = vmatmul.mubr.msk.bf16.vlgmr.msra.gmra.mxu1 %vm2358_vm2, %v14802_v0 }
 0x1fe   : > { %v5468_v22 = vpop.f32.mrf.mxu0  ;;  %v4707_v3 = vadd.f32 %v4617_v31, %v12693_v39  ;;  %9384 = vmatprep.mubr.msk.bf16.mxu1 %vm9547_vm3, %v14099_v12 }
 0x1ff   : > { %v13096_v32 = vadd.f32 %v5468_v22, %v4704_v17  ;;  %v9174_v62 = vpop.f32.mrf.mxu1  ;;  %v14805_v17 = vld [vmem:[#allocation236_spill] sm:$0xff]  ;;  %v14810_v22 = vld [vmem:[#allocation133_spill] sm:$0xff] }
 0x200   : > { %v9221_v6 = vpop.f32.mrf.mxu0  ;;  %v14807_v0 = vcombine.low %v14805_v17, %v14806_v57 }
 0x201   : > { %v4620_v19 = vpop.f32.mrf.mxu1 }
 0x202   : > { %v5473_v28 = vpop.f32.mrf.mxu0  ;;  %9375 = vmatmul.mubr.msk.bf16.gmra.mxu0 %vm2358_vm2, %v6357_v46  ;;  %v4708_v44 = vadd.f32 %v4620_v19, %v12704_v10  ;;  %v7102_v46 = vcombine.low %v14810_v22, %v14809_v25  ;;  %v14814_v25 = vld [vmem:[#allocation33_spill] sm:$0xff] }
 0x203   : > { %v13101_v60 = vadd.f32 %v5473_v28, %v4705_v21  ;;  %v9175_v39 = vpop.f32.mrf.mxu1  ;;  %9434 = vmatprep.mubr.msk.bf16.mxu0 %vm9547_vm3, %v14099_v12 }
 0x204   : > { %v9224_v8 = vpop.f32.mrf.mxu0  ;;  %v7109_v39 = vrot.slane %v7102_v46, %v9610_v11  ;;  %v14815_v46 = vld [vmem:[#allocation229_spill] sm:$0xff] }
 0x205   : > { %v4625_v31 = vpop.f32.mrf.mxu1  ;;  %9385 = vmatmul.mubr.msk.bf16.gmra.mxu1 %vm2358_vm2, %v14807_v0  ;;  %v14812_v0 = vld [vmem:[#allocation141_spill] sm:$0xff] }
 0x206   : > { %v5476_v62 = vpop.f32.mrf.mxu0  ;;  %v4709_v10 = vadd.f32 %v4625_v31, %v12732_v56  ;;  %9388 = vmatprep.mubr.msk.bf16.mxu1 %vm9547_vm3, %v14099_v12  ;;  %v7110_v22 = vcombine.low %v14814_v25, %v7109_v39 }
 0x207   : > { %v13115_v21 = vadd.f32 %v5476_v62, %v4706_v47  ;;  %v9178_v6 = vpop.f32.mrf.mxu1  ;;  %v14811_v47 = vld [vmem:[#allocation35_spill] sm:$0xff] }
 0x208   : > { %v9225_v19 = vpop.f32.mrf.mxu0  ;;  %v14813_v36 = vcombine.low %v14811_v47, %v14812_v0  ;;  %v14816_v62 = vld [vmem:[#allocation227_spill] sm:$0xff] }
 0x209   : > { %v4628_v28 = vpop.f32.mrf.mxu1 }
 0x20a   : > { %v5481_v8 = vpop.f32.mrf.mxu0  ;;  %9435 = vmatmul.mubr.msk.bf16.vlgmr.msra.gmra.mxu0 %vm2358_vm2, %v7101_v37  ;;  %v4710_v20 = vadd.f32 %v4628_v28, %v12753_v61  ;;  %v7111_v37 = vcombine.low %v14816_v62, %v14815_v46  ;;  %v14820_v46 = vld [vmem:[#allocation59_spill] sm:$0xff] }
 0x20b   : > { %v13120_v17 = vadd.f32 %v5481_v8, %v4707_v3  ;;  %v9179_v57 = vpop.f32.mrf.mxu1  ;;  %9438 = vmatprep.mubr.msk.bf16.mxu0 %vm9547_vm3, %v14099_v12 }
 0x20c   : > { %v9228_v56 = vpop.f32.mrf.mxu0  ;;  %v7118_v57 = vrot.slane %v7111_v37, %v9610_v11 }
 0x20d   : > { %v4633_v31 = vpop.f32.mrf.mxu1  ;;  %9389 = vmatmul.mubr.msk.bf16.gmra.mxu1 %vm2358_vm2, %v14813_v36  ;;  %v14818_v36 = vld [vmem:[#allocation195_spill] sm:$0xff] }
 0x20e   : > { %v5484_v6 = vpop.f32.mrf.mxu0  ;;  %v4711_v61 = vadd.f32 %v4633_v31, %v12766_v41  ;;  %9392 = vmatprep.mubr.msk.bf16.mxu1 %vm9547_vm3, %v14099_v12  ;;  %v7119_v62 = vcombine.low %v14820_v46, %v7118_v57  ;;  %v14822_v46 = vld [vmem:[#allocation32_spill] sm:$0xff] }
 0x20f   : > { %v13134_v3 = vadd.f32 %v5484_v6, %v4708_v44  ;;  %v9182_v19 = vpop.f32.mrf.mxu1  ;;  %v14817_v44 = vld [vmem:[#allocation196_spill] sm:$0xff] }
 0x210   : > { %v9229_v28 = vpop.f32.mrf.mxu0  ;;  %v14819_v25 = vcombine.low %v14817_v44, %v14818_v36 }
 0x211   : > { %v4636_v8 = vpop.f32.mrf.mxu1 }
 0x212   : > { %v5489_v56 = vpop.f32.mrf.mxu0  ;;  %9439 = vmatmul.mubr.msk.bf16.gmra.mxu0 %vm2358_vm2, %v7110_v22  ;;  %v4712_v39 = vadd.f32 %v4636_v8, %v12795_v27 }
 0x213   : > { %v13139_v47 = vadd.f32 %v5489_v56, %v4709_v10  ;;  %v9183_v0 = vpop.f32.mrf.mxu1  ;;  %9442 = vmatprep.mubr.msk.bf16.mxu0 %vm9547_vm3, %v14099_v12 }
 0x214   : > { %v9232_v41 = vpop.f32.mrf.mxu0 }
 0x215   : > { %v4641_v31 = vpop.f32.mrf.mxu1  ;;  %9393 = vmatmul.mubr.msk.bf16.gmra.mxu1 %vm2358_vm2, %v14819_v25 }
 0x216   : > { %v5492_v37 = vpop.f32.mrf.mxu0  ;;  %v4713_v22 = vadd.f32 %v4641_v31, %v12814_v38  ;;  %9396 = vmatprep.mubr.msk.bf16.mxu1 %vm9547_vm3, %v14099_v12 }
 0x217   : > { %v13151_v27 = vadd.f32 %v5492_v37, %v4710_v20  ;;  %v9186_v10 = vpop.f32.mrf.mxu1  ;;  %v14821_v20 = vcombine.low %v12677_v58, %v12683_v54 }
 0x218   : > { %v9233_v6 = vpop.f32.mrf.mxu0 }
 0x219   : > { %v4644_v19 = vpop.f32.mrf.mxu1  ;;  %v14825_v6 = vcombine.low %v12711_v29, %v12717_v23 }
 0x21a   : > { %v5497_v28 = vpop.f32.mrf.mxu0  ;;  %9443 = vmatmul.mubr.msk.bf16.gmra.mxu0 %vm2358_vm2, %v7119_v62  ;;  %v4714_v8 = vadd.f32 %v4644_v19, %v12840_v13  ;;  %v14823_v62 = vld [vmem:[#allocation155_spill] sm:$0xff] }
 0x21b   : > { %v13155_v56 = vadd.f32 %v5497_v28, %v4711_v61  ;;  %v9187_v0 = vpop.f32.mrf.mxu1  ;;  %9446 = vmatprep.mubr.msk.bf16.mxu0 %vm9547_vm3, %v14099_v12  ;;  %v14824_v37 = vcombine.low %v14822_v46, %v14823_v62 }
 0x21c   : > { %v9236_v38 = vpop.f32.mrf.mxu0 }
 0x21d   : > { %v4649_v57 = vpop.f32.mrf.mxu1  ;;  %9397 = vmatmul.mubr.msk.bf16.gmra.mxu1 %vm2358_vm2, %v14821_v20  ;;  %v14826_v20 = vld [vmem:[#allocation34_spill] sm:$0xff] }
 0x21e   : > { %v5500_v41 = vpop.f32.mrf.mxu0  ;;  %v4715_v31 = vadd.f32 %v4649_v57, %v12855_v14  ;;  %9400 = vmatprep.mubr.msk.bf16.mxu1 %vm9547_vm3, %v14099_v12 }
 0x21f   : > { %v13166_v13 = vadd.f32 %v5500_v41, %v4712_v39  ;;  %v9190_v61 = vpop.f32.mrf.mxu1  ;;  %v14827_v41 = vld [vmem:[#allocation57_spill] sm:$0xff] }
 0x220   : > { %v9237_v44 = vpop.f32.mrf.mxu0  ;;  %v14828_v61 = vcombine.low %v14826_v20, %v14827_v41  ;;  %v6571_v20 = vshrl.u32 %v12860_v55, 16 }
 0x221   : > { %v4652_v36 = vpop.f32.mrf.mxu1 }
 0x222   : > { %v5505_v25 = vpop.f32.mrf.mxu0  ;;  %9447 = vmatmul.mubr.msk.bf16.gmra.mxu0 %vm2358_vm2, %v14824_v37  ;;  %v4716_v58 = vadd.f32 %v4652_v36, %v12881_v30  ;;  %v14829_v36 = vcombine.low %v12745_v34, %v12751_v51 }
 0x223   : > { %v13173_v54 = vadd.f32 %v5505_v25, %v4713_v22  ;;  %v9191_v10 = vpop.f32.mrf.mxu1  ;;  %9450 = vmatprep.mubr.msk.bf16.mxu0 %vm9547_vm3, %v14099_v12 }
 0x224   : > { %v9240_v14 = vpop.f32.mrf.mxu0 }
 0x225   : > { %v4657_v39 = vpop.f32.mrf.mxu1  ;;  %9401 = vmatmul.mubr.msk.bf16.gmra.mxu1 %vm2358_vm2, %v14825_v6  ;;  %v14830_v14 = vld [vmem:[#allocation61_spill] sm:$0xff] }
 0x226   : > { %v5508_v19 = vpop.f32.mrf.mxu0  ;;  %v4717_v28 = vadd.f32 %v4657_v39, %v12896_v43  ;;  %9404 = vmatprep.mubr.msk.bf16.mxu1 %vm9547_vm3, %v14099_v12  ;;  %v14831_v39 = vld [vmem:[#allocation58_spill] sm:$0xff] }
 0x227   : > { %v13184_v30 = vadd.f32 %v5508_v19, %v4714_v8  ;;  %v9194_v22 = vpop.f32.mrf.mxu1  ;;  %v14832_v6 = vcombine.low %v14830_v14, %v14831_v39 }
 0x228   : > { %v9241_v0 = vpop.f32.mrf.mxu0  ;;  %v14833_v22 = vcombine.low %v12784_v59, %v12790_v5  ;;  %v6584_v59 = vshll.u32 %v13007_v1, 16  ;;  %v6587_v5 = vshrl.u32 %v13007_v1, 16 }
 0x229   : > { %v4660_v38 = vpop.f32.mrf.mxu1 }
 0x22a   : > { %v5513_v57 = vpop.f32.mrf.mxu0  ;;  %9451 = vmatmul.mubr.msk.bf16.gmra.mxu0 %vm2358_vm2, %v14828_v61  ;;  %v4718_v29 = vadd.f32 %v4660_v38, %v12918_v50  ;;  %v6576_v61 = vshll.u32 %v13003_v40, 16 }
 0x22b   : > { %v13191_v23 = vadd.f32 %v5513_v57, %v4715_v31  ;;  %v9195_v44 = vpop.f32.mrf.mxu1  ;;  %9454 = vmatprep.mubr.msk.bf16.mxu0 %vm9547_vm3, %v14099_v12 }
 0x22c   : > { %v9244_v43 = vpop.f32.mrf.mxu0  ;;  %v6579_v44 = vshrl.u32 %v13003_v40, 16 }
 0x22d   : > { %v4665_v8 = vpop.f32.mrf.mxu1  ;;  %9405 = vmatmul.mubr.msk.bf16.gmra.mxu1 %vm2358_vm2, %v14829_v36  ;;  %v6595_v36 = vshrl.u32 %v13011_v49, 16 }
 0x22e   : > { %v5516_v25 = vpop.f32.mrf.mxu0  ;;  %v4719_v46 = vadd.f32 %v4665_v8, %v12939_v42  ;;  %9408 = vmatprep.mubr.msk.bf16.mxu1 %vm9547_vm3, %v14099_v12  ;;  %v6592_v8 = vshll.u32 %v13011_v49, 16 }
 0x22f   : > { %v13202_v50 = vadd.f32 %v5516_v25, %v4716_v58  ;;  %v9198_v31 = vpop.f32.mrf.mxu1  ;;  %v6600_v25 = vshll.u32 %v13063_v9, 16 }
 0x230   : > { %v9245_v62 = vpop.f32.mrf.mxu0 }
 0x231   : > { %v4668_v37 = vpop.f32.mrf.mxu1 }
 0x232   : > { %v5521_v10 = vpop.f32.mrf.mxu0  ;;  %9455 = vmatmul.mubr.msk.bf16.gmra.mxu0 %vm2358_vm2, %v14832_v6  ;;  %v4720_v34 = vadd.f32 %v4668_v37, %v12954_v24 }
 0x233   : > { %v13209_v51 = vadd.f32 %v5521_v10, %v4717_v28  ;;  %v9199_v19 = vpop.f32.mrf.mxu1  ;;  %9458 = vmatprep.mubr.msk.bf16.mxu0 %vm9547_vm3, %v14099_v12  ;;  %v6594_v10 = vsel %vm9642_vm1, %v6587_v5, %v6592_v8 }
 0x234   : > { %v9248_v42 = vpop.f32.mrf.mxu0 }
 0x235   : > { %v4673_v58 = vpop.f32.mrf.mxu1  ;;  %9409 = vmatmul.mubr.msk.bf16.gmra.mxu1 %vm2358_vm2, %v14833_v22  ;;  %v14837_v22 = vld [vmem:[#allocation94_spill] sm:$0xff] }
 0x236   : > { %v5524_v0 = vpop.f32.mrf.mxu0  ;;  %v4721_v38 = vadd.f32 %v4673_v58, %v12967_v7  ;;  %9412 = vmatprep.mubr.msk.bf16.mxu1 %vm9547_vm3, %v14099_v12  ;;  %v14834_v7 = vcombine.low %v12793_v16, %v12801_v35  ;;  %v14835_v16 = vcombine.low %v12832_v52, %v12838_v33  ;;  %v6578_v35 = vsel %vm9642_vm1, %v6571_v20, %v6576_v61  ;;  %v14836_v58 = vld [vmem:[#allocation62_spill] sm:$0xff]  ;;  %v14840_v20 = vld [vmem:[#allocation112_spill] sm:$0xff] }
 0x237   : > { %v13220_v24 = vadd.f32 %v5524_v0, %v4718_v29  ;;  %v9202_v28 = vpop.f32.mrf.mxu1  ;;  %v6602_v52 = vsel %vm9642_vm1, %v6595_v36, %v6600_v25  ;;  %v14838_v0 = vcombine.low %v14836_v58, %v14837_v22 }
 0x238   : > { %v9249_v57 = vpop.f32.mrf.mxu0  ;;  %v6825_v42 = vcombine.low %v6594_v10, %v6602_v52  ;;  %v14847_v10 = vld [vmem:[#allocation154_spill] sm:$0xff] }
 0x239   : > { %v4676_v41 = vpop.f32.mrf.mxu1  ;;  %v14839_v57 = vld [vmem:[#allocation4_spill] sm:$0xff] }
 0x23a   : > { %v5529_v43 = vpop.f32.mrf.mxu0  ;;  %9459 = vmatmul.mubr.msk.bf16.gmra.mxu0 %vm2358_vm2, %v14834_v7  ;;  %v4722_v29 = vadd.f32 %v4676_v41, %v12982_v48  ;;  %v14841_v41 = vcombine.low %v14839_v57, %v14840_v20  ;;  %v14843_v7 = vld [vmem:[#allocation174_spill] sm:$0xff]  ;;  %v6853_v36 = vrot.slane %v6825_v42, %v9610_v11  ;;  %v14849_v20 = vld [vmem:[#allocation137_spill] sm:$0xff] }
 0x23b   : > { %v13235_v31 = vadd.f32 %v5529_v43, %v4719_v46  ;;  %v9203_v40 = vpop.f32.mrf.mxu1  ;;  %9462 = vmatprep.mubr.msk.bf16.mxu0 %vm9547_vm3, %v14099_v12  ;;  %v6586_v46 = vsel %vm9642_vm1, %v6579_v44, %v6584_v59  ;;  %v14842_v43 = vld [vmem:[#allocation175_spill] sm:$0xff] }
 0x23c   : > { %v9252_v1 = vpop.f32.mrf.mxu0  ;;  %v6824_v19 = vcombine.low %v6578_v35, %v6586_v46  ;;  %v7180_v61 = vrot.slane %v14841_v41, %v9610_v11  ;;  %v14844_v8 = vcombine.low %v14842_v43, %v14843_v7  ;;  %v14846_v46 = vld [vmem:[#allocation180_spill] sm:$0xff]  ;;  %v14854_v43 = vld [vmem:[#allocation178_spill] sm:$0xff] }
 0x23d   : > { %v4681_v62 = vpop.f32.mrf.mxu1  ;;  %9413 = vmatmul.mubr.msk.bf16.gmra.mxu1 %vm2358_vm2, %v14835_v16  ;;  %v14848_v52 = vcombine.low %v14846_v46, %v14847_v10 }
 0x23e   : > { %v5532_v48 = vpop.f32.mrf.mxu0  ;;  %v4723_v37 = vadd.f32 %v4681_v62, %v13013_v2  ;;  %9416 = vmatprep.mubr.msk.bf16.mxu1 %vm9547_vm3, %v14099_v12  ;;  %v6561_v62 = vcombine.high %v13063_v9, %v13063_v9 }
 0x23f   : > { %v13254_v33 = vadd.f32 %v5532_v48, %v4720_v34  ;;  %v9206_v14 = vpop.f32.mrf.mxu1 }
 0x240   : > { %v9253_v39 = vpop.f32.mrf.mxu0  ;;  %v7189_v14 = vrot.slane %v14848_v52, %v9610_v11  ;;  %v6616_v58 = vshll.u32 %v6561_v62, 16 }
 0x241   : > { %v4684_v6 = vpop.f32.mrf.mxu1 }
 0x242   : > { %v5537_v2 = vpop.f32.mrf.mxu0  ;;  %9463 = vmatmul.mubr.msk.bf16.gmra.mxu0 %vm2358_vm2, %v14838_v0  ;;  %v4724_v28 = vadd.f32 %v4684_v6, %v13029_v18  ;;  %v6846_v18 = vrot.slane %v6824_v19, %v9610_v11  ;;  %v7190_v41 = vcombine.low %v14849_v20, %v7189_v14 }
 0x243   : > { %v13265_v34 = vadd.f32 %v5537_v2, %v4721_v38  ;;  %v9207_v44 = vpop.f32.mrf.mxu1  ;;  %9466 = vmatprep.mubr.msk.bf16.mxu0 %vm9547_vm3, %v14099_v12  ;;  %v14845_v38 = vld [vmem:[#allocation100_spill] sm:$0xff]  ;;  %v6608_v2 = vshll.u32 %v13067_v53, 16 }
 0x244   : > { %v9256_v59 = vpop.f32.mrf.mxu0  ;;  %v7181_v1 = vcombine.low %v14845_v38, %v7180_v61  ;;  %v6855_v6 = vcombine.low %v6846_v18, %v6853_v36  ;;  %v14850_v44 = vld [vmem:[#allocation177_spill] sm:$0xff]  ;;  %v14857_v36 = vld [vmem:[#allocation135_spill] sm:$0xff] }
 0x245   : > { %v4689_v5 = vpop.f32.mrf.mxu1  ;;  %9417 = vmatmul.mubr.msk.bf16.gmra.mxu1 %vm2358_vm2, %v14844_v8  ;;  %v14851_v59 = vld [vmem:[#allocation176_spill] sm:$0xff]  ;;  %v14856_v8 = vld [vmem:[#allocation139_spill] sm:$0xff] }
 0x246   : > { %v5540_v25 = vpop.f32.mrf.mxu0  ;;  %v4725_v40 = vadd.f32 %v4689_v5, %v13039_v15  ;;  %9420 = vmatprep.mubr.msk.bf16.mxu1 %vm9547_vm3, %v14099_v12  ;;  %v6603_v15 = vshrl.u32 %v13063_v9, 16  ;;  %v14852_v5 = vcombine.low %v14850_v44, %v14851_v59  ;;  %v7200_v18 = vcombine.low %v14856_v8, %v12860_v55  ;;  %v14861_v59 = vld [vmem:[#allocation136_spill] sm:$0xff] }
 0x247   : > { %v13281_v16 = vadd.f32 %v5540_v25, %v4722_v29  ;;  %v9210_v35 = vpop.f32.mrf.mxu1  ;;  %v6611_v29 = vshrl.u32 %v13067_v53, 16  ;;  %v8855_v25 = vcombine.high %v14857_v36, %v12860_v55 }
 0x248   : > { %v9257_v48 = vpop.f32.mrf.mxu0  ;;  %v6610_v62 = vsel %vm9642_vm1, %v6603_v15, %v6608_v2  ;;  %v7209_v26 = vrot.slane %v7200_v18, %v9610_v11 }
 0x249   : > { %v4692_v39 = vpop.f32.mrf.mxu1  ;;  %v6618_v35 = vsel %vm9642_vm1, %v6611_v29, %v6616_v58  ;;  %v7202_v48 = vcombine.low %v13011_v49, %v13063_v9  ;;  %v7216_v15 = vrot.slane %v8855_v25, %v9610_v11 }
 0x24a   : > { %v5545_v19 = vpop.f32.mrf.mxu0  ;;  %9467 = vmatmul.mubr.msk.bf16.gmra.mxu0 %vm2358_vm2, %v7181_v1  ;;  %v4726_v42 = vadd.f32 %v4692_v39, %v13051_v63  ;;  %v14853_v63 = vld [vmem:[#allocation179_spill] sm:$0xff]  ;;  %v6871_v39 = vcombine.low %v6610_v62, %v6618_v35 }
 0x24b   : > { %v13292_v22 = vadd.f32 %v5545_v19, %v4723_v37  ;;  %v9211_v0 = vpop.f32.mrf.mxu1  ;;  %9470 = vmatprep.mubr.msk.bf16.mxu0 %vm9547_vm3, %v14099_v12  ;;  %v14855_v53 = vcombine.low %v14853_v63, %v14854_v43  ;;  %v6869_v37 = vrot.slane %v6855_v6, %v9610_v11  ;;  %v14859_v6 = vld [vmem:[#allocation29_spill] sm:$0xff] }
 0x24c   : > { %v9260_v57 = vpop.f32.mrf.mxu0 }
 0x24d   : > { %v4697_v61 = vpop.f32.mrf.mxu1  ;;  %9421 = vmatmul.mubr.msk.bf16.gmra.mxu1 %vm2358_vm2, %v14852_v5  ;;  %v6862_v7 = vrot.slane %v14855_v53, %v9610_v11 }
 0x24e   : > { %v5548_v38 = vpop.f32.mrf.mxu0  ;;  %v4727_v1 = vadd.f32 %v4697_v61, %v13069_v45  ;;  %9424 = vmatprep.mubr.msk.bf16.mxu1 %vm9547_vm3, %v14099_v12  ;;  %v14858_v45 = vld [vmem:[#allocation28_spill] sm:$0xff]  ;;  %v6878_v61 = vrot.slane %v6871_v39, %v9610_v11 }
 0x24f   : > { %v13319_v46 = vadd.f32 %v5548_v38, %v4724_v28  ;;  %v9214_v10 = vpop.f32.mrf.mxu1  ;;  %v6870_v14 = vcombine.low %v6862_v7, %v6869_v37  ;;  %v14860_v19 = vcombine.low %v14858_v45, %v14859_v6  ;;  %v7223_v28 = vrot.slane %v7202_v48, %v9610_v11 }
 0x250   : > { %v9261_v52 = vpop.f32.mrf.mxu0  ;;  %v6885_v18 = vrot.slane %v6878_v61, %v9610_v11 }
 0x251   : > { %v4700_v55 = vpop.f32.mrf.mxu1  ;;  %v7198_v0 = vrot.slane %v14860_v19, %v9610_v11  ;;  %v7225_v43 = vcombine.low %v7216_v15, %v7223_v28 }
 0x252   : > { %v5553_v57 = vpop.f32.mrf.mxu0  ;;  %9471 = vmatmul.mubr.msk.bf16.gmra.mxu0 %vm2358_vm2, %v7190_v41 }
 0x253   : > { %v13329_v2 = vadd.f32 %v5553_v57, %v4725_v40  ;;  %v9215_v29 = vpop.f32.mrf.mxu1  ;;  %9474 = vmatprep.mubr.msk.bf16.mxu0 %vm9547_vm3, %v14099_v12  ;;  %v7199_v5 = vcombine.low %v7198_v0, %v14861_v59  ;;  %v14862_v40 = vld [vmem:[#allocation138_spill] sm:$0xff]  ;;  %v7239_v38 = vrot.slane %v7225_v43, %v9610_v11 }
 0x254   : > { %v9264_v58 = vpop.f32.mrf.mxu0  ;;  %v7224_v63 = vcombine.low %v14862_v40, %v7209_v26 }
 0x255   : > { %v5931_v20 = vpop.f32.mrf.mxu1  ;;  %9425 = vmatmul.mubr.msk.bf16.gmra.mxu1 %vm2358_vm2, %v6870_v14 }
 0x256   : > { %v5556_v44 = vpop.f32.mrf.mxu0  ;;  %v6033_v41 = vadd.f32 %v5931_v20, %v13082_v4  ;;  %9428 = vmatprep.mubr.msk.bf16.mxu1 %vm9547_vm3, %v14099_v12  ;;  %v7232_v25 = vrot.slane %v7224_v63, %v9610_v11 }
 0x257   : > { %v13340_v53 = vadd.f32 %v5556_v44, %v4726_v42  ;;  %v9274_v7 = vpop.f32.mrf.mxu1 }
 0x258   : > { %v9265_v37 = vpop.f32.mrf.mxu0  ;;  %v7240_v55 = vcombine.low %v7232_v25, %v7239_v38 }
 0x259   : > { %v5934_v8 = vpop.f32.mrf.mxu1 }
 0x25a   : > { %v5561_v36 = vpop.f32.mrf.mxu0  ;;  %9475 = vmatmul.mubr.msk.bf16.gmra.mxu0 %vm2358_vm2, %v7199_v5  ;;  %v6034_v4 = vadd.f32 %v5934_v8, %v13096_v32  ;;  %v8856_v32 = vcombine.high %v13011_v49, %v13063_v9 }
 0x25b   : > { %v13347_v62 = vadd.f32 %v5561_v36, %v4727_v1  ;;  %v9275_v35 = vpop.f32.mrf.mxu1  ;;  %9478 = vmatprep.mubr.msk.bf16.mxu0 %vm9547_vm3, %v14099_v12 }
 0x25c   : > { %v9268_v42 = vpop.f32.mrf.mxu0  ;;  %v7248_v19 = vrot.slane %v8856_v32, %v9610_v11 }
 0x25d   : > { %v5939_v48 = vpop.f32.mrf.mxu1  ;;  %9429 = vmatmul.mubr.msk.bf16.gmra.mxu1 %vm2358_vm2, %v6885_v18 }
 0x25e   : > { %v5564_v10 = vpop.f32.mrf.mxu0  ;;  %v6035_v52 = vadd.f32 %v5939_v48, %v13101_v60  ;;  %v7255_v9 = vrot.slane %v7248_v19, %v9610_v11 }
 0x25f   : > { %v9278_v14 = vpop.f32.mrf.mxu1 }
 0x260   : > { %v9269_v39 = vpop.f32.mrf.mxu0 }
 0x261   : > { %v5942_v45 = vpop.f32.mrf.mxu1 }
 0x262   : > { %v6434_v1 = vpop.f32.mrf.mxu0  ;;  %9479 = vmatmul.mubr.msk.bf16.gmra.mxu0 %vm2358_vm2, %v7240_v55  ;;  %v6036_v6 = vadd.f32 %v5942_v45, %v13115_v21 }
 0x263   : > { %v13358_v0 = vadd.f32 %v6434_v1, %v6033_v41  ;;  %v9279_v57 = vpop.f32.mrf.mxu1  ;;  %9482 = vmatprep.mubr.msk.bf16.mxu0 %vm9547_vm3, %v14099_v12  ;;  %vm8449_vm3 = vcmask 62464  }
 0x264   : > { %v9328_v60 = vpop.f32.mrf.mxu0 }
 0x265   : > { %v5947_v26 = vpop.f32.mrf.mxu1 }
 0x266   : > { %v6437_v15 = vpop.f32.mrf.mxu0  ;;  %v6037_v49 = vadd.f32 %v5947_v26, %v13120_v17 }
 0x267   : > { %v13364_v28 = vadd.f32 %v6437_v15, %v6034_v4  ;;  %v9282_v29 = vpop.f32.mrf.mxu1 }
 0x268   : > { %v9329_v58 = vpop.f32.mrf.mxu0 }
 0x269   : > { %v5950_v21 = vpop.f32.mrf.mxu1 }
 0x26a   : > { %v6442_v20 = vpop.f32.mrf.mxu0  ;;  %9483 = vmatmul.mubr.msk.bf16.gmra.mxu0 %vm2358_vm2, %v7255_v9  ;;  %v6038_v61 = vadd.f32 %v5950_v21, %v13134_v3 }
 0x26b   : > { %v13368_v44 = vadd.f32 %v6442_v20, %v6035_v52  ;;  %v9283_v12 = vpop.f32.mrf.mxu1 }
 0x26c   : > { %v9332_v41 = vpop.f32.mrf.mxu0 }
 0x26d   : > { %v5955_v59 = vpop.f32.mrf.mxu1 }
 0x26e   : > { %v6445_v5 = vpop.f32.mrf.mxu0  ;;  %v6039_v17 = vadd.f32 %v5955_v59, %v13139_v47 }
 0x26f   : > { %v13371_v40 = vadd.f32 %v6445_v5, %v6036_v6  ;;  %v9286_v11 = vpop.f32.mrf.mxu1 }
 0x270   : > { %v9333_v63 = vpop.f32.mrf.mxu0 }
 0x271   : > { %v5958_v43 = vpop.f32.mrf.mxu1 }
 0x272   : > { %v6450_v7 = vpop.f32.mrf.mxu0  ;;  %v6040_v37 = vadd.f32 %v5958_v43, %v13151_v27 }
 0x273   : > { %v13374_v8 = vadd.f32 %v6450_v7, %v6037_v49  ;;  %v9287_v18 = vpop.f32.mrf.mxu1 }
 0x274   : > { %v9336_v3 = vpop.f32.mrf.mxu0 }
 0x275   : > { %v5963_v36 = vpop.f32.mrf.mxu1 }
 0x276   : > { %v6453_v4 = vpop.f32.mrf.mxu0  ;;  %v6041_v25 = vadd.f32 %v5963_v36, %v13155_v56 }
 0x277   : > { %v13377_v38 = vadd.f32 %v6453_v4, %v6038_v61  ;;  %v9290_v35 = vpop.f32.mrf.mxu1 }
 0x278   : > { %v9337_v47 = vpop.f32.mrf.mxu0 }
 0x279   : > { %v5966_v42 = vpop.f32.mrf.mxu1 }
 0x27a   : > { %v6458_v48 = vpop.f32.mrf.mxu0  ;;  %v6042_v10 = vadd.f32 %v5966_v42, %v13166_v13 }
 0x27b   : > { %v13380_v52 = vadd.f32 %v6458_v48, %v6039_v17  ;;  %v9291_v55 = vpop.f32.mrf.mxu1 }
 0x27c   : > { %v9340_v27 = vpop.f32.mrf.mxu0 }
 0x27d   : > { %v5971_v32 = vpop.f32.mrf.mxu1 }
 0x27e   : > { %v6461_v14 = vpop.f32.mrf.mxu0  ;;  %v6043_v39 = vadd.f32 %v5971_v32, %v13173_v54 }
 0x27f   : > { %v13383_v45 = vadd.f32 %v6461_v14, %v6040_v37  ;;  %v9294_v1 = vpop.f32.mrf.mxu1 }
 0x280   : > { %v9341_v56 = vpop.f32.mrf.mxu0 }
 0x281   : > { %v5974_v6 = vpop.f32.mrf.mxu1 }
 0x282   : > { %v6466_v19 = vpop.f32.mrf.mxu0  ;;  %v6044_v57 = vadd.f32 %v5974_v6, %v13184_v30 }
 0x283   : > { %v13386_v60 = vadd.f32 %v6466_v19, %v6041_v25  ;;  %v9295_v26 = vpop.f32.mrf.mxu1 }
 0x284   : > { %v9344_v13 = vpop.f32.mrf.mxu0 }
 0x285   : > { %v5979_v15 = vpop.f32.mrf.mxu1 }
 0x286   : > { %v6469_v49 = vpop.f32.mrf.mxu0  ;;  %v6045_v9 = vadd.f32 %v5979_v15, %v13191_v23 }
 0x287   : > { %v13389_v29 = vadd.f32 %v6469_v49, %v6042_v10  ;;  %v9298_v58 = vpop.f32.mrf.mxu1 }
 0x288   : > { %v9345_v54 = vpop.f32.mrf.mxu0 }
 0x289   : > { %v5982_v21 = vpop.f32.mrf.mxu1 }
 0x28a   : > { %v6474_v20 = vpop.f32.mrf.mxu0  ;;  %v6046_v61 = vadd.f32 %v5982_v21, %v13202_v50 }
 0x28b   : > { %v13392_v12 = vadd.f32 %v6474_v20, %v6043_v39  ;;  %v9299_v41 = vpop.f32.mrf.mxu1 }
 0x28c   : > { %v9348_v30 = vpop.f32.mrf.mxu0 }
 0x28d   : > { %v5987_v59 = vpop.f32.mrf.mxu1 }
 0x28e   : > { %v6477_v5 = vpop.f32.mrf.mxu0  ;;  %v6047_v17 = vadd.f32 %v5987_v59, %v13209_v51 }
 0x28f   : > { %v13395_v11 = vadd.f32 %v6477_v5, %v6044_v57  ;;  %v9302_v63 = vpop.f32.mrf.mxu1 }
 0x290   : > { %v9349_v23 = vpop.f32.mrf.mxu0 }
 0x291   : > { %v5990_v43 = vpop.f32.mrf.mxu1 }
 0x292   : > { %v6482_v7 = vpop.f32.mrf.mxu0  ;;  %v6048_v37 = vadd.f32 %v5990_v43, %v13220_v24 }
 0x293   : > { %v13398_v18 = vadd.f32 %v6482_v7, %v6045_v9  ;;  %v9303_v3 = vpop.f32.mrf.mxu1 }
 0x294   : > { %v9352_v50 = vpop.f32.mrf.mxu0 }
 0x295   : > { %v5995_v36 = vpop.f32.mrf.mxu1 }
 0x296   : > { %v6485_v4 = vpop.f32.mrf.mxu0  ;;  %v6049_v25 = vadd.f32 %v5995_v36, %v13235_v31 }
 0x297   : > { %v13401_v35 = vadd.f32 %v6485_v4, %v6046_v61  ;;  %v9306_v47 = vpop.f32.mrf.mxu1 }
 0x298   : > { %v9353_v51 = vpop.f32.mrf.mxu0 }
 0x299   : > { %v5998_v42 = vpop.f32.mrf.mxu1 }
 0x29a   : > { %v6490_v48 = vpop.f32.mrf.mxu0  ;;  %v6050_v10 = vadd.f32 %v5998_v42, %v13254_v33 }
 0x29b   : > { %v13404_v55 = vadd.f32 %v6490_v48, %v6047_v17  ;;  %v9307_v27 = vpop.f32.mrf.mxu1 }
 0x29c   : > { %v9356_v24 = vpop.f32.mrf.mxu0 }
 0x29d   : > { %v6003_v32 = vpop.f32.mrf.mxu1 }
 0x29e   : > { %v6493_v14 = vpop.f32.mrf.mxu0  ;;  %v6051_v39 = vadd.f32 %v6003_v32, %v13265_v34 }
 0x29f   : > { %v13407_v1 = vadd.f32 %v6493_v14, %v6048_v37  ;;  %v9310_v56 = vpop.f32.mrf.mxu1 }
 0x2a0   : > { %v9357_v31 = vpop.f32.mrf.mxu0 }
 0x2a1   : > { %v6006_v6 = vpop.f32.mrf.mxu1 }
 0x2a2   : > { %v6498_v19 = vpop.f32.mrf.mxu0  ;;  %v6052_v57 = vadd.f32 %v6006_v6, %v13281_v16 }
 0x2a3   : > { %v13410_v26 = vadd.f32 %v6498_v19, %v6049_v25  ;;  %v9311_v13 = vpop.f32.mrf.mxu1 }
 0x2a4   : > { %v9360_v33 = vpop.f32.mrf.mxu0 }
 0x2a5   : > { %v6011_v15 = vpop.f32.mrf.mxu1  ;;  %v9549_v33 = vmov 1983009808  }
 0x2a6   : > { %v6501_v49 = vpop.f32.mrf.mxu0  ;;  %v6053_v9 = vadd.f32 %v6011_v15, %v13292_v22  ;;  %v7543_v15 = vunpack.c.l.s4 %v9549_v33 }
 0x2a7   : > { %v13413_v58 = vadd.f32 %v6501_v49, %v6050_v10  ;;  %v9314_v54 = vpop.f32.mrf.mxu1 }
 0x2a8   : > { %v9361_v34 = vpop.f32.mrf.mxu0 }
 0x2a9   : > { %v6014_v21 = vpop.f32.mrf.mxu1 }
 0x2aa   : > { %v6506_v20 = vpop.f32.mrf.mxu0  ;;  %v6054_v61 = vadd.f32 %v6014_v21, %v13319_v46  ;;  %v7544_v21 = vunpack.c.0.s8 %v7543_v15 }
 0x2ab   : > { %v13416_v41 = vadd.f32 %v6506_v20, %v6051_v39  ;;  %v9315_v30 = vpop.f32.mrf.mxu1 }
 0x2ac   : > { %v9364_v16 = vpop.f32.mrf.mxu0  ;;  %v13437_v30 = vld [vmem:[%s13669_s2] ss:$0 sm:$0xff] }
 0x2ad   : > { %v6019_v59 = vpop.f32.mrf.mxu1 }
 0x2ae   : > { %v6509_v5 = vpop.f32.mrf.mxu0  ;;  %v6055_v17 = vadd.f32 %v6019_v59, %v13329_v2 }
 0x2af   : > { %v13419_v63 = vadd.f32 %v6509_v5, %v6052_v57  ;;  %v9318_v23 = vpop.f32.mrf.mxu1 }
 0x2b0   : > { %v9365_v22 = vpop.f32.mrf.mxu0 }
 0x2b1   : > { %v6022_v43 = vpop.f32.mrf.mxu1  ;;  %v14863_v22 = vld [vmem:[#allocation2_spill] sm:$0xff] }
 0x2b2   : > { %v6514_v7 = vpop.f32.mrf.mxu0  ;;  %v6056_v37 = vadd.f32 %v6022_v43, %v13340_v53  ;;  %v13442_v43 = vsub.s32 %v7544_v21, %v14863_v22 }
 0x2b3   : > { %v13422_v3 = vadd.f32 %v6514_v7, %v6053_v9  ;;  %v9319_v50 = vpop.f32.mrf.mxu1 }
 0x2b4   : > { %v9368_v46 = vpop.f32.mrf.mxu0 }
 0x2b5   : > { %v6027_v36 = vpop.f32.mrf.mxu1 }
 0x2b6   : > { %v6517_v4 = vpop.f32.mrf.mxu0  ;;  %v6057_v25 = vadd.f32 %v6027_v36, %v13347_v62 }
 0x2b7   : > { %v13425_v47 = vadd.f32 %v6517_v4, %v6054_v61  ;;  %v9322_v51 = vpop.f32.mrf.mxu1 }
 0x2b8   : > { %v9369_v2 = vpop.f32.mrf.mxu0 }
 0x2b9   : > { %v6030_v42 = vpop.f32.mrf.mxu1 }
 0x2ba   : > { %v6522_v48 = vpop.f32.mrf.mxu0 }
 0x2bb   : > { %v13427_v10 = vadd.f32 %v6522_v48, %v6055_v17  ;;  %v9323_v27 = vpop.f32.mrf.mxu1 }
 0x2bc   : > { %v9372_v24 = vpop.f32.mrf.mxu0 }
 0x2bd   : > { %v6966_v32 = vpop.f32.mrf.mxu1 }
 0x2be   : > { %v6525_v53 = vpop.f32.mrf.mxu0  ;;  %v7068_v34 = vadd.f32 %v6966_v32, %v13358_v0 }
 0x2bf   : > { %v13429_v14 = vadd.f32 %v6525_v53, %v6056_v37  ;;  %v9382_v39 = vpop.f32.mrf.mxu1 }
 0x2c0   : > { %v9373_v56 = vpop.f32.mrf.mxu0 }
 0x2c1   : > { %v6969_v31 = vpop.f32.mrf.mxu1 }
 0x2c2   : > { %v6530_v6 = vpop.f32.mrf.mxu0  ;;  %v7069_v17 = vadd.f32 %v6969_v31, %v13364_v28 }
 0x2c3   : > { %v13431_v19 = vadd.f32 %v6530_v6, %v6057_v25  ;;  %v9383_v62 = vpop.f32.mrf.mxu1 }
 0x2c4   : > { %v9376_v57 = vpop.f32.mrf.mxu0 }
 0x2c5   : > { %v6974_v13 = vpop.f32.mrf.mxu1 }
 0x2c6   : > { %v6533_v49 = vpop.f32.mrf.mxu0  ;;  %v7070_v4 = vadd.f32 %v6974_v13, %v13368_v44 }
 0x2c7   : > { %v9386_v9 = vpop.f32.mrf.mxu1 }
 0x2c8   : > { %v9377_v54 = vpop.f32.mrf.mxu0 }
 0x2c9   : > { %v6977_v20 = vpop.f32.mrf.mxu1 }
 0x2ca   : > { %v7332_v61 = vpop.f32.mrf.mxu0  ;;  %v7071_v57 = vadd.f32 %v6977_v20, %v13371_v40 }
 0x2cb   : > { %v7434_v16 = vadd.f32 %v7332_v61, %v7068_v34  ;;  %v9387_v59 = vpop.f32.mrf.mxu1 }
 0x2cc   : > { %v9436_v5 = vpop.f32.mrf.mxu0 }
 0x2cd   : > { %v7466_v23 = vadd.f32 %v13437_v30, %v7434_v16  ;;  %v6982_v7 = vpop.f32.mrf.mxu1 }
 0x2ce   : > { %v7335_v0 = vpop.f32.mrf.mxu0  ;;  %v7072_v34 = vadd.f32 %v6982_v7, %v13374_v8 }
 0x2cf   : > { %v7491_v37 = vmax.f32 %v7466_v23, 0.0  ;;  %v7435_v50 = vadd.f32 %v7335_v0, %v7069_v17  ;;  %v9390_v46 = vpop.f32.mrf.mxu1 }
 0x2d0   : > { %v9437_v36 = vpop.f32.mrf.mxu0 }
 0x2d1   : > { %v7541_v25 = vcombine.high %v7491_v37, %v7491_v37  ;;  %v7548_v51 = vrot.slane %v7491_v37, %v13442_v43  ;;  %v7467_v2 = vadd.f32 %v13437_v30, %v7435_v50  ;;  %v6985_v28 = vpop.f32.mrf.mxu1 }
 0x2d2   : > { %v7340_v42 = vpop.f32.mrf.mxu0 }
 0x2d3   : > { %v7555_v48 = vrot.slane %v7541_v25, %v13442_v43  ;;  %v7556_v27 = vcombine.high %v7548_v51, %v7548_v51  ;;  %v7492_v24 = vmax.f32 %v7467_v2, 0.0  ;;  %v7436_v32 = vadd.f32 %v7340_v42, %v7070_v4  ;;  %v9391_v53 = vpop.f32.mrf.mxu1 }
 0x2d4   : > { %v9440_v39 = vpop.f32.mrf.mxu0 }
 0x2d5   : > { %v7557_v56 = vcombine.high %v7555_v48, %v7555_v48  ;;  %v7957_v31 = vcombine.low %v7548_v51, %v7556_v27  ;;  %v7558_v6 = vcombine.high %v7492_v24, %v7492_v24  ;;  %v7565_v44 = vrot.slane %v7492_v24, %v13442_v43  ;;  %v6990_v62 = vpop.f32.mrf.mxu1 }
 0x2d6   : > { %v7468_v13 = vadd.f32 %v13437_v30, %v7436_v32  ;;  %v7343_v33 = vpop.f32.mrf.mxu0  ;;  %v7073_v27 = vadd.f32 %v6985_v28, %v13377_v38 }
 0x2d7   : > { %v7958_v15 = vcombine.low %v7555_v48, %v7557_v56  ;;  %v7572_v49 = vrot.slane %v7558_v6, %v13442_v43  ;;  %v7573_v9 = vcombine.high %v7565_v44, %v7565_v44  ;;  %v9394_v54 = vpop.f32.mrf.mxu1  ;;  %v7437_v61 = vadd.f32 %v7343_v33, %v7071_v57 }
 0x2d8   : > { %v7493_v21 = vmax.f32 %v7468_v13, 0.0  ;;  %v9441_v16 = vpop.f32.mrf.mxu0  ;;  %v7965_v59 = vrot.slane %v7957_v31, %v13442_v43 }
 0x2d9   : > { %v7972_v5 = vrot.slane %v7958_v15, %v13442_v43  ;;  %v7974_v17 = vcombine.low %v7565_v44, %v7573_v9  ;;  %v7574_v40 = vcombine.high %v7572_v49, %v7572_v49  ;;  %v6993_v20 = vpop.f32.mrf.mxu1  ;;  %v7469_v22 = vadd.f32 %v13437_v30, %v7437_v61 }
 0x2da   : > { %v7575_v23 = vcombine.high %v7493_v21, %v7493_v21  ;;  %v7582_v8 = vrot.slane %v7493_v21, %v13442_v43  ;;  %v7348_v7 = vpop.f32.mrf.mxu0  ;;  %v7988_v50 = vrot.slane %v7572_v49, %v13442_v43 }
 0x2db   : > { %v7973_v0 = vcombine.low %v7965_v59, %v7972_v5  ;;  %v7981_v37 = vrot.slane %v7974_v17, %v13442_v43  ;;  %v7438_v46 = vadd.f32 %v7348_v7, %v7072_v34  ;;  %v9395_v36 = vpop.f32.mrf.mxu1  ;;  %v7494_v2 = vmax.f32 %v7469_v22, 0.0 }
 0x2dc   : > { %v7589_v4 = vrot.slane %v7575_v23, %v13442_v43  ;;  %v7590_v25 = vcombine.high %v7582_v8, %v7582_v8  ;;  %v7990_v51 = vcombine.low %v7574_v40, %v7582_v8  ;;  %v9444_v42 = vpop.f32.mrf.mxu0  ;;  %v7074_v59 = vadd.f32 %v6990_v62, %v13380_v52 }
 0x2dd   : > { %8448 = vst.msk [vmem:[%s13459_s10] sm:$0xff] %vm8447_vm0, %v7973_v0  ;;  %v7989_v48 = vcombine.low %v7981_v37, %v7988_v50  ;;  %v7470_v24 = vadd.f32 %v13437_v30, %v7438_v46  ;;  %v6998_v32 = vpop.f32.mrf.mxu1  ;;  %v7592_v56 = vcombine.high %v7494_v2, %v7494_v2  ;;  %v7599_v6 = vrot.slane %v7494_v2, %v13442_v43 }
 0x2de   : > { %v7991_v53 = vcombine.low %v7590_v25, %v7589_v4  ;;  %v7591_v39 = vcombine.high %v7589_v4, %v7589_v4  ;;  %v7351_v31 = vpop.f32.mrf.mxu0  ;;  %v7998_v33 = vrot.slane %v7990_v51, %v13442_v43  ;;  %v7075_v4 = vadd.f32 %v6993_v20, %v13383_v45 }
 0x2df   : > { %8450 = vst.msk [vmem:[%s13459_s10 + $0x8] sm:$0x3f] %vm8449_vm3, %v7989_v48  ;;  %v7495_v44 = vmax.f32 %v7470_v24, 0.0  ;;  %v7439_v57 = vadd.f32 %v7351_v31, %v7073_v27  ;;  %v9398_v13 = vpop.f32.mrf.mxu1  ;;  %v7606_v38 = vrot.slane %v7592_v56, %v13442_v43  ;;  %v7607_v49 = vcombine.high %v7599_v6, %v7599_v6 }
 0x2e0   : > { %v8005_v15 = vrot.slane %v7991_v53, %v13442_v43  ;;  %v9445_v28 = vpop.f32.mrf.mxu0  ;;  %v8007_v9 = vcombine.low %v7591_v39, %v7599_v6  ;;  %v7076_v20 = vadd.f32 %v6998_v32, %v13386_v60 }
 0x2e1   : > { %v7609_v54 = vcombine.high %v7495_v44, %v7495_v44  ;;  %v7616_v34 = vrot.slane %v7495_v44, %v13442_v43  ;;  %v7001_v21 = vpop.f32.mrf.mxu1  ;;  %v7608_v16 = vcombine.high %v7606_v38, %v7606_v38  ;;  %v7471_v5 = vadd.f32 %v13437_v30, %v7439_v57 }
 0x2e2   : > { %v8006_v61 = vcombine.low %v7998_v33, %v8005_v15  ;;  %v7356_v17 = vpop.f32.mrf.mxu0  ;;  %v8014_v40 = vrot.slane %v8007_v9, %v13442_v43  ;;  %v8021_v23 = vrot.slane %v7607_v49, %v13442_v43 }
 0x2e3   : > { %v7623_v8 = vrot.slane %v7609_v54, %v13442_v43  ;;  %v7624_v22 = vcombine.high %v7616_v34, %v7616_v34  ;;  %v9399_v7 = vpop.f32.mrf.mxu1  ;;  %v8023_v0 = vcombine.low %v7606_v38, %v7608_v16  ;;  %v7496_v37 = vmax.f32 %v7471_v5, 0.0 }
 0x2e4   : > { %8451 = vst.msk [vmem:[%s13459_s10 + $0x10] sm:$0xff] %vm8447_vm0, %v8006_v61  ;;  %v7440_v50 = vadd.f32 %v7356_v17, %v7074_v59  ;;  %v9448_v46 = vpop.f32.mrf.mxu0  ;;  %v8022_v36 = vcombine.low %v8014_v40, %v8021_v23  ;;  %v7077_v23 = vadd.f32 %v7001_v21, %v13389_v29 }
 0x2e5   : > { %v7625_v52 = vcombine.high %v7623_v8, %v7623_v8  ;;  %v8024_v62 = vcombine.low %v7616_v34, %v7624_v22  ;;  %v7006_v25 = vpop.f32.mrf.mxu1  ;;  %v7626_v51 = vcombine.high %v7496_v37, %v7496_v37  ;;  %v7633_v2 = vrot.slane %v7496_v37, %v13442_v43 }
 0x2e6   : > { %v7472_v42 = vadd.f32 %v13437_v30, %v7440_v50  ;;  %v7359_v48 = vpop.f32.mrf.mxu0  ;;  %v8031_v27 = vrot.slane %v8023_v0, %v13442_v43  ;;  %8452 = vst.msk [vmem:[%s13459_s10 + $0x18] sm:$0x3f] %vm8449_vm3, %v8022_v36 }
 0x2e7   : > { %v8038_v24 = vrot.slane %v8024_v62, %v13442_v43  ;;  %v8040_v53 = vcombine.low %v7623_v8, %v7625_v52  ;;  %v7441_v39 = vadd.f32 %v7359_v48, %v7075_v4  ;;  %v9402_v56 = vpop.f32.mrf.mxu1  ;;  %v7640_v31 = vrot.slane %v7626_v51, %v13442_v43 }
 0x2e8   : > { %v7641_v45 = vcombine.high %v7633_v2, %v7633_v2  ;;  %v7497_v6 = vmax.f32 %v7472_v42, 0.0  ;;  %v9449_v44 = vpop.f32.mrf.mxu0  ;;  %v8054_v33 = vrot.slane %v7633_v2, %v13442_v43 }
 0x2e9   : > { %v8039_v57 = vcombine.low %v8031_v27, %v8038_v24  ;;  %v8047_v13 = vrot.slane %v8040_v53, %v13442_v43  ;;  %v7473_v15 = vadd.f32 %v13437_v30, %v7441_v39  ;;  %v7009_v38 = vpop.f32.mrf.mxu1  ;;  %v7642_v49 = vcombine.high %v7640_v31, %v7640_v31 }
 0x2ea   : > { %v8056_v28 = vcombine.low %v7641_v45, %v7640_v31  ;;  %v7643_v9 = vcombine.high %v7497_v6, %v7497_v6  ;;  %v7650_v54 = vrot.slane %v7497_v6, %v13442_v43  ;;  %v7364_v34 = vpop.f32.mrf.mxu0 }
 0x2eb   : > { %8453 = vst.msk [vmem:[%s13459_s10 + $0x20] sm:$0xff] %vm8447_vm0, %v8039_v57  ;;  %v8055_v60 = vcombine.low %v8047_v13, %v8054_v33  ;;  %v7498_v32 = vmax.f32 %v7473_v15, 0.0  ;;  %v7442_v61 = vadd.f32 %v7364_v34, %v7076_v20  ;;  %v9403_v16 = vpop.f32.mrf.mxu1  ;;  %v7078_v20 = vadd.f32 %v7006_v25, %v13392_v12 }
 0x2ec   : > { %v7657_v59 = vrot.slane %v7643_v9, %v13442_v43  ;;  %v7658_v5 = vcombine.high %v7650_v54, %v7650_v54  ;;  %v8057_v17 = vcombine.low %v7642_v49, %v7650_v54  ;;  %v9452_v40 = vpop.f32.mrf.mxu0  ;;  %v8064_v37 = vrot.slane %v8056_v28, %v13442_v43 }
 0x2ed   : > { %8454 = vst.msk [vmem:[%s13459_s10 + $0x28] sm:$0x3f] %vm8449_vm3, %v8055_v60  ;;  %v7660_v8 = vcombine.high %v7498_v32, %v7498_v32  ;;  %v7667_v22 = vrot.slane %v7498_v32, %v13442_v43  ;;  %v7474_v7 = vadd.f32 %v13437_v30, %v7442_v61  ;;  %v7014_v0 = vpop.f32.mrf.mxu1  ;;  %v7079_v28 = vadd.f32 %v7009_v38, %v13395_v11 }
 0x2ee   : > { %v7659_v50 = vcombine.high %v7657_v59, %v7657_v59  ;;  %v8071_v46 = vrot.slane %v8057_v17, %v13442_v43  ;;  %v8073_v36 = vcombine.low %v7658_v5, %v7657_v59  ;;  %v7367_v52 = vpop.f32.mrf.mxu0 }
 0x2ef   : > { %v7674_v62 = vrot.slane %v7660_v8, %v13442_v43  ;;  %v7675_v4 = vcombine.high %v7667_v22, %v7667_v22  ;;  %v7499_v51 = vmax.f32 %v7474_v7, 0.0  ;;  %v7443_v2 = vadd.f32 %v7367_v52, %v7077_v23  ;;  %v9406_v29 = vpop.f32.mrf.mxu1 }
 0x2f0   : > { %v8072_v21 = vcombine.low %v8064_v37, %v8071_v46  ;;  %v8080_v42 = vrot.slane %v8073_v36, %v13442_v43  ;;  %v8087_v48 = vrot.slane %v7659_v50, %v13442_v43  ;;  %v9453_v27 = vpop.f32.mrf.mxu0  ;;  %v7080_v36 = vadd.f32 %v7014_v0, %v13398_v18 }
 0x2f1   : > { %v7676_v24 = vcombine.high %v7674_v62, %v7674_v62  ;;  %v8089_v53 = vcombine.low %v7667_v22, %v7675_v4  ;;  %v7677_v39 = vcombine.high %v7499_v51, %v7499_v51  ;;  %v7684_v56 = vrot.slane %v7499_v51, %v13442_v43  ;;  %v7017_v31 = vpop.f32.mrf.mxu1 }
 0x2f2   : > { %v8088_v45 = vcombine.low %v8080_v42, %v8087_v48  ;;  %8455 = vst.msk [vmem:[%s13459_s10 + $0x30] sm:$0xff] %vm8447_vm0, %v8072_v21  ;;  %v7475_v6 = vadd.f32 %v13437_v30, %v7443_v2  ;;  %v7372_v44 = vpop.f32.mrf.mxu0 }
 0x2f3   : > { %v8090_v57 = vcombine.low %v7674_v62, %v7676_v24  ;;  %v7691_v13 = vrot.slane %v7677_v39, %v13442_v43  ;;  %v7692_v33 = vcombine.high %v7684_v56, %v7684_v56  ;;  %v9407_v15 = vpop.f32.mrf.mxu1  ;;  %v7444_v9 = vadd.f32 %v7372_v44, %v7078_v20 }
 0x2f4   : > { %8456 = vst.msk [vmem:[%s13459_s10 + $0x38] sm:$0x3f] %vm8449_vm3, %v8088_v45  ;;  %v7500_v49 = vmax.f32 %v7475_v6, 0.0  ;;  %v9456_v54 = vpop.f32.mrf.mxu0  ;;  %v8097_v34 = vrot.slane %v8089_v53, %v13442_v43 }
 0x2f5   : > { %v8104_v60 = vrot.slane %v8090_v57, %v13442_v43  ;;  %v8106_v12 = vcombine.low %v7684_v56, %v7692_v33  ;;  %v7693_v25 = vcombine.high %v7691_v13, %v7691_v13  ;;  %v7022_v32 = vpop.f32.mrf.mxu1  ;;  %v7476_v59 = vadd.f32 %v13437_v30, %v7444_v9 }
 0x2f6   : > { %v7694_v61 = vcombine.high %v7500_v49, %v7500_v49  ;;  %v7701_v16 = vrot.slane %v7500_v49, %v13442_v43  ;;  %v7375_v5 = vpop.f32.mrf.mxu0  ;;  %v8120_v38 = vrot.slane %v7691_v13, %v13442_v43  ;;  %v7081_v13 = vadd.f32 %v7017_v31, %v13401_v35 }
 0x2f7   : > { %v8105_v17 = vcombine.low %v8097_v34, %v8104_v60  ;;  %v8113_v11 = vrot.slane %v8106_v12, %v13442_v43  ;;  %v7445_v40 = vadd.f32 %v7375_v5, %v7079_v28  ;;  %v9410_v23 = vpop.f32.mrf.mxu1  ;;  %v7501_v37 = vmax.f32 %v7476_v59, 0.0 }
 0x2f8   : > { %v7708_v8 = vrot.slane %v7694_v61, %v13442_v43  ;;  %v7709_v22 = vcombine.high %v7701_v16, %v7701_v16  ;;  %v8122_v7 = vcombine.low %v7693_v25, %v7701_v16  ;;  %v9457_v50 = vpop.f32.mrf.mxu0  ;;  %v7082_v59 = vadd.f32 %v7022_v32, %v13404_v55 }
 0x2f9   : > { %8457 = vst.msk [vmem:[%s13459_s10 + $0x40] sm:$0xff] %vm8447_vm0, %v8105_v17  ;;  %v8121_v46 = vcombine.low %v8113_v11, %v8120_v38  ;;  %v7477_v52 = vadd.f32 %v13437_v30, %v7445_v40  ;;  %v7025_v62 = vpop.f32.mrf.mxu1  ;;  %v7711_v2 = vcombine.high %v7501_v37, %v7501_v37  ;;  %v7718_v21 = vrot.slane %v7501_v37, %v13442_v43 }
 0x2fa   : > { %v8123_v4 = vcombine.low %v7709_v22, %v7708_v8  ;;  %v7710_v51 = vcombine.high %v7708_v8, %v7708_v8  ;;  %v7380_v29 = vpop.f32.mrf.mxu0  ;;  %v8130_v24 = vrot.slane %v8122_v7, %v13442_v43  ;;  %v7083_v32 = vadd.f32 %v7025_v62, %v13407_v1 }
 0x2fb   : > { %8458 = vst.msk [vmem:[%s13459_s10 + $0x48] sm:$0x3f] %vm8449_vm3, %v8121_v46  ;;  %v7502_v42 = vmax.f32 %v7477_v52, 0.0  ;;  %v7446_v48 = vadd.f32 %v7380_v29, %v7080_v36  ;;  %v9411_v27 = vpop.f32.mrf.mxu1  ;;  %v7725_v18 = vrot.slane %v7711_v2, %v13442_v43  ;;  %v7726_v39 = vcombine.high %v7718_v21, %v7718_v21 }
 0x2fc   : > { %v8137_v53 = vrot.slane %v8123_v4, %v13442_v43  ;;  %v9460_v0 = vpop.f32.mrf.mxu0  ;;  %v8139_v56 = vcombine.low %v7710_v51, %v7718_v21 }
 0x2fd   : > { %v7728_v45 = vcombine.high %v7502_v42, %v7502_v42  ;;  %v7735_v20 = vrot.slane %v7502_v42, %v13442_v43  ;;  %v7030_v6 = vpop.f32.mrf.mxu1  ;;  %v7727_v57 = vcombine.high %v7725_v18, %v7725_v18  ;;  %v7478_v33 = vadd.f32 %v13437_v30, %v7446_v48 }
 0x2fe   : > { %v8138_v44 = vcombine.low %v8130_v24, %v8137_v53  ;;  %v7383_v15 = vpop.f32.mrf.mxu0  ;;  %v8146_v28 = vrot.slane %v8139_v56, %v13442_v43  ;;  %v8153_v49 = vrot.slane %v7726_v39, %v13442_v43 }
 0x2ff   : > { %v7742_v9 = vrot.slane %v7728_v45, %v13442_v43  ;;  %v7743_v54 = vcombine.high %v7735_v20, %v7735_v20  ;;  %v9414_v34 = vpop.f32.mrf.mxu1  ;;  %v8155_v60 = vcombine.low %v7725_v18, %v7727_v57  ;;  %v7503_v12 = vmax.f32 %v7478_v33, 0.0 }
 0x300   : > { %8459 = vst.msk [vmem:[%s13459_s10 + $0x50] sm:$0xff] %vm8447_vm0, %v8138_v44  ;;  %v7447_v25 = vadd.f32 %v7383_v15, %v7081_v13  ;;  %v9461_v61 = vpop.f32.mrf.mxu0  ;;  %v8154_v16 = vcombine.low %v8146_v28, %v8153_v49 }
 0x301   : > { %v7744_v35 = vcombine.high %v7742_v9, %v7742_v9  ;;  %v8156_v31 = vcombine.low %v7735_v20, %v7743_v54  ;;  %v7033_v5 = vpop.f32.mrf.mxu1  ;;  %v7745_v17 = vcombine.high %v7503_v12, %v7503_v12  ;;  %v7752_v11 = vrot.slane %v7503_v12, %v13442_v43 }
 0x302   : > { %v7479_v38 = vadd.f32 %v13437_v30, %v7447_v25  ;;  %v7388_v40 = vpop.f32.mrf.mxu0  ;;  %v8163_v23 = vrot.slane %v8155_v60, %v13442_v43  ;;  %8460 = vst.msk [vmem:[%s13459_s10 + $0x58] sm:$0x3f] %vm8449_vm3, %v8154_v16  ;;  %v7084_v20 = vadd.f32 %v7030_v6, %v13410_v26 }
 0x303   : > { %v8170_v8 = vrot.slane %v8156_v31, %v13442_v43  ;;  %v8172_v22 = vcombine.low %v7742_v9, %v7744_v35  ;;  %v7448_v7 = vadd.f32 %v7388_v40, %v7082_v59  ;;  %v9415_v37 = vpop.f32.mrf.mxu1  ;;  %v7759_v50 = vrot.slane %v7745_v17, %v13442_v43 }
 0x304   : > { %v7760_v55 = vcombine.high %v7752_v11, %v7752_v11  ;;  %v7504_v46 = vmax.f32 %v7479_v38, 0.0  ;;  %v9464_v36 = vpop.f32.mrf.mxu0  ;;  %v8186_v51 = vrot.slane %v7752_v11, %v13442_v43 }
 0x305   : > { %v8171_v52 = vcombine.low %v8163_v23, %v8170_v8  ;;  %v8179_v4 = vrot.slane %v8172_v22, %v13442_v43  ;;  %v7480_v2 = vadd.f32 %v13437_v30, %v7448_v7  ;;  %v7038_v29 = vpop.f32.mrf.mxu1  ;;  %v7761_v42 = vcombine.high %v7759_v50, %v7759_v50 }
 0x306   : > { %v8188_v21 = vcombine.low %v7760_v55, %v7759_v50  ;;  %v7762_v48 = vcombine.high %v7504_v46, %v7504_v46  ;;  %v7769_v27 = vrot.slane %v7504_v46, %v13442_v43  ;;  %v7391_v24 = vpop.f32.mrf.mxu0  ;;  %v7085_v23 = vadd.f32 %v7033_v5, %v13413_v58 }
 0x307   : > { %8461 = vst.msk [vmem:[%s13459_s10 + $0x60] sm:$0xff] %vm8447_vm0, %v8171_v52  ;;  %v8187_v1 = vcombine.low %v8179_v4, %v8186_v51  ;;  %v7505_v62 = vmax.f32 %v7480_v2, 0.0  ;;  %v7449_v53 = vadd.f32 %v7391_v24, %v7083_v32  ;;  %v9418_v18 = vpop.f32.mrf.mxu1  ;;  %v7086_v32 = vadd.f32 %v7038_v29, %v13416_v41 }
 0x308   : > { %v7776_v0 = vrot.slane %v7762_v48, %v13442_v43  ;;  %v7777_v39 = vcombine.high %v7769_v27, %v7769_v27  ;;  %v8189_v56 = vcombine.low %v7761_v42, %v7769_v27  ;;  %v9465_v45 = vpop.f32.mrf.mxu0  ;;  %v8196_v15 = vrot.slane %v8188_v21, %v13442_v43 }
 0x309   : > { %8462 = vst.msk [vmem:[%s13459_s10 + $0x68] sm:$0x3f] %vm8449_vm3, %v8187_v1  ;;  %v7779_v44 = vcombine.high %v7505_v62, %v7505_v62  ;;  %v7786_v57 = vrot.slane %v7505_v62, %v13442_v43  ;;  %v7481_v13 = vadd.f32 %v13437_v30, %v7449_v53  ;;  %v7041_v33 = vpop.f32.mrf.mxu1 }
 0x30a   : > { %v7778_v28 = vcombine.high %v7776_v0, %v7776_v0  ;;  %v8203_v49 = vrot.slane %v8189_v56, %v13442_v43  ;;  %v8205_v9 = vcombine.low %v7777_v39, %v7776_v0  ;;  %v7396_v54 = vpop.f32.mrf.mxu0 }
 0x30b   : > { %v7793_v34 = vrot.slane %v7779_v44, %v13442_v43  ;;  %v7794_v60 = vcombine.high %v7786_v57, %v7786_v57  ;;  %v7506_v12 = vmax.f32 %v7481_v13, 0.0  ;;  %v7450_v25 = vadd.f32 %v7396_v54, %v7084_v20  ;;  %v9419_v26 = vpop.f32.mrf.mxu1 }
 0x30c   : > { %v8204_v6 = vcombine.low %v8196_v15, %v8203_v49  ;;  %v8212_v61 = vrot.slane %v8205_v9, %v13442_v43  ;;  %v8219_v16 = vrot.slane %v7778_v28, %v13442_v43  ;;  %v9468_v35 = vpop.f32.mrf.mxu0  ;;  %v7087_v20 = vadd.f32 %v7041_v33, %v13419_v63 }
 0x30d   : > { %v7795_v31 = vcombine.high %v7793_v34, %v7793_v34  ;;  %v8221_v59 = vcombine.low %v7786_v57, %v7794_v60  ;;  %v7796_v17 = vcombine.high %v7506_v12, %v7506_v12  ;;  %v7803_v11 = vrot.slane %v7506_v12, %v13442_v43  ;;  %v7046_v38 = vpop.f32.mrf.mxu1 }
 0x30e   : > { %v8220_v40 = vcombine.low %v8212_v61, %v8219_v16  ;;  %8463 = vst.msk [vmem:[%s13459_s10 + $0x70] sm:$0xff] %vm8447_vm0, %v8204_v6  ;;  %v7482_v8 = vadd.f32 %v13437_v30, %v7450_v25  ;;  %v7399_v22 = vpop.f32.mrf.mxu0 }
 0x30f   : > { %v8222_v7 = vcombine.low %v7793_v34, %v7795_v31  ;;  %v7810_v37 = vrot.slane %v7796_v17, %v13442_v43  ;;  %v7811_v50 = vcombine.high %v7803_v11, %v7803_v11  ;;  %v9422_v55 = vpop.f32.mrf.mxu1  ;;  %v7451_v36 = vadd.f32 %v7399_v22, %v7085_v23 }
 0x310   : > { %8464 = vst.msk [vmem:[%s13459_s10 + $0x78] sm:$0x3f] %vm8449_vm3, %v8220_v40  ;;  %v7507_v46 = vmax.f32 %v7482_v8, 0.0  ;;  %v9469_v52 = vpop.f32.mrf.mxu0  ;;  %v8229_v4 = vrot.slane %v8221_v59, %v13442_v43  ;;  %v7088_v17 = vadd.f32 %v7046_v38, %v13422_v3 }
 0x311   : > { %v8236_v51 = vrot.slane %v8222_v7, %v13442_v43  ;;  %v8238_v58 = vcombine.low %v7803_v11, %v7811_v50  ;;  %v7812_v5 = vcombine.high %v7810_v37, %v7810_v37  ;;  %v7049_v2 = vpop.f32.mrf.mxu1  ;;  %v7483_v48 = vadd.f32 %v13437_v30, %v7451_v36 }
 0x312   : > { %v7813_v21 = vcombine.high %v7507_v46, %v7507_v46  ;;  %v7820_v42 = vrot.slane %v7507_v46, %v13442_v43  ;;  %v7404_v27 = vpop.f32.mrf.mxu0  ;;  %v8252_v29 = vrot.slane %v7810_v37, %v13442_v43  ;;  %v7089_v52 = vadd.f32 %v7049_v2, %v13425_v47 }
 0x313   : > { %v8237_v24 = vcombine.low %v8229_v4, %v8236_v51  ;;  %v8245_v41 = vrot.slane %v8238_v58, %v13442_v43  ;;  %v7452_v1 = vadd.f32 %v7404_v27, %v7086_v32  ;;  %v9423_v62 = vpop.f32.mrf.mxu1  ;;  %v7508_v39 = vmax.f32 %v7483_v48, 0.0 }
 0x314   : > { %v7827_v53 = vrot.slane %v7813_v21, %v13442_v43  ;;  %v7828_v18 = vcombine.high %v7820_v42, %v7820_v42  ;;  %v8254_v0 = vcombine.low %v7812_v5, %v7820_v42  ;;  %v9472_v56 = vpop.f32.mrf.mxu0 }
 0x315   : > { %8465 = vst.msk [vmem:[%s13459_s10 + $0x80] sm:$0xff] %vm8447_vm0, %v8237_v24  ;;  %v8253_v45 = vcombine.low %v8245_v41, %v8252_v29  ;;  %v7484_v44 = vadd.f32 %v13437_v30, %v7452_v1  ;;  %v7054_v57 = vpop.f32.mrf.mxu1  ;;  %v7830_v28 = vcombine.high %v7508_v39, %v7508_v39  ;;  %v7837_v9 = vrot.slane %v7508_v39, %v13442_v43 }
 0x316   : > { %v8255_v13 = vcombine.low %v7828_v18, %v7827_v53  ;;  %v7829_v15 = vcombine.high %v7827_v53, %v7827_v53  ;;  %v7407_v49 = vpop.f32.mrf.mxu0  ;;  %v8262_v12 = vrot.slane %v8254_v0, %v13442_v43  ;;  %v7090_v2 = vadd.f32 %v7054_v57, %v13427_v10 }
 0x317   : > { %8466 = vst.msk [vmem:[%s13459_s10 + $0x88] sm:$0x3f] %vm8449_vm3, %v8253_v45  ;;  %v7509_v54 = vmax.f32 %v7484_v44, 0.0  ;;  %v7453_v34 = vadd.f32 %v7407_v49, %v7087_v20  ;;  %v9426_v60 = vpop.f32.mrf.mxu1  ;;  %v7844_v63 = vrot.slane %v7830_v28, %v13442_v43  ;;  %v7845_v26 = vcombine.high %v7837_v9, %v7837_v9 }
 0x318   : > { %v8269_v25 = vrot.slane %v8255_v13, %v13442_v43  ;;  %v9473_v33 = vpop.f32.mrf.mxu0  ;;  %v8271_v6 = vcombine.low %v7829_v15, %v7837_v9 }
 0x319   : > { %v7847_v61 = vcombine.high %v7509_v54, %v7509_v54  ;;  %v7854_v16 = vrot.slane %v7509_v54, %v13442_v43  ;;  %v7057_v35 = vpop.f32.mrf.mxu1  ;;  %v7846_v59 = vcombine.high %v7844_v63, %v7844_v63  ;;  %v7485_v11 = vadd.f32 %v13437_v30, %v7453_v34 }
 0x31a   : > { %v8270_v31 = vcombine.low %v8262_v12, %v8269_v25  ;;  %v7412_v40 = vpop.f32.mrf.mxu0  ;;  %v8278_v23 = vrot.slane %v8271_v6, %v13442_v43  ;;  %v8285_v8 = vrot.slane %v7845_v26, %v13442_v43  ;;  %v7091_v12 = vadd.f32 %v7057_v35, %v13429_v14 }
 0x31b   : > { %v7861_v22 = vrot.slane %v7847_v61, %v13442_v43  ;;  %v7862_v7 = vcombine.high %v7854_v16, %v7854_v16  ;;  %v9427_v37 = vpop.f32.mrf.mxu1  ;;  %v8287_v50 = vcombine.low %v7844_v63, %v7846_v59  ;;  %v7510_v55 = vmax.f32 %v7485_v11, 0.0 }
 0x31c   : > { %8467 = vst.msk [vmem:[%s13459_s10 + $0x90] sm:$0xff] %vm8447_vm0, %v8270_v31  ;;  %v7454_v32 = vadd.f32 %v7412_v40, %v7088_v17  ;;  %v9476_v46 = vpop.f32.mrf.mxu0  ;;  %v8286_v36 = vcombine.low %v8278_v23, %v8285_v8 }
 0x31d   : > { %v7863_v3 = vcombine.high %v7861_v22, %v7861_v22  ;;  %v8288_v38 = vcombine.low %v7854_v16, %v7862_v7  ;;  %v7062_v4 = vpop.f32.mrf.mxu1  ;;  %v7864_v51 = vcombine.high %v7510_v55, %v7510_v55  ;;  %v7871_v58 = vrot.slane %v7510_v55, %v13442_v43 }
 0x31e   : > { %v7486_v5 = vadd.f32 %v13437_v30, %v7454_v32  ;;  %v7415_v21 = vpop.f32.mrf.mxu0  ;;  %v8295_v42 = vrot.slane %v8287_v50, %v13442_v43  ;;  %8468 = vst.msk [vmem:[%s13459_s10 + $0x98] sm:$0x3f] %vm8449_vm3, %v8286_v36  ;;  %v7092_v32 = vadd.f32 %v7062_v4, %v13431_v19 }
 0x31f   : > { %v8302_v48 = vrot.slane %v8288_v38, %v13442_v43  ;;  %v8304_v27 = vcombine.low %v7861_v22, %v7863_v3  ;;  %v7455_v24 = vadd.f32 %v7415_v21, %v7089_v52  ;;  %v9430_v41 = vpop.f32.mrf.mxu1  ;;  %v7878_v29 = vrot.slane %v7864_v51, %v13442_v43 }
 0x320   : > { %v7879_v47 = vcombine.high %v7871_v58, %v7871_v58  ;;  %v7511_v1 = vmax.f32 %v7486_v5, 0.0  ;;  %v9477_v62 = vpop.f32.mrf.mxu0  ;;  %v8318_v0 = vrot.slane %v7871_v58, %v13442_v43 }
 0x321   : > { %v8303_v53 = vcombine.low %v8295_v42, %v8302_v48  ;;  %v8311_v18 = vrot.slane %v8304_v27, %v13442_v43  ;;  %v7487_v39 = vadd.f32 %v13437_v30, %v7455_v24  ;;  %v7065_v56 = vpop.f32.mrf.mxu1  ;;  %v7880_v20 = vcombine.high %v7878_v29, %v7878_v29 }
 0x322   : > { %v8320_v45 = vcombine.low %v7879_v47, %v7878_v29  ;;  %v7881_v44 = vcombine.high %v7511_v1, %v7511_v1  ;;  %v7888_v13 = vrot.slane %v7511_v1, %v13442_v43  ;;  %v7420_v15 = vpop.f32.mrf.mxu0 }
 0x323   : > { %8469 = vst.msk [vmem:[%s13459_s10 + $0xa0] sm:$0xff] %vm8447_vm0, %v8303_v53  ;;  %v8319_v10 = vcombine.low %v8311_v18, %v8318_v0  ;;  %v7512_v57 = vmax.f32 %v7487_v39, 0.0  ;;  %v7456_v28 = vadd.f32 %v7420_v15, %v7090_v2  ;;  %v9431_v49 = vpop.f32.mrf.mxu1 }
 0x324   : > { %v7895_v9 = vrot.slane %v7881_v44, %v13442_v43  ;;  %v7896_v54 = vcombine.high %v7888_v13, %v7888_v13  ;;  %v8321_v34 = vcombine.low %v7880_v20, %v7888_v13  ;;  %v9480_v60 = vpop.f32.mrf.mxu0  ;;  %v8328_v26 = vrot.slane %v8320_v45, %v13442_v43 }
 0x325   : > { %8470 = vst.msk [vmem:[%s13459_s10 + $0xa8] sm:$0x3f] %vm8449_vm3, %v8319_v10  ;;  %v7898_v25 = vcombine.high %v7512_v57, %v7512_v57  ;;  %v7905_v63 = vrot.slane %v7512_v57, %v13442_v43  ;;  %v7488_v33 = vadd.f32 %v13437_v30, %v7456_v28 }
 0x326   : > { %v7897_v6 = vcombine.high %v7895_v9, %v7895_v9  ;;  %v8335_v61 = vrot.slane %v8321_v34, %v13442_v43  ;;  %v8337_v16 = vcombine.low %v7896_v54, %v7895_v9  ;;  %v7423_v31 = vpop.f32.mrf.mxu0 }
 0x327   : > { %v7912_v59 = vrot.slane %v7898_v25, %v13442_v43  ;;  %v7913_v17 = vcombine.high %v7905_v63, %v7905_v63  ;;  %v7513_v11 = vmax.f32 %v7488_v33, 0.0  ;;  %v7457_v40 = vadd.f32 %v7423_v31, %v7091_v12 }
 0x328   : > { %v8336_v23 = vcombine.low %v8328_v26, %v8335_v61  ;;  %v8344_v14 = vrot.slane %v8337_v16, %v13442_v43  ;;  %v8351_v35 = vrot.slane %v7897_v6, %v13442_v43  ;;  %v9481_v8 = vpop.f32.mrf.mxu0 }
 0x329   : > { %v7914_v22 = vcombine.high %v7912_v59, %v7912_v59  ;;  %v8353_v7 = vcombine.low %v7905_v63, %v7913_v17  ;;  %v7915_v37 = vcombine.high %v7513_v11, %v7513_v11  ;;  %v7922_v50 = vrot.slane %v7513_v11, %v13442_v43 }
 0x32a   : > { %v8352_v55 = vcombine.low %v8344_v14, %v8351_v35  ;;  %8471 = vst.msk [vmem:[%s13459_s10 + $0xb0] sm:$0xff] %vm8447_vm0, %v8336_v23  ;;  %v7489_v46 = vadd.f32 %v13437_v30, %v7457_v40  ;;  %v7428_v36 = vpop.f32.mrf.mxu0 }
 0x32b   : > { %v8354_v3 = vcombine.low %v7912_v59, %v7914_v22  ;;  %v7929_v38 = vrot.slane %v7915_v37, %v13442_v43  ;;  %v7930_v52 = vcombine.high %v7922_v50, %v7922_v50  ;;  %v7458_v58 = vadd.f32 %v7428_v36, %v7092_v32 }
 0x32c   : > { %8472 = vst.msk [vmem:[%s13459_s10 + $0xb8] sm:$0x3f] %vm8449_vm3, %v8352_v55  ;;  %v7514_v51 = vmax.f32 %v7489_v46, 0.0  ;;  %v9484_v5 = vpop.f32.mrf.mxu0  ;;  %v8361_v21 = vrot.slane %v8353_v7, %v13442_v43 }
 0x32d   : > { %v8368_v42 = vrot.slane %v8354_v3, %v13442_v43  ;;  %v8370_v48 = vcombine.low %v7922_v50, %v7930_v52  ;;  %v7931_v27 = vcombine.high %v7929_v38, %v7929_v38  ;;  %v7490_v24 = vadd.f32 %v13437_v30, %v7458_v58 }
 0x32e   : > { %v7932_v19 = vcombine.high %v7514_v51, %v7514_v51  ;;  %v7939_v4 = vrot.slane %v7514_v51, %v13442_v43  ;;  %v7431_v41 = vpop.f32.mrf.mxu0  ;;  %v8384_v2 = vrot.slane %v7929_v38, %v13442_v43 }
 0x32f   : > { %v8369_v29 = vcombine.low %v8361_v21, %v8368_v42  ;;  %v8377_v47 = vrot.slane %v8370_v48, %v13442_v43  ;;  %v7515_v18 = vmax.f32 %v7490_v24, 0.0 }
 0x330   : > { %v7946_v1 = vrot.slane %v7932_v19, %v13442_v43  ;;  %v7947_v62 = vcombine.high %v7939_v4, %v7939_v4  ;;  %v8386_v53 = vcombine.low %v7931_v27, %v7939_v4  ;;  %v9485_v0 = vpop.f32.mrf.mxu0 }
 0x331   : > { %8473 = vst.msk [vmem:[%s13459_s10 + $0xc0] sm:$0xff] %vm8447_vm0, %v8369_v29  ;;  %v8385_v39 = vcombine.low %v8377_v47, %v8384_v2  ;;  %v7955_v30 = vrot.slane %v7515_v18, %v13442_v43 }
 0x332   : > { %v8387_v56 = vcombine.low %v7947_v62, %v7946_v1  ;;  %v7948_v45 = vcombine.high %v7946_v1, %v7946_v1  ;;  %v8394_v20 = vrot.slane %v8386_v53, %v13442_v43 }
 0x333   : > { %8474 = vst.msk [vmem:[%s13459_s10 + $0xc8] sm:$0x3f] %vm8449_vm3, %v8385_v39  ;;  %v7956_v13 = vcombine.high %v7955_v30, %v7955_v30 }
 0x334   : > { %v8401_v44 = vrot.slane %v8387_v56, %v13442_v43  ;;  %v8403_v15 = vcombine.low %v7948_v45, %v7955_v30 }
 0x335   : > { %v8417_v28 = vrot.slane %v7956_v13, %v13442_v43 }
 0x336   : > { %v8402_v10 = vcombine.low %v8394_v20, %v8401_v44  ;;  %v8410_v57 = vrot.slane %v8403_v15, %v13442_v43 }
 0x338   : > { %8475 = vst.msk [vmem:[%s13459_s10 + $0xd0] sm:$0xff] %vm8447_vm0, %v8402_v10  ;;  %v8418_v49 = vcombine.low %v8410_v57, %v8417_v28 }
 0x33a   : > { %8476 = vst.msk [vmem:[%s13459_s10 + $0xd8] sm:$0x3f] %vm8449_vm3, %v8418_v49 }
 0x33b PF: > { %s13_s14 = sadd.s32 1, %s9544_s14   ;;  %s14864_s12 = smov %s9540_s13 }
 0x33c   : > { %p10_p5 = scmp.ge.s32.totalorder %s13_s14, 4   ;;  %s14865_s13 = smov %s14867_s15 }
 0x33e   :  { %12 = sbr.rel (!%p10_p5) target bundleno = 2 (0x2), region = 63 }

</bundles_post_ra>
